<compile_context>
chip_gen: v5e
topology: v5e:2x2
jax: 0.10.0
libtpu: 0.0.40
codegen_flags: <defaults>
</compile_context>

<pallas_src>
import math

import jax
import jax.numpy as jnp
from jax.experimental import pallas as pl
from jax.experimental.pallas import tpu as pltpu

# ---------------- config (small but shape-consistent with the module) ----------------
BATCH = 2
SEQ = 8            # tokenized sequence length (incl. BOS at position 0)
PROMPT_LEN = 8     # prompt_length
D_MODEL = 32       # d_model
N_HEADS = 4
HEAD_DIM = D_MODEL // N_HEADS
FFN_DIM = 64       # encoder_ffn_dim
N_LAYERS = 2       # bart-base has 6; kept small, per-layer semantics identical
MOE_N_EXPERTS = 8
VOCAB = 64
MAX_POS = 64
LN_EPS = 1e-5
EMBED_SCALE = 1.0  # bart-base: scale_embedding=False -> embed_scale = 1.0
T_EXT = SEQ + PROMPT_LEN


# ---------------- shared math helpers (used inside kernel and reference) --------------
def _gelu(x):
    # TODO(synk): HF BART "gelu" is the exact erf-GELU; tanh approximation is used
    # because lax.erf lowering inside Mosaic is version-dependent (max abs diff ~1e-3).
    c = math.sqrt(2.0 / math.pi)
    return 0.5 * x * (1.0 + jnp.tanh(c * (x + 0.044715 * x * x * x)))


def _layer_norm(x, w, b):
    mu = jnp.mean(x, axis=-1, keepdims=True)
    var = jnp.mean(jnp.square(x - mu), axis=-1, keepdims=True)
    return (x - mu) * jax.lax.rsqrt(var + LN_EPS) * w + b


# ---------------- fused Pallas kernel --------------------------------------------------
def fused_encoder_kernel(x_ref, ln_emb_ref, prompt_ref,
                         wqkv_ref, bqkv_ref, wo_ref, bo_ref,
                         w1_ref, b1_ref, w2_ref, b2_ref,
                         ln1_ref, ln2_ref,
                         o_ref, xt_s, attn_s):
    """Whole PromptedBartEncoder forward in one invocation.

    x_ref:     (B, S, D)  token+position embeddings
    prompt_ref:(L, P, D)  static prompt (expert 0) per layer
    weights:   stacked over layers, QKV packed as (L, D, 3D)/(L, 1, 3D)
    o_ref:     (B, D)     pooled output (position 0)
    xt_s:      (B, S+P, D) extended-sequence scratch
    attn_s:    (B, S+P, D) attention-output scratch (per-head slices)
    """
    B, S, D = x_ref.shape
    L, P, _ = prompt_ref.shape
    T = S + P
    scale = 1.0 / math.sqrt(HEAD_DIM)

    # layernorm_embedding (dropout p=0.1 is identity in eval mode)
    x0 = _layer_norm(x_ref[...], ln_emb_ref[0:1], ln_emb_ref[1:2])      # (B, S, D)

    # Place original tokens once at their extended-sequence positions.  The
    # per-layer strip-then-reinsert of the PyTorch forward is equivalent to
    # simply rewriting rows [1, 1+P) with the new prompt each layer.
    xt_s[:, 0:1, :] = x0[:, 0:1, :]
    xt_s[:, 1 + P:, :] = x0[:, 1:, :]

    pooled = None
    for l in range(L):                                  # static unroll over layers
        xt_s[:, 1:1 + P, :] = jnp.broadcast_to(prompt_ref[l][None, :, :], (B, P, D))
        xt = xt_s[...]                                  # (B, T, D)
        x2 = xt.reshape(B * T, D)                       # fold batch into M dim

        # fused QKV projection: one (B*T, D) @ (D, 3D) matmul
        qkv = jnp.dot(x2, wqkv_ref[l],
                      preferred_element_type=jnp.float32) + bqkv_ref[l]
        qkv = qkv.reshape(B, T, 3 * D)

        # attention: per-head batched dots, outputs written straight into scratch
        for h in range(N_HEADS):                        # static unroll, no concat
            lo = h * HEAD_DIM
            qh = qkv[:, :, lo:lo + HEAD_DIM] * scale
            kh = qkv[:, :, D + lo:D + lo + HEAD_DIM]
            vh = qkv[:, :, 2 * D + lo:2 * D + lo + HEAD_DIM]
            s = jnp.einsum('bqd,bkd->bqk', qh, kh,
                           preferred_element_type=jnp.float32)          # (B, T, T)
            s = s - jnp.max(s, axis=-1, keepdims=True)
            p = jnp.exp(s)
            p = p * pl.reciprocal(jnp.sum(p, axis=-1, keepdims=True), approx=True)
            attn_s[:, :, lo:lo + HEAD_DIM] = jnp.einsum(
                'bqk,bkd->bqd', p, vh, preferred_element_type=jnp.float32)

        attn = attn_s[...].reshape(B * T, D)
        o = jnp.dot(attn, wo_ref[l], preferred_element_type=jnp.float32) + bo_ref[l]
        ln1 = ln1_ref[l]                                # (2, D)
        h1 = _layer_norm(x2 + o, ln1[0:1], ln1[1:2])

        ff = jnp.dot(h1, w1_ref[l], preferred_element_type=jnp.float32) + b1_ref[l]
        ff = _gelu(ff)
        ff = jnp.dot(ff, w2_ref[l], preferred_element_type=jnp.float32) + b2_ref[l]
        ln2 = ln2_ref[l]
        h2 = _layer_norm(h1 + ff, ln2[0:1], ln2[1:2]).reshape(B, T, D)

        pooled = h2[:, 0, :]                            # position 0 survives the strip
        if l + 1 < L:
            xt_s[...] = h2                              # carry; prompt rows rewritten next iter

    o_ref[...] = pooled


# ---------------- Pallas wrapper --------------------------------------------------------
def prompted_bart_encoder_forward(input_ids, params, packed):
    """Mirrors PromptedBartEncoder.forward (eval mode) as one fused Pallas kernel."""
    B, S = input_ids.shape
    # embed_tokens(input_ids) * embed_scale + embed_positions(input_ids)  (glue: gathers)
    tok = params["embed_tokens"][input_ids] * EMBED_SCALE                # (B, S, D)
    pos = params["embed_positions"][jnp.arange(S) + 2]                   # BART offset = 2
    x = (tok + pos[None, :, :]).astype(jnp.float32)

    args = [x, packed["ln_emb"], packed["prompt"],
            packed["wqkv"], packed["bqkv"], packed["wo"], packed["bo"],
            packed["w1"], packed["b1"], packed["w2"], packed["b2"],
            packed["ln1"], packed["ln2"]]

    pooled = pl.pallas_call(
        fused_encoder_kernel,
        out_shape=jax.ShapeDtypeStruct((B, D_MODEL), jnp.float32),
        in_specs=[pl.BlockSpec(memory_space=pltpu.MemorySpace.VMEM)] * len(args),
        out_specs=pl.BlockSpec(memory_space=pltpu.MemorySpace.VMEM),
        scratch_shapes=[pltpu.VMEM((B, S + PROMPT_LEN, D_MODEL), jnp.float32),
                        pltpu.VMEM((B, S + PROMPT_LEN, D_MODEL), jnp.float32)],
    )(*args)
    return pooled, pooled


# ---------------- parameter packing (stack per-layer params into few arrays) -----------
def pack_params(params):
    layers = params["layers"]
    L = len(layers)

    def stack(fn):
        return jnp.stack([fn(layers[l]) for l in range(L)], axis=0)

    return {
        "ln_emb": jnp.concatenate([params["ln_emb_w"], params["ln_emb_b"]], axis=0),
        "prompt": jnp.stack([params["prompt_vectors"][l][0] for l in range(L)], axis=0),
        "wqkv": stack(lambda p: jnp.concatenate([p["wq"], p["wk"], p["wv"]], axis=1)),
        "bqkv": stack(lambda p: jnp.concatenate([p["bq"], p["bk"], p["bv"]], axis=1)),
        "wo": stack(lambda p: p["wo"]),
        "bo": stack(lambda p: p["bo"]),
        "w1": stack(lambda p: p["w1"]),
        "b1": stack(lambda p: p["b1"]),
        "w2": stack(lambda p: p["w2"]),
        "b2": stack(lambda p: p["b2"]),
        "ln1": stack(lambda p: jnp.concatenate([p["ln1w"], p["ln1b"]], axis=0)),
        "ln2": stack(lambda p: jnp.concatenate([p["ln2w"], p["ln2b"]], axis=0)),
    }


# ---------------- pure-JAX reference (for correctness check) ---------------------------
def _ref_layer(x, p):
    B, T, D = x.shape
    scale = HEAD_DIM ** -0.5
    q = (x @ p["wq"] + p["bq"]) * scale
    k = x @ p["wk"] + p["bk"]
    v = x @ p["wv"] + p["bv"]
    split = lambda t: t.reshape(B, T, N_HEADS, HEAD_DIM)
    s = jnp.einsum("bqhd,bkhd->bhqk", split(q), split(k))
    a = jax.nn.softmax(s, axis=-1)
    o = jnp.einsum("bhqk,bkhd->bqhd", a, split(v)).reshape(B, T, D)
    o = o @ p["wo"] + p["bo"]
    h1 = _layer_norm(x + o, p["ln1w"], p["ln1b"])
    ff = _gelu(h1 @ p["w1"] + p["b1"]) @ p["w2"] + p["b2"]
    return _layer_norm(h1 + ff, p["ln2w"], p["ln2b"])


def reference_forward(input_ids, params):
    B, S = input_ids.shape
    tok = params["embed_tokens"][input_ids] * EMBED_SCALE
    pos = params["embed_positions"][jnp.arange(S) + 2]
    x = _layer_norm(tok + pos[None, :, :], params["ln_emb_w"], params["ln_emb_b"])
    prompt_start = 1
    for l in range(N_LAYERS):
        prompt = jnp.broadcast_to(params["prompt_vectors"][l][0],
                                  (B, PROMPT_LEN, D_MODEL))
        x = jnp.concatenate([x[:, :prompt_start], prompt, x[:, prompt_start:]], axis=1)
        x = _ref_layer(x, params["layers"][l])
        x = jnp.concatenate([x[:, :prompt_start], x[:, prompt_start + PROMPT_LEN:]],
                            axis=1)
    pooled = x[:, 0, :]
    return pooled, pooled


# ---------------- deterministic parameter construction ---------------------------------
def _linear_init(key, n_in, n_out):
    k1, k2 = jax.random.split(key)
    bound = 1.0 / math.sqrt(n_in)
    w = jax.random.uniform(k1, (n_in, n_out), jnp.float32, -bound, bound)   # (in, out)
    b = jax.random.uniform(k2, (1, n_out), jnp.float32, -bound, bound)
    return w, b


def init_all_params(key):
    ks = jax.random.split(key, 4 + N_LAYERS)
    params = {
        "embed_tokens": 0.02 * jax.random.normal(ks[0], (VOCAB, D_MODEL), jnp.float32),
        "embed_positions": 0.02 * jax.random.normal(ks[1], (MAX_POS + 2, D_MODEL),
                                                    jnp.float32),
        "ln_emb_w": jnp.ones((1, D_MODEL), jnp.float32),
        "ln_emb_b": jnp.zeros((1, D_MODEL), jnp.float32),
        "prompt_vectors": [],
        "layers": [],
    }
    for l in range(N_LAYERS):
        lk = jax.random.split(ks[4 + l], 8)
        params["prompt_vectors"].append(
            jax.random.uniform(lk[0], (MOE_N_EXPERTS, PROMPT_LEN, D_MODEL),
                               jnp.float32, -0.3, 0.3))
        wq, bq = _linear_init(lk[1], D_MODEL, D_MODEL)
        wk, bk = _linear_init(lk[2], D_MODEL, D_MODEL)
        wv, bv = _linear_init(lk[3], D_MODEL, D_MODEL)
        wo, bo = _linear_init(lk[4], D_MODEL, D_MODEL)
        w1, b1 = _linear_init(lk[5], D_MODEL, FFN_DIM)
        w2, b2 = _linear_init(lk[6], FFN_DIM, D_MODEL)
        params["layers"].append(dict(
            wq=wq, bq=bq, wk=wk, bk=bk, wv=wv, bv=bv, wo=wo, bo=bo,
            ln1w=jnp.ones((1, D_MODEL), jnp.float32),
            ln1b=jnp.zeros((1, D_MODEL), jnp.float32),
            w1=w1, b1=b1, w2=w2, b2=b2,
            ln2w=jnp.ones((1, D_MODEL), jnp.float32),
            ln2b=jnp.zeros((1, D_MODEL), jnp.float32)))
    return params


# ---------------- main ------------------------------------------------------------------
if __name__ == "__main__":
    key = jax.random.PRNGKey(0)
    pkey, dkey = jax.random.split(key)
    params = init_all_params(pkey)
    packed = pack_params(params)
    # synthetic tokenizer output (strings -> ids has no device equivalent)
    input_ids = jax.random.randint(dkey, (BATCH, SEQ), 0, VOCAB, dtype=jnp.int32)

    out, out2 = prompted_bart_encoder_forward(input_ids, params, packed)
    out = jax.block_until_ready(out)

    ref, _ = reference_forward(input_ids, params)
    if not jnp.allclose(out, ref, atol=2e-3, rtol=2e-3):
        raise AssertionError("Pallas output mismatch vs pure-JAX reference")
    assert out.shape == (BATCH, D_MODEL) and out2.shape == (BATCH, D_MODEL)
    print("KERNEL_OK")
</pallas_src>

<mosaic_0001>
module attributes {stable_mosaic.version = 11 : i64} {
  func.func @fused_encoder_kernel(%arg0: memref<2x8x32xf32, #tpu.memory_space<vmem>>, %arg1: memref<2x32xf32, #tpu.memory_space<vmem>>, %arg2: memref<2x8x32xf32, #tpu.memory_space<vmem>>, %arg3: memref<2x32x96xf32, #tpu.memory_space<vmem>>, %arg4: memref<2x1x96xf32, #tpu.memory_space<vmem>>, %arg5: memref<2x32x32xf32, #tpu.memory_space<vmem>>, %arg6: memref<2x1x32xf32, #tpu.memory_space<vmem>>, %arg7: memref<2x32x64xf32, #tpu.memory_space<vmem>>, %arg8: memref<2x1x64xf32, #tpu.memory_space<vmem>>, %arg9: memref<2x64x32xf32, #tpu.memory_space<vmem>>, %arg10: memref<2x1x32xf32, #tpu.memory_space<vmem>>, %arg11: memref<2x2x32xf32, #tpu.memory_space<vmem>>, %arg12: memref<2x2x32xf32, #tpu.memory_space<vmem>>, %arg13: memref<2x32xf32, #tpu.memory_space<vmem>>, %arg14: memref<2x16x32xf32, #tpu.memory_space<vmem>>, %arg15: memref<2x16x32xf32, #tpu.memory_space<vmem>>) attributes {dimension_semantics = [], scalar_prefetch = 0 : i64, scratch_operands = 2 : i64, tpu.core_type = #tpu.core_type<tc>} {
    %c0 = arith.constant 0 : index
    %c0_0 = arith.constant 0 : index
    %c0_1 = arith.constant 0 : index
    %0 = vector.load %arg0[%c0, %c0_0, %c0_1] : memref<2x8x32xf32, #tpu.memory_space<vmem>>, vector<2x8x32xf32>
    %c0_2 = arith.constant 0 : index
    %c0_3 = arith.constant 0 : index
    %1 = vector.load %arg1[%c0_2, %c0_3] : memref<2x32xf32, #tpu.memory_space<vmem>>, vector<1x32xf32>
    %c1 = arith.constant 1 : index
    %c0_4 = arith.constant 0 : index
    %2 = vector.load %arg1[%c1, %c0_4] : memref<2x32xf32, #tpu.memory_space<vmem>>, vector<1x32xf32>
    %cst = arith.constant dense<0.000000e+00> : vector<2x8xf32>
    %3 = vector.multi_reduction <add>, %0, %cst [2] : vector<2x8x32xf32> to vector<2x8xf32>
    %4 = vector.shape_cast %3 : vector<2x8xf32> to vector<2x8x1xf32>
    %cst_5 = arith.constant 3.200000e+01 : f32
    %5 = vector.broadcast %cst_5 : f32 to vector<2x8x1xf32>
    %6 = arith.divf %4, %5 : vector<2x8x1xf32>
    %7 = vector.broadcast %6 : vector<2x8x1xf32> to vector<2x8x32xf32>
    %8 = arith.subf %0, %7 : vector<2x8x32xf32>
    %9 = arith.mulf %8, %8 : vector<2x8x32xf32>
    %cst_6 = arith.constant dense<0.000000e+00> : vector<2x8xf32>
    %10 = vector.multi_reduction <add>, %9, %cst_6 [2] : vector<2x8x32xf32> to vector<2x8xf32>
    %11 = vector.shape_cast %10 : vector<2x8xf32> to vector<2x8x1xf32>
    %cst_7 = arith.constant 3.200000e+01 : f32
    %12 = vector.broadcast %cst_7 : f32 to vector<2x8x1xf32>
    %13 = arith.divf %11, %12 : vector<2x8x1xf32>
    %14 = vector.broadcast %6 : vector<2x8x1xf32> to vector<2x8x32xf32>
    %15 = arith.subf %0, %14 : vector<2x8x32xf32>
    %cst_8 = arith.constant 9.99999974E-6 : f32
    %16 = vector.broadcast %cst_8 : f32 to vector<2x8x1xf32>
    %17 = arith.addf %13, %16 : vector<2x8x1xf32>
    %18 = math.rsqrt %17 : vector<2x8x1xf32>
    %19 = vector.broadcast %18 : vector<2x8x1xf32> to vector<2x8x32xf32>
    %20 = arith.mulf %15, %19 : vector<2x8x32xf32>
    %21 = vector.shape_cast %1 : vector<1x32xf32> to vector<1x1x32xf32>
    %22 = vector.broadcast %21 : vector<1x1x32xf32> to vector<2x8x32xf32>
    %23 = arith.mulf %20, %22 : vector<2x8x32xf32>
    %24 = vector.shape_cast %2 : vector<1x32xf32> to vector<1x1x32xf32>
    %25 = vector.broadcast %24 : vector<1x1x32xf32> to vector<2x8x32xf32>
    %26 = arith.addf %23, %25 : vector<2x8x32xf32>
    %27 = vector.extract_strided_slice %26 {offsets = [0, 0, 0], sizes = [2, 1, 32], strides = [1, 1, 1]} : vector<2x8x32xf32> to vector<2x1x32xf32>
    %c0_9 = arith.constant 0 : index
    %c0_10 = arith.constant 0 : index
    %c0_11 = arith.constant 0 : index
    %28 = vector.load %arg14[%c0_9, %c0_10, %c0_11] : memref<2x16x32xf32, #tpu.memory_space<vmem>>, vector<2x1x32xf32>
    tpu.vector_store %arg14[%c0_9, %c0_10, %c0_11], %27 {strides = array<i32>} : memref<2x16x32xf32, #tpu.memory_space<vmem>>, vector<2x1x32xf32>,
    %29 = vector.extract_strided_slice %26 {offsets = [0, 1, 0], sizes = [2, 7, 32], strides = [1, 1, 1]} : vector<2x8x32xf32> to vector<2x7x32xf32>
    %c0_12 = arith.constant 0 : index
    %c9 = arith.constant 9 : index
    %c0_13 = arith.constant 0 : index
    %30 = vector.load %arg14[%c0_12, %c9, %c0_13] : memref<2x16x32xf32, #tpu.memory_space<vmem>>, vector<2x7x32xf32>
    tpu.vector_store %arg14[%c0_12, %c9, %c0_13], %29 {strides = array<i32>} : memref<2x16x32xf32, #tpu.memory_space<vmem>>, vector<2x7x32xf32>,
    %c0_14 = arith.constant 0 : index
    %c0_15 = arith.constant 0 : index
    %c0_16 = arith.constant 0 : index
    %31 = vector.load %arg2[%c0_14, %c0_15, %c0_16] : memref<2x8x32xf32, #tpu.memory_space<vmem>>, vector<1x8x32xf32>
    %32 = vector.shape_cast %31 : vector<1x8x32xf32> to vector<8x32xf32>
    %33 = vector.shape_cast %32 : vector<8x32xf32> to vector<1x8x32xf32>
    %34 = vector.shape_cast %33 : vector<1x8x32xf32> to vector<1x8x32xf32>
    %35 = vector.broadcast %34 : vector<1x8x32xf32> to vector<2x8x32xf32>
    %c0_17 = arith.constant 0 : index
    %c1_18 = arith.constant 1 : index
    %c0_19 = arith.constant 0 : index
    %36 = vector.load %arg14[%c0_17, %c1_18, %c0_19] : memref<2x16x32xf32, #tpu.memory_space<vmem>>, vector<2x8x32xf32>
    tpu.vector_store %arg14[%c0_17, %c1_18, %c0_19], %35 {strides = array<i32>} : memref<2x16x32xf32, #tpu.memory_space<vmem>>, vector<2x8x32xf32>,
    %c0_20 = arith.constant 0 : index
    %c0_21 = arith.constant 0 : index
    %c0_22 = arith.constant 0 : index
    %37 = vector.load %arg14[%c0_20, %c0_21, %c0_22] : memref<2x16x32xf32, #tpu.memory_space<vmem>>, vector<2x16x32xf32>
    %38 = vector.shape_cast %37 : vector<2x16x32xf32> to vector<32x32xf32>
    %c0_23 = arith.constant 0 : index
    %c0_24 = arith.constant 0 : index
    %c0_25 = arith.constant 0 : index
    %39 = vector.load %arg3[%c0_23, %c0_24, %c0_25] : memref<2x32x96xf32, #tpu.memory_space<vmem>>, vector<1x32x96xf32>
    %40 = vector.shape_cast %39 : vector<1x32x96xf32> to vector<32x96xf32>
    %cst_26 = arith.constant dense<0.000000e+00> : vector<32x96xf32>
    %41 = tpu.matmul %38, %40, %cst_26 {dimension_numbers = #tpu.dot_dimension_numbers<[1], [0], [0], [1], [0, 0, 1, 1], [], []>} : vector<32x32xf32>, vector<32x96xf32>, vector<32x96xf32> -> vector<32x96xf32>
    %c0_27 = arith.constant 0 : index
    %c0_28 = arith.constant 0 : index
    %c0_29 = arith.constant 0 : index
    %42 = vector.load %arg4[%c0_27, %c0_28, %c0_29] : memref<2x1x96xf32, #tpu.memory_space<vmem>>, vector<1x1x96xf32>
    %43 = vector.shape_cast %42 : vector<1x1x96xf32> to vector<1x96xf32>
    %44 = vector.broadcast %43 : vector<1x96xf32> to vector<32x96xf32>
    %45 = arith.addf %41, %44 : vector<32x96xf32>
    %46 = vector.shape_cast %45 : vector<32x96xf32> to vector<2x16x96xf32>
    %47 = vector.extract_strided_slice %46 {offsets = [0, 0, 0], sizes = [2, 16, 8], strides = [1, 1, 1]} : vector<2x16x96xf32> to vector<2x16x8xf32>
    %cst_30 = arith.constant 0.353553385 : f32
    %48 = vector.broadcast %cst_30 : f32 to vector<2x16x8xf32>
    %49 = arith.mulf %47, %48 : vector<2x16x8xf32>
    %50 = vector.extract_strided_slice %46 {offsets = [0, 0, 32], sizes = [2, 16, 8], strides = [1, 1, 1]} : vector<2x16x96xf32> to vector<2x16x8xf32>
    %51 = vector.extract_strided_slice %46 {offsets = [0, 0, 64], sizes = [2, 16, 8], strides = [1, 1, 1]} : vector<2x16x96xf32> to vector<2x16x8xf32>
    "tpu.trace_start"() <{level = 10 : i32, message = "bqd,bkd->bqk"}> : () -> ()
    %cst_31 = arith.constant dense<0.000000e+00> : vector<2x16x16xf32>
    %52 = tpu.matmul %49, %50, %cst_31 {dimension_numbers = #tpu.dot_dimension_numbers<[2], [2], [1], [1], [0, 0, 0, 1, 1, 1], [0], [0]>} : vector<2x16x8xf32>, vector<2x16x8xf32>, vector<2x16x16xf32> -> vector<2x16x16xf32>
    "tpu.trace_stop"() : () -> ()
    %cst_32 = arith.constant dense<0xFF800000> : vector<2x16xf32>
    %53 = vector.multi_reduction <maximumf>, %52, %cst_32 [2] : vector<2x16x16xf32> to vector<2x16xf32>
    %54 = vector.shape_cast %53 : vector<2x16xf32> to vector<2x16x1xf32>
    %55 = vector.broadcast %54 : vector<2x16x1xf32> to vector<2x16x16xf32>
    %56 = arith.subf %52, %55 : vector<2x16x16xf32>
    %57 = math.exp %56 : vector<2x16x16xf32>
    %cst_33 = arith.constant dense<0.000000e+00> : vector<2x16xf32>
    %58 = vector.multi_reduction <add>, %57, %cst_33 [2] : vector<2x16x16xf32> to vector<2x16xf32>
    %59 = vector.shape_cast %58 : vector<2x16xf32> to vector<2x16x1xf32>
    %60 = tpu.reciprocal %59 {approx = true} : vector<2x16x1xf32> -> vector<2x16x1xf32>
    %61 = vector.broadcast %60 : vector<2x16x1xf32> to vector<2x16x16xf32>
    %62 = arith.mulf %57, %61 : vector<2x16x16xf32>
    "tpu.trace_start"() <{level = 10 : i32, message = "bqk,bkd->bqd"}> : () -> ()
    %cst_34 = arith.constant dense<0.000000e+00> : vector<2x16x8xf32>
    %63 = tpu.matmul %62, %51, %cst_34 {dimension_numbers = #tpu.dot_dimension_numbers<[2], [1], [1], [2], [0, 0, 0, 1, 1, 2], [0], [0]>} : vector<2x16x16xf32>, vector<2x16x8xf32>, vector<2x16x8xf32> -> vector<2x16x8xf32>
    "tpu.trace_stop"() : () -> ()
    %c0_35 = arith.constant 0 : index
    %c0_36 = arith.constant 0 : index
    %c0_37 = arith.constant 0 : index
    %64 = vector.load %arg15[%c0_35, %c0_36, %c0_37] : memref<2x16x32xf32, #tpu.memory_space<vmem>>, vector<2x16x8xf32>
    tpu.vector_store %arg15[%c0_35, %c0_36, %c0_37], %63 {strides = array<i32>} : memref<2x16x32xf32, #tpu.memory_space<vmem>>, vector<2x16x8xf32>,
    %65 = vector.extract_strided_slice %46 {offsets = [0, 0, 8], sizes = [2, 16, 8], strides = [1, 1, 1]} : vector<2x16x96xf32> to vector<2x16x8xf32>
    %cst_38 = arith.constant 0.353553385 : f32
    %66 = vector.broadcast %cst_38 : f32 to vector<2x16x8xf32>
    %67 = arith.mulf %65, %66 : vector<2x16x8xf32>
    %68 = vector.extract_strided_slice %46 {offsets = [0, 0, 40], sizes = [2, 16, 8], strides = [1, 1, 1]} : vector<2x16x96xf32> to vector<2x16x8xf32>
    %69 = vector.extract_strided_slice %46 {offsets = [0, 0, 72], sizes = [2, 16, 8], strides = [1, 1, 1]} : vector<2x16x96xf32> to vector<2x16x8xf32>
    "tpu.trace_start"() <{level = 10 : i32, message = "bqd,bkd->bqk"}> : () -> ()
    %cst_39 = arith.constant dense<0.000000e+00> : vector<2x16x16xf32>
    %70 = tpu.matmul %67, %68, %cst_39 {dimension_numbers = #tpu.dot_dimension_numbers<[2], [2], [1], [1], [0, 0, 0, 1, 1, 1], [0], [0]>} : vector<2x16x8xf32>, vector<2x16x8xf32>, vector<2x16x16xf32> -> vector<2x16x16xf32>
    "tpu.trace_stop"() : () -> ()
    %cst_40 = arith.constant dense<0xFF800000> : vector<2x16xf32>
    %71 = vector.multi_reduction <maximumf>, %70, %cst_40 [2] : vector<2x16x16xf32> to vector<2x16xf32>
    %72 = vector.shape_cast %71 : vector<2x16xf32> to vector<2x16x1xf32>
    %73 = vector.broadcast %72 : vector<2x16x1xf32> to vector<2x16x16xf32>
    %74 = arith.subf %70, %73 : vector<2x16x16xf32>
    %75 = math.exp %74 : vector<2x16x16xf32>
    %cst_41 = arith.constant dense<0.000000e+00> : vector<2x16xf32>
    %76 = vector.multi_reduction <add>, %75, %cst_41 [2] : vector<2x16x16xf32> to vector<2x16xf32>
    %77 = vector.shape_cast %76 : vector<2x16xf32> to vector<2x16x1xf32>
    %78 = tpu.reciprocal %77 {approx = true} : vector<2x16x1xf32> -> vector<2x16x1xf32>
    %79 = vector.broadcast %78 : vector<2x16x1xf32> to vector<2x16x16xf32>
    %80 = arith.mulf %75, %79 : vector<2x16x16xf32>
    "tpu.trace_start"() <{level = 10 : i32, message = "bqk,bkd->bqd"}> : () -> ()
    %cst_42 = arith.constant dense<0.000000e+00> : vector<2x16x8xf32>
    %81 = tpu.matmul %80, %69, %cst_42 {dimension_numbers = #tpu.dot_dimension_numbers<[2], [1], [1], [2], [0, 0, 0, 1, 1, 2], [0], [0]>} : vector<2x16x16xf32>, vector<2x16x8xf32>, vector<2x16x8xf32> -> vector<2x16x8xf32>
    "tpu.trace_stop"() : () -> ()
    %c0_43 = arith.constant 0 : index
    %c0_44 = arith.constant 0 : index
    %c8 = arith.constant 8 : index
    %82 = vector.load %arg15[%c0_43, %c0_44, %c8] : memref<2x16x32xf32, #tpu.memory_space<vmem>>, vector<2x16x8xf32>
    tpu.vector_store %arg15[%c0_43, %c0_44, %c8], %81 {strides = array<i32>} : memref<2x16x32xf32, #tpu.memory_space<vmem>>, vector<2x16x8xf32>,
    %83 = vector.extract_strided_slice %46 {offsets = [0, 0, 16], sizes = [2, 16, 8], strides = [1, 1, 1]} : vector<2x16x96xf32> to vector<2x16x8xf32>
    %cst_45 = arith.constant 0.353553385 : f32
    %84 = vector.broadcast %cst_45 : f32 to vector<2x16x8xf32>
    %85 = arith.mulf %83, %84 : vector<2x16x8xf32>
    %86 = vector.extract_strided_slice %46 {offsets = [0, 0, 48], sizes = [2, 16, 8], strides = [1, 1, 1]} : vector<2x16x96xf32> to vector<2x16x8xf32>
    %87 = vector.extract_strided_slice %46 {offsets = [0, 0, 80], sizes = [2, 16, 8], strides = [1, 1, 1]} : vector<2x16x96xf32> to vector<2x16x8xf32>
    "tpu.trace_start"() <{level = 10 : i32, message = "bqd,bkd->bqk"}> : () -> ()
    %cst_46 = arith.constant dense<0.000000e+00> : vector<2x16x16xf32>
    %88 = tpu.matmul %85, %86, %cst_46 {dimension_numbers = #tpu.dot_dimension_numbers<[2], [2], [1], [1], [0, 0, 0, 1, 1, 1], [0], [0]>} : vector<2x16x8xf32>, vector<2x16x8xf32>, vector<2x16x16xf32> -> vector<2x16x16xf32>
    "tpu.trace_stop"() : () -> ()
    %cst_47 = arith.constant dense<0xFF800000> : vector<2x16xf32>
    %89 = vector.multi_reduction <maximumf>, %88, %cst_47 [2] : vector<2x16x16xf32> to vector<2x16xf32>
    %90 = vector.shape_cast %89 : vector<2x16xf32> to vector<2x16x1xf32>
    %91 = vector.broadcast %90 : vector<2x16x1xf32> to vector<2x16x16xf32>
    %92 = arith.subf %88, %91 : vector<2x16x16xf32>
    %93 = math.exp %92 : vector<2x16x16xf32>
    %cst_48 = arith.constant dense<0.000000e+00> : vector<2x16xf32>
    %94 = vector.multi_reduction <add>, %93, %cst_48 [2] : vector<2x16x16xf32> to vector<2x16xf32>
    %95 = vector.shape_cast %94 : vector<2x16xf32> to vector<2x16x1xf32>
    %96 = tpu.reciprocal %95 {approx = true} : vector<2x16x1xf32> -> vector<2x16x1xf32>
    %97 = vector.broadcast %96 : vector<2x16x1xf32> to vector<2x16x16xf32>
    %98 = arith.mulf %93, %97 : vector<2x16x16xf32>
    "tpu.trace_start"() <{level = 10 : i32, message = "bqk,bkd->bqd"}> : () -> ()
    %cst_49 = arith.constant dense<0.000000e+00> : vector<2x16x8xf32>
    %99 = tpu.matmul %98, %87, %cst_49 {dimension_numbers = #tpu.dot_dimension_numbers<[2], [1], [1], [2], [0, 0, 0, 1, 1, 2], [0], [0]>} : vector<2x16x16xf32>, vector<2x16x8xf32>, vector<2x16x8xf32> -> vector<2x16x8xf32>
    "tpu.trace_stop"() : () -> ()
    %c0_50 = arith.constant 0 : index
    %c0_51 = arith.constant 0 : index
    %c16 = arith.constant 16 : index
    %100 = vector.load %arg15[%c0_50, %c0_51, %c16] : memref<2x16x32xf32, #tpu.memory_space<vmem>>, vector<2x16x8xf32>
    tpu.vector_store %arg15[%c0_50, %c0_51, %c16], %99 {strides = array<i32>} : memref<2x16x32xf32, #tpu.memory_space<vmem>>, vector<2x16x8xf32>,
    %101 = vector.extract_strided_slice %46 {offsets = [0, 0, 24], sizes = [2, 16, 8], strides = [1, 1, 1]} : vector<2x16x96xf32> to vector<2x16x8xf32>
    %cst_52 = arith.constant 0.353553385 : f32
    %102 = vector.broadcast %cst_52 : f32 to vector<2x16x8xf32>
    %103 = arith.mulf %101, %102 : vector<2x16x8xf32>
    %104 = vector.extract_strided_slice %46 {offsets = [0, 0, 56], sizes = [2, 16, 8], strides = [1, 1, 1]} : vector<2x16x96xf32> to vector<2x16x8xf32>
    %105 = vector.extract_strided_slice %46 {offsets = [0, 0, 88], sizes = [2, 16, 8], strides = [1, 1, 1]} : vector<2x16x96xf32> to vector<2x16x8xf32>
    "tpu.trace_start"() <{level = 10 : i32, message = "bqd,bkd->bqk"}> : () -> ()
    %cst_53 = arith.constant dense<0.000000e+00> : vector<2x16x16xf32>
    %106 = tpu.matmul %103, %104, %cst_53 {dimension_numbers = #tpu.dot_dimension_numbers<[2], [2], [1], [1], [0, 0, 0, 1, 1, 1], [0], [0]>} : vector<2x16x8xf32>, vector<2x16x8xf32>, vector<2x16x16xf32> -> vector<2x16x16xf32>
    "tpu.trace_stop"() : () -> ()
    %cst_54 = arith.constant dense<0xFF800000> : vector<2x16xf32>
    %107 = vector.multi_reduction <maximumf>, %106, %cst_54 [2] : vector<2x16x16xf32> to vector<2x16xf32>
    %108 = vector.shape_cast %107 : vector<2x16xf32> to vector<2x16x1xf32>
    %109 = vector.broadcast %108 : vector<2x16x1xf32> to vector<2x16x16xf32>
    %110 = arith.subf %106, %109 : vector<2x16x16xf32>
    %111 = math.exp %110 : vector<2x16x16xf32>
    %cst_55 = arith.constant dense<0.000000e+00> : vector<2x16xf32>
    %112 = vector.multi_reduction <add>, %111, %cst_55 [2] : vector<2x16x16xf32> to vector<2x16xf32>
    %113 = vector.shape_cast %112 : vector<2x16xf32> to vector<2x16x1xf32>
    %114 = tpu.reciprocal %113 {approx = true} : vector<2x16x1xf32> -> vector<2x16x1xf32>
    %115 = vector.broadcast %114 : vector<2x16x1xf32> to vector<2x16x16xf32>
    %116 = arith.mulf %111, %115 : vector<2x16x16xf32>
    "tpu.trace_start"() <{level = 10 : i32, message = "bqk,bkd->bqd"}> : () -> ()
    %cst_56 = arith.constant dense<0.000000e+00> : vector<2x16x8xf32>
    %117 = tpu.matmul %116, %105, %cst_56 {dimension_numbers = #tpu.dot_dimension_numbers<[2], [1], [1], [2], [0, 0, 0, 1, 1, 2], [0], [0]>} : vector<2x16x16xf32>, vector<2x16x8xf32>, vector<2x16x8xf32> -> vector<2x16x8xf32>
    "tpu.trace_stop"() : () -> ()
    %c0_57 = arith.constant 0 : index
    %c0_58 = arith.constant 0 : index
    %c24 = arith.constant 24 : index
    %118 = vector.load %arg15[%c0_57, %c0_58, %c24] : memref<2x16x32xf32, #tpu.memory_space<vmem>>, vector<2x16x8xf32>
    tpu.vector_store %arg15[%c0_57, %c0_58, %c24], %117 {strides = array<i32>} : memref<2x16x32xf32, #tpu.memory_space<vmem>>, vector<2x16x8xf32>,
    %c0_59 = arith.constant 0 : index
    %c0_60 = arith.constant 0 : index
    %c0_61 = arith.constant 0 : index
    %119 = vector.load %arg15[%c0_59, %c0_60, %c0_61] : memref<2x16x32xf32, #tpu.memory_space<vmem>>, vector<2x16x32xf32>
    %120 = vector.shape_cast %119 : vector<2x16x32xf32> to vector<32x32xf32>
    %c0_62 = arith.constant 0 : index
    %c0_63 = arith.constant 0 : index
    %c0_64 = arith.constant 0 : index
    %121 = vector.load %arg5[%c0_62, %c0_63, %c0_64] : memref<2x32x32xf32, #tpu.memory_space<vmem>>, vector<1x32x32xf32>
    %122 = vector.shape_cast %121 : vector<1x32x32xf32> to vector<32x32xf32>
    %cst_65 = arith.constant dense<0.000000e+00> : vector<32x32xf32>
    %123 = tpu.matmul %120, %122, %cst_65 {dimension_numbers = #tpu.dot_dimension_numbers<[1], [0], [0], [1], [0, 0, 1, 1], [], []>} : vector<32x32xf32>, vector<32x32xf32>, vector<32x32xf32> -> vector<32x32xf32>
    %c0_66 = arith.constant 0 : index
    %c0_67 = arith.constant 0 : index
    %c0_68 = arith.constant 0 : index
    %124 = vector.load %arg6[%c0_66, %c0_67, %c0_68] : memref<2x1x32xf32, #tpu.memory_space<vmem>>, vector<1x1x32xf32>
    %125 = vector.shape_cast %124 : vector<1x1x32xf32> to vector<1x32xf32>
    %126 = vector.broadcast %125 : vector<1x32xf32> to vector<32x32xf32>
    %127 = arith.addf %123, %126 : vector<32x32xf32>
    %c0_69 = arith.constant 0 : index
    %c0_70 = arith.constant 0 : index
    %c0_71 = arith.constant 0 : index
    %128 = vector.load %arg11[%c0_69, %c0_70, %c0_71] : memref<2x2x32xf32, #tpu.memory_space<vmem>>, vector<1x2x32xf32>
    %129 = vector.shape_cast %128 : vector<1x2x32xf32> to vector<2x32xf32>
    %130 = arith.addf %38, %127 : vector<32x32xf32>
    %131 = vector.extract_strided_slice %129 {offsets = [0, 0], sizes = [1, 32], strides = [1, 1]} : vector<2x32xf32> to vector<1x32xf32>
    %132 = vector.extract_strided_slice %129 {offsets = [1, 0], sizes = [1, 32], strides = [1, 1]} : vector<2x32xf32> to vector<1x32xf32>
    %cst_72 = arith.constant dense<0.000000e+00> : vector<32xf32>
    %133 = vector.multi_reduction <add>, %130, %cst_72 [1] : vector<32x32xf32> to vector<32xf32>
    %134 = vector.shape_cast %133 : vector<32xf32> to vector<32x1xf32>
    %cst_73 = arith.constant 3.200000e+01 : f32
    %135 = vector.broadcast %cst_73 : f32 to vector<32x1xf32>
    %136 = arith.divf %134, %135 : vector<32x1xf32>
    %137 = vector.broadcast %136 : vector<32x1xf32> to vector<32x32xf32>
    %138 = arith.subf %130, %137 : vector<32x32xf32>
    %139 = arith.mulf %138, %138 : vector<32x32xf32>
    %cst_74 = arith.constant dense<0.000000e+00> : vector<32xf32>
    %140 = vector.multi_reduction <add>, %139, %cst_74 [1] : vector<32x32xf32> to vector<32xf32>
    %141 = vector.shape_cast %140 : vector<32xf32> to vector<32x1xf32>
    %cst_75 = arith.constant 3.200000e+01 : f32
    %142 = vector.broadcast %cst_75 : f32 to vector<32x1xf32>
    %143 = arith.divf %141, %142 : vector<32x1xf32>
    %144 = vector.broadcast %136 : vector<32x1xf32> to vector<32x32xf32>
    %145 = arith.subf %130, %144 : vector<32x32xf32>
    %cst_76 = arith.constant 9.99999974E-6 : f32
    %146 = vector.broadcast %cst_76 : f32 to vector<32x1xf32>
    %147 = arith.addf %143, %146 : vector<32x1xf32>
    %148 = math.rsqrt %147 : vector<32x1xf32>
    %149 = vector.broadcast %148 : vector<32x1xf32> to vector<32x32xf32>
    %150 = arith.mulf %145, %149 : vector<32x32xf32>
    %151 = vector.broadcast %131 : vector<1x32xf32> to vector<32x32xf32>
    %152 = arith.mulf %150, %151 : vector<32x32xf32>
    %153 = vector.broadcast %132 : vector<1x32xf32> to vector<32x32xf32>
    %154 = arith.addf %152, %153 : vector<32x32xf32>
    %c0_77 = arith.constant 0 : index
    %c0_78 = arith.constant 0 : index
    %c0_79 = arith.constant 0 : index
    %155 = vector.load %arg7[%c0_77, %c0_78, %c0_79] : memref<2x32x64xf32, #tpu.memory_space<vmem>>, vector<1x32x64xf32>
    %156 = vector.shape_cast %155 : vector<1x32x64xf32> to vector<32x64xf32>
    %cst_80 = arith.constant dense<0.000000e+00> : vector<32x64xf32>
    %157 = tpu.matmul %154, %156, %cst_80 {dimension_numbers = #tpu.dot_dimension_numbers<[1], [0], [0], [1], [0, 0, 1, 1], [], []>} : vector<32x32xf32>, vector<32x64xf32>, vector<32x64xf32> -> vector<32x64xf32>
    %c0_81 = arith.constant 0 : index
    %c0_82 = arith.constant 0 : index
    %c0_83 = arith.constant 0 : index
    %158 = vector.load %arg8[%c0_81, %c0_82, %c0_83] : memref<2x1x64xf32, #tpu.memory_space<vmem>>, vector<1x1x64xf32>
    %159 = vector.shape_cast %158 : vector<1x1x64xf32> to vector<1x64xf32>
    %160 = vector.broadcast %159 : vector<1x64xf32> to vector<32x64xf32>
    %161 = arith.addf %157, %160 : vector<32x64xf32>
    %cst_84 = arith.constant 5.000000e-01 : f32
    %162 = vector.broadcast %cst_84 : f32 to vector<32x64xf32>
    %163 = arith.mulf %162, %161 : vector<32x64xf32>
    %cst_85 = arith.constant 4.471500e-02 : f32
    %164 = vector.broadcast %cst_85 : f32 to vector<32x64xf32>
    %165 = arith.mulf %164, %161 : vector<32x64xf32>
    %166 = arith.mulf %165, %161 : vector<32x64xf32>
    %167 = arith.mulf %166, %161 : vector<32x64xf32>
    %168 = arith.addf %161, %167 : vector<32x64xf32>
    %cst_86 = arith.constant 0.797884583 : f32
    %169 = vector.broadcast %cst_86 : f32 to vector<32x64xf32>
    %170 = arith.mulf %169, %168 : vector<32x64xf32>
    %171 = math.tanh %170 : vector<32x64xf32>
    %cst_87 = arith.constant 1.000000e+00 : f32
    %172 = vector.broadcast %cst_87 : f32 to vector<32x64xf32>
    %173 = arith.addf %172, %171 : vector<32x64xf32>
    %174 = arith.mulf %163, %173 : vector<32x64xf32>
    %c0_88 = arith.constant 0 : index
    %c0_89 = arith.constant 0 : index
    %c0_90 = arith.constant 0 : index
    %175 = vector.load %arg9[%c0_88, %c0_89, %c0_90] : memref<2x64x32xf32, #tpu.memory_space<vmem>>, vector<1x64x32xf32>
    %176 = vector.shape_cast %175 : vector<1x64x32xf32> to vector<64x32xf32>
    %cst_91 = arith.constant dense<0.000000e+00> : vector<32x32xf32>
    %177 = tpu.matmul %174, %176, %cst_91 {dimension_numbers = #tpu.dot_dimension_numbers<[1], [0], [0], [1], [0, 0, 1, 1], [], []>} : vector<32x64xf32>, vector<64x32xf32>, vector<32x32xf32> -> vector<32x32xf32>
    %c0_92 = arith.constant 0 : index
    %c0_93 = arith.constant 0 : index
    %c0_94 = arith.constant 0 : index
    %178 = vector.load %arg10[%c0_92, %c0_93, %c0_94] : memref<2x1x32xf32, #tpu.memory_space<vmem>>, vector<1x1x32xf32>
    %179 = vector.shape_cast %178 : vector<1x1x32xf32> to vector<1x32xf32>
    %180 = vector.broadcast %179 : vector<1x32xf32> to vector<32x32xf32>
    %181 = arith.addf %177, %180 : vector<32x32xf32>
    %c0_95 = arith.constant 0 : index
    %c0_96 = arith.constant 0 : index
    %c0_97 = arith.constant 0 : index
    %182 = vector.load %arg12[%c0_95, %c0_96, %c0_97] : memref<2x2x32xf32, #tpu.memory_space<vmem>>, vector<1x2x32xf32>
    %183 = vector.shape_cast %182 : vector<1x2x32xf32> to vector<2x32xf32>
    %184 = arith.addf %154, %181 : vector<32x32xf32>
    %185 = vector.extract_strided_slice %183 {offsets = [0, 0], sizes = [1, 32], strides = [1, 1]} : vector<2x32xf32> to vector<1x32xf32>
    %186 = vector.extract_strided_slice %183 {offsets = [1, 0], sizes = [1, 32], strides = [1, 1]} : vector<2x32xf32> to vector<1x32xf32>
    %cst_98 = arith.constant dense<0.000000e+00> : vector<32xf32>
    %187 = vector.multi_reduction <add>, %184, %cst_98 [1] : vector<32x32xf32> to vector<32xf32>
    %188 = vector.shape_cast %187 : vector<32xf32> to vector<32x1xf32>
    %cst_99 = arith.constant 3.200000e+01 : f32
    %189 = vector.broadcast %cst_99 : f32 to vector<32x1xf32>
    %190 = arith.divf %188, %189 : vector<32x1xf32>
    %191 = vector.broadcast %190 : vector<32x1xf32> to vector<32x32xf32>
    %192 = arith.subf %184, %191 : vector<32x32xf32>
    %193 = arith.mulf %192, %192 : vector<32x32xf32>
    %cst_100 = arith.constant dense<0.000000e+00> : vector<32xf32>
    %194 = vector.multi_reduction <add>, %193, %cst_100 [1] : vector<32x32xf32> to vector<32xf32>
    %195 = vector.shape_cast %194 : vector<32xf32> to vector<32x1xf32>
    %cst_101 = arith.constant 3.200000e+01 : f32
    %196 = vector.broadcast %cst_101 : f32 to vector<32x1xf32>
    %197 = arith.divf %195, %196 : vector<32x1xf32>
    %198 = vector.broadcast %190 : vector<32x1xf32> to vector<32x32xf32>
    %199 = arith.subf %184, %198 : vector<32x32xf32>
    %cst_102 = arith.constant 9.99999974E-6 : f32
    %200 = vector.broadcast %cst_102 : f32 to vector<32x1xf32>
    %201 = arith.addf %197, %200 : vector<32x1xf32>
    %202 = math.rsqrt %201 : vector<32x1xf32>
    %203 = vector.broadcast %202 : vector<32x1xf32> to vector<32x32xf32>
    %204 = arith.mulf %199, %203 : vector<32x32xf32>
    %205 = vector.broadcast %185 : vector<1x32xf32> to vector<32x32xf32>
    %206 = arith.mulf %204, %205 : vector<32x32xf32>
    %207 = vector.broadcast %186 : vector<1x32xf32> to vector<32x32xf32>
    %208 = arith.addf %206, %207 : vector<32x32xf32>
    %209 = vector.shape_cast %208 : vector<32x32xf32> to vector<2x16x32xf32>
    %c0_103 = arith.constant 0 : index
    %c0_104 = arith.constant 0 : index
    %c0_105 = arith.constant 0 : index
    %210 = vector.load %arg14[%c0_103, %c0_104, %c0_105] : memref<2x16x32xf32, #tpu.memory_space<vmem>>, vector<2x16x32xf32>
    tpu.vector_store %arg14[%c0_103, %c0_104, %c0_105], %209 {strides = array<i32>} : memref<2x16x32xf32, #tpu.memory_space<vmem>>, vector<2x16x32xf32>,
    %c1_106 = arith.constant 1 : index
    %c0_107 = arith.constant 0 : index
    %c0_108 = arith.constant 0 : index
    %211 = vector.load %arg2[%c1_106, %c0_107, %c0_108] : memref<2x8x32xf32, #tpu.memory_space<vmem>>, vector<1x8x32xf32>
    %212 = vector.shape_cast %211 : vector<1x8x32xf32> to vector<8x32xf32>
    %213 = vector.shape_cast %212 : vector<8x32xf32> to vector<1x8x32xf32>
    %214 = vector.shape_cast %213 : vector<1x8x32xf32> to vector<1x8x32xf32>
    %215 = vector.broadcast %214 : vector<1x8x32xf32> to vector<2x8x32xf32>
    %c0_109 = arith.constant 0 : index
    %c1_110 = arith.constant 1 : index
    %c0_111 = arith.constant 0 : index
    %216 = vector.load %arg14[%c0_109, %c1_110, %c0_111] : memref<2x16x32xf32, #tpu.memory_space<vmem>>, vector<2x8x32xf32>
    tpu.vector_store %arg14[%c0_109, %c1_110, %c0_111], %215 {strides = array<i32>} : memref<2x16x32xf32, #tpu.memory_space<vmem>>, vector<2x8x32xf32>,
    %c0_112 = arith.constant 0 : index
    %c0_113 = arith.constant 0 : index
    %c0_114 = arith.constant 0 : index
    %217 = vector.load %arg14[%c0_112, %c0_113, %c0_114] : memref<2x16x32xf32, #tpu.memory_space<vmem>>, vector<2x16x32xf32>
    %218 = vector.shape_cast %217 : vector<2x16x32xf32> to vector<32x32xf32>
    %c1_115 = arith.constant 1 : index
    %c0_116 = arith.constant 0 : index
    %c0_117 = arith.constant 0 : index
    %219 = vector.load %arg3[%c1_115, %c0_116, %c0_117] : memref<2x32x96xf32, #tpu.memory_space<vmem>>, vector<1x32x96xf32>
    %220 = vector.shape_cast %219 : vector<1x32x96xf32> to vector<32x96xf32>
    %cst_118 = arith.constant dense<0.000000e+00> : vector<32x96xf32>
    %221 = tpu.matmul %218, %220, %cst_118 {dimension_numbers = #tpu.dot_dimension_numbers<[1], [0], [0], [1], [0, 0, 1, 1], [], []>} : vector<32x32xf32>, vector<32x96xf32>, vector<32x96xf32> -> vector<32x96xf32>
    %c1_119 = arith.constant 1 : index
    %c0_120 = arith.constant 0 : index
    %c0_121 = arith.constant 0 : index
    %222 = vector.load %arg4[%c1_119, %c0_120, %c0_121] : memref<2x1x96xf32, #tpu.memory_space<vmem>>, vector<1x1x96xf32>
    %223 = vector.shape_cast %222 : vector<1x1x96xf32> to vector<1x96xf32>
    %224 = vector.broadcast %223 : vector<1x96xf32> to vector<32x96xf32>
    %225 = arith.addf %221, %224 : vector<32x96xf32>
    %226 = vector.shape_cast %225 : vector<32x96xf32> to vector<2x16x96xf32>
    %227 = vector.extract_strided_slice %226 {offsets = [0, 0, 0], sizes = [2, 16, 8], strides = [1, 1, 1]} : vector<2x16x96xf32> to vector<2x16x8xf32>
    %cst_122 = arith.constant 0.353553385 : f32
    %228 = vector.broadcast %cst_122 : f32 to vector<2x16x8xf32>
    %229 = arith.mulf %227, %228 : vector<2x16x8xf32>
    %230 = vector.extract_strided_slice %226 {offsets = [0, 0, 32], sizes = [2, 16, 8], strides = [1, 1, 1]} : vector<2x16x96xf32> to vector<2x16x8xf32>
    %231 = vector.extract_strided_slice %226 {offsets = [0, 0, 64], sizes = [2, 16, 8], strides = [1, 1, 1]} : vector<2x16x96xf32> to vector<2x16x8xf32>
    "tpu.trace_start"() <{level = 10 : i32, message = "bqd,bkd->bqk"}> : () -> ()
    %cst_123 = arith.constant dense<0.000000e+00> : vector<2x16x16xf32>
    %232 = tpu.matmul %229, %230, %cst_123 {dimension_numbers = #tpu.dot_dimension_numbers<[2], [2], [1], [1], [0, 0, 0, 1, 1, 1], [0], [0]>} : vector<2x16x8xf32>, vector<2x16x8xf32>, vector<2x16x16xf32> -> vector<2x16x16xf32>
    "tpu.trace_stop"() : () -> ()
    %cst_124 = arith.constant dense<0xFF800000> : vector<2x16xf32>
    %233 = vector.multi_reduction <maximumf>, %232, %cst_124 [2] : vector<2x16x16xf32> to vector<2x16xf32>
    %234 = vector.shape_cast %233 : vector<2x16xf32> to vector<2x16x1xf32>
    %235 = vector.broadcast %234 : vector<2x16x1xf32> to vector<2x16x16xf32>
    %236 = arith.subf %232, %235 : vector<2x16x16xf32>
    %237 = math.exp %236 : vector<2x16x16xf32>
    %cst_125 = arith.constant dense<0.000000e+00> : vector<2x16xf32>
    %238 = vector.multi_reduction <add>, %237, %cst_125 [2] : vector<2x16x16xf32> to vector<2x16xf32>
    %239 = vector.shape_cast %238 : vector<2x16xf32> to vector<2x16x1xf32>
    %240 = tpu.reciprocal %239 {approx = true} : vector<2x16x1xf32> -> vector<2x16x1xf32>
    %241 = vector.broadcast %240 : vector<2x16x1xf32> to vector<2x16x16xf32>
    %242 = arith.mulf %237, %241 : vector<2x16x16xf32>
    "tpu.trace_start"() <{level = 10 : i32, message = "bqk,bkd->bqd"}> : () -> ()
    %cst_126 = arith.constant dense<0.000000e+00> : vector<2x16x8xf32>
    %243 = tpu.matmul %242, %231, %cst_126 {dimension_numbers = #tpu.dot_dimension_numbers<[2], [1], [1], [2], [0, 0, 0, 1, 1, 2], [0], [0]>} : vector<2x16x16xf32>, vector<2x16x8xf32>, vector<2x16x8xf32> -> vector<2x16x8xf32>
    "tpu.trace_stop"() : () -> ()
    %c0_127 = arith.constant 0 : index
    %c0_128 = arith.constant 0 : index
    %c0_129 = arith.constant 0 : index
    %244 = vector.load %arg15[%c0_127, %c0_128, %c0_129] : memref<2x16x32xf32, #tpu.memory_space<vmem>>, vector<2x16x8xf32>
    tpu.vector_store %arg15[%c0_127, %c0_128, %c0_129], %243 {strides = array<i32>} : memref<2x16x32xf32, #tpu.memory_space<vmem>>, vector<2x16x8xf32>,
    %245 = vector.extract_strided_slice %226 {offsets = [0, 0, 8], sizes = [2, 16, 8], strides = [1, 1, 1]} : vector<2x16x96xf32> to vector<2x16x8xf32>
    %cst_130 = arith.constant 0.353553385 : f32
    %246 = vector.broadcast %cst_130 : f32 to vector<2x16x8xf32>
    %247 = arith.mulf %245, %246 : vector<2x16x8xf32>
    %248 = vector.extract_strided_slice %226 {offsets = [0, 0, 40], sizes = [2, 16, 8], strides = [1, 1, 1]} : vector<2x16x96xf32> to vector<2x16x8xf32>
    %249 = vector.extract_strided_slice %226 {offsets = [0, 0, 72], sizes = [2, 16, 8], strides = [1, 1, 1]} : vector<2x16x96xf32> to vector<2x16x8xf32>
    "tpu.trace_start"() <{level = 10 : i32, message = "bqd,bkd->bqk"}> : () -> ()
    %cst_131 = arith.constant dense<0.000000e+00> : vector<2x16x16xf32>
    %250 = tpu.matmul %247, %248, %cst_131 {dimension_numbers = #tpu.dot_dimension_numbers<[2], [2], [1], [1], [0, 0, 0, 1, 1, 1], [0], [0]>} : vector<2x16x8xf32>, vector<2x16x8xf32>, vector<2x16x16xf32> -> vector<2x16x16xf32>
    "tpu.trace_stop"() : () -> ()
    %cst_132 = arith.constant dense<0xFF800000> : vector<2x16xf32>
    %251 = vector.multi_reduction <maximumf>, %250, %cst_132 [2] : vector<2x16x16xf32> to vector<2x16xf32>
    %252 = vector.shape_cast %251 : vector<2x16xf32> to vector<2x16x1xf32>
    %253 = vector.broadcast %252 : vector<2x16x1xf32> to vector<2x16x16xf32>
    %254 = arith.subf %250, %253 : vector<2x16x16xf32>
    %255 = math.exp %254 : vector<2x16x16xf32>
    %cst_133 = arith.constant dense<0.000000e+00> : vector<2x16xf32>
    %256 = vector.multi_reduction <add>, %255, %cst_133 [2] : vector<2x16x16xf32> to vector<2x16xf32>
    %257 = vector.shape_cast %256 : vector<2x16xf32> to vector<2x16x1xf32>
    %258 = tpu.reciprocal %257 {approx = true} : vector<2x16x1xf32> -> vector<2x16x1xf32>
    %259 = vector.broadcast %258 : vector<2x16x1xf32> to vector<2x16x16xf32>
    %260 = arith.mulf %255, %259 : vector<2x16x16xf32>
    "tpu.trace_start"() <{level = 10 : i32, message = "bqk,bkd->bqd"}> : () -> ()
    %cst_134 = arith.constant dense<0.000000e+00> : vector<2x16x8xf32>
    %261 = tpu.matmul %260, %249, %cst_134 {dimension_numbers = #tpu.dot_dimension_numbers<[2], [1], [1], [2], [0, 0, 0, 1, 1, 2], [0], [0]>} : vector<2x16x16xf32>, vector<2x16x8xf32>, vector<2x16x8xf32> -> vector<2x16x8xf32>
    "tpu.trace_stop"() : () -> ()
    %c0_135 = arith.constant 0 : index
    %c0_136 = arith.constant 0 : index
    %c8_137 = arith.constant 8 : index
    %262 = vector.load %arg15[%c0_135, %c0_136, %c8_137] : memref<2x16x32xf32, #tpu.memory_space<vmem>>, vector<2x16x8xf32>
    tpu.vector_store %arg15[%c0_135, %c0_136, %c8_137], %261 {strides = array<i32>} : memref<2x16x32xf32, #tpu.memory_space<vmem>>, vector<2x16x8xf32>,
    %263 = vector.extract_strided_slice %226 {offsets = [0, 0, 16], sizes = [2, 16, 8], strides = [1, 1, 1]} : vector<2x16x96xf32> to vector<2x16x8xf32>
    %cst_138 = arith.constant 0.353553385 : f32
    %264 = vector.broadcast %cst_138 : f32 to vector<2x16x8xf32>
    %265 = arith.mulf %263, %264 : vector<2x16x8xf32>
    %266 = vector.extract_strided_slice %226 {offsets = [0, 0, 48], sizes = [2, 16, 8], strides = [1, 1, 1]} : vector<2x16x96xf32> to vector<2x16x8xf32>
    %267 = vector.extract_strided_slice %226 {offsets = [0, 0, 80], sizes = [2, 16, 8], strides = [1, 1, 1]} : vector<2x16x96xf32> to vector<2x16x8xf32>
    "tpu.trace_start"() <{level = 10 : i32, message = "bqd,bkd->bqk"}> : () -> ()
    %cst_139 = arith.constant dense<0.000000e+00> : vector<2x16x16xf32>
    %268 = tpu.matmul %265, %266, %cst_139 {dimension_numbers = #tpu.dot_dimension_numbers<[2], [2], [1], [1], [0, 0, 0, 1, 1, 1], [0], [0]>} : vector<2x16x8xf32>, vector<2x16x8xf32>, vector<2x16x16xf32> -> vector<2x16x16xf32>
    "tpu.trace_stop"() : () -> ()
    %cst_140 = arith.constant dense<0xFF800000> : vector<2x16xf32>
    %269 = vector.multi_reduction <maximumf>, %268, %cst_140 [2] : vector<2x16x16xf32> to vector<2x16xf32>
    %270 = vector.shape_cast %269 : vector<2x16xf32> to vector<2x16x1xf32>
    %271 = vector.broadcast %270 : vector<2x16x1xf32> to vector<2x16x16xf32>
    %272 = arith.subf %268, %271 : vector<2x16x16xf32>
    %273 = math.exp %272 : vector<2x16x16xf32>
    %cst_141 = arith.constant dense<0.000000e+00> : vector<2x16xf32>
    %274 = vector.multi_reduction <add>, %273, %cst_141 [2] : vector<2x16x16xf32> to vector<2x16xf32>
    %275 = vector.shape_cast %274 : vector<2x16xf32> to vector<2x16x1xf32>
    %276 = tpu.reciprocal %275 {approx = true} : vector<2x16x1xf32> -> vector<2x16x1xf32>
    %277 = vector.broadcast %276 : vector<2x16x1xf32> to vector<2x16x16xf32>
    %278 = arith.mulf %273, %277 : vector<2x16x16xf32>
    "tpu.trace_start"() <{level = 10 : i32, message = "bqk,bkd->bqd"}> : () -> ()
    %cst_142 = arith.constant dense<0.000000e+00> : vector<2x16x8xf32>
    %279 = tpu.matmul %278, %267, %cst_142 {dimension_numbers = #tpu.dot_dimension_numbers<[2], [1], [1], [2], [0, 0, 0, 1, 1, 2], [0], [0]>} : vector<2x16x16xf32>, vector<2x16x8xf32>, vector<2x16x8xf32> -> vector<2x16x8xf32>
    "tpu.trace_stop"() : () -> ()
    %c0_143 = arith.constant 0 : index
    %c0_144 = arith.constant 0 : index
    %c16_145 = arith.constant 16 : index
    %280 = vector.load %arg15[%c0_143, %c0_144, %c16_145] : memref<2x16x32xf32, #tpu.memory_space<vmem>>, vector<2x16x8xf32>
    tpu.vector_store %arg15[%c0_143, %c0_144, %c16_145], %279 {strides = array<i32>} : memref<2x16x32xf32, #tpu.memory_space<vmem>>, vector<2x16x8xf32>,
    %281 = vector.extract_strided_slice %226 {offsets = [0, 0, 24], sizes = [2, 16, 8], strides = [1, 1, 1]} : vector<2x16x96xf32> to vector<2x16x8xf32>
    %cst_146 = arith.constant 0.353553385 : f32
    %282 = vector.broadcast %cst_146 : f32 to vector<2x16x8xf32>
    %283 = arith.mulf %281, %282 : vector<2x16x8xf32>
    %284 = vector.extract_strided_slice %226 {offsets = [0, 0, 56], sizes = [2, 16, 8], strides = [1, 1, 1]} : vector<2x16x96xf32> to vector<2x16x8xf32>
    %285 = vector.extract_strided_slice %226 {offsets = [0, 0, 88], sizes = [2, 16, 8], strides = [1, 1, 1]} : vector<2x16x96xf32> to vector<2x16x8xf32>
    "tpu.trace_start"() <{level = 10 : i32, message = "bqd,bkd->bqk"}> : () -> ()
    %cst_147 = arith.constant dense<0.000000e+00> : vector<2x16x16xf32>
    %286 = tpu.matmul %283, %284, %cst_147 {dimension_numbers = #tpu.dot_dimension_numbers<[2], [2], [1], [1], [0, 0, 0, 1, 1, 1], [0], [0]>} : vector<2x16x8xf32>, vector<2x16x8xf32>, vector<2x16x16xf32> -> vector<2x16x16xf32>
    "tpu.trace_stop"() : () -> ()
    %cst_148 = arith.constant dense<0xFF800000> : vector<2x16xf32>
    %287 = vector.multi_reduction <maximumf>, %286, %cst_148 [2] : vector<2x16x16xf32> to vector<2x16xf32>
    %288 = vector.shape_cast %287 : vector<2x16xf32> to vector<2x16x1xf32>
    %289 = vector.broadcast %288 : vector<2x16x1xf32> to vector<2x16x16xf32>
    %290 = arith.subf %286, %289 : vector<2x16x16xf32>
    %291 = math.exp %290 : vector<2x16x16xf32>
    %cst_149 = arith.constant dense<0.000000e+00> : vector<2x16xf32>
    %292 = vector.multi_reduction <add>, %291, %cst_149 [2] : vector<2x16x16xf32> to vector<2x16xf32>
    %293 = vector.shape_cast %292 : vector<2x16xf32> to vector<2x16x1xf32>
    %294 = tpu.reciprocal %293 {approx = true} : vector<2x16x1xf32> -> vector<2x16x1xf32>
    %295 = vector.broadcast %294 : vector<2x16x1xf32> to vector<2x16x16xf32>
    %296 = arith.mulf %291, %295 : vector<2x16x16xf32>
    "tpu.trace_start"() <{level = 10 : i32, message = "bqk,bkd->bqd"}> : () -> ()
    %cst_150 = arith.constant dense<0.000000e+00> : vector<2x16x8xf32>
    %297 = tpu.matmul %296, %285, %cst_150 {dimension_numbers = #tpu.dot_dimension_numbers<[2], [1], [1], [2], [0, 0, 0, 1, 1, 2], [0], [0]>} : vector<2x16x16xf32>, vector<2x16x8xf32>, vector<2x16x8xf32> -> vector<2x16x8xf32>
    "tpu.trace_stop"() : () -> ()
    %c0_151 = arith.constant 0 : index
    %c0_152 = arith.constant 0 : index
    %c24_153 = arith.constant 24 : index
    %298 = vector.load %arg15[%c0_151, %c0_152, %c24_153] : memref<2x16x32xf32, #tpu.memory_space<vmem>>, vector<2x16x8xf32>
    tpu.vector_store %arg15[%c0_151, %c0_152, %c24_153], %297 {strides = array<i32>} : memref<2x16x32xf32, #tpu.memory_space<vmem>>, vector<2x16x8xf32>,
    %c0_154 = arith.constant 0 : index
    %c0_155 = arith.constant 0 : index
    %c0_156 = arith.constant 0 : index
    %299 = vector.load %arg15[%c0_154, %c0_155, %c0_156] : memref<2x16x32xf32, #tpu.memory_space<vmem>>, vector<2x16x32xf32>
    %300 = vector.shape_cast %299 : vector<2x16x32xf32> to vector<32x32xf32>
    %c1_157 = arith.constant 1 : index
    %c0_158 = arith.constant 0 : index
    %c0_159 = arith.constant 0 : index
    %301 = vector.load %arg5[%c1_157, %c0_158, %c0_159] : memref<2x32x32xf32, #tpu.memory_space<vmem>>, vector<1x32x32xf32>
    %302 = vector.shape_cast %301 : vector<1x32x32xf32> to vector<32x32xf32>
    %cst_160 = arith.constant dense<0.000000e+00> : vector<32x32xf32>
    %303 = tpu.matmul %300, %302, %cst_160 {dimension_numbers = #tpu.dot_dimension_numbers<[1], [0], [0], [1], [0, 0, 1, 1], [], []>} : vector<32x32xf32>, vector<32x32xf32>, vector<32x32xf32> -> vector<32x32xf32>
    %c1_161 = arith.constant 1 : index
    %c0_162 = arith.constant 0 : index
    %c0_163 = arith.constant 0 : index
    %304 = vector.load %arg6[%c1_161, %c0_162, %c0_163] : memref<2x1x32xf32, #tpu.memory_space<vmem>>, vector<1x1x32xf32>
    %305 = vector.shape_cast %304 : vector<1x1x32xf32> to vector<1x32xf32>
    %306 = vector.broadcast %305 : vector<1x32xf32> to vector<32x32xf32>
    %307 = arith.addf %303, %306 : vector<32x32xf32>
    %c1_164 = arith.constant 1 : index
    %c0_165 = arith.constant 0 : index
    %c0_166 = arith.constant 0 : index
    %308 = vector.load %arg11[%c1_164, %c0_165, %c0_166] : memref<2x2x32xf32, #tpu.memory_space<vmem>>, vector<1x2x32xf32>
    %309 = vector.shape_cast %308 : vector<1x2x32xf32> to vector<2x32xf32>
    %310 = arith.addf %218, %307 : vector<32x32xf32>
    %311 = vector.extract_strided_slice %309 {offsets = [0, 0], sizes = [1, 32], strides = [1, 1]} : vector<2x32xf32> to vector<1x32xf32>
    %312 = vector.extract_strided_slice %309 {offsets = [1, 0], sizes = [1, 32], strides = [1, 1]} : vector<2x32xf32> to vector<1x32xf32>
    %cst_167 = arith.constant dense<0.000000e+00> : vector<32xf32>
    %313 = vector.multi_reduction <add>, %310, %cst_167 [1] : vector<32x32xf32> to vector<32xf32>
    %314 = vector.shape_cast %313 : vector<32xf32> to vector<32x1xf32>
    %cst_168 = arith.constant 3.200000e+01 : f32
    %315 = vector.broadcast %cst_168 : f32 to vector<32x1xf32>
    %316 = arith.divf %314, %315 : vector<32x1xf32>
    %317 = vector.broadcast %316 : vector<32x1xf32> to vector<32x32xf32>
    %318 = arith.subf %310, %317 : vector<32x32xf32>
    %319 = arith.mulf %318, %318 : vector<32x32xf32>
    %cst_169 = arith.constant dense<0.000000e+00> : vector<32xf32>
    %320 = vector.multi_reduction <add>, %319, %cst_169 [1] : vector<32x32xf32> to vector<32xf32>
    %321 = vector.shape_cast %320 : vector<32xf32> to vector<32x1xf32>
    %cst_170 = arith.constant 3.200000e+01 : f32
    %322 = vector.broadcast %cst_170 : f32 to vector<32x1xf32>
    %323 = arith.divf %321, %322 : vector<32x1xf32>
    %324 = vector.broadcast %316 : vector<32x1xf32> to vector<32x32xf32>
    %325 = arith.subf %310, %324 : vector<32x32xf32>
    %cst_171 = arith.constant 9.99999974E-6 : f32
    %326 = vector.broadcast %cst_171 : f32 to vector<32x1xf32>
    %327 = arith.addf %323, %326 : vector<32x1xf32>
    %328 = math.rsqrt %327 : vector<32x1xf32>
    %329 = vector.broadcast %328 : vector<32x1xf32> to vector<32x32xf32>
    %330 = arith.mulf %325, %329 : vector<32x32xf32>
    %331 = vector.broadcast %311 : vector<1x32xf32> to vector<32x32xf32>
    %332 = arith.mulf %330, %331 : vector<32x32xf32>
    %333 = vector.broadcast %312 : vector<1x32xf32> to vector<32x32xf32>
    %334 = arith.addf %332, %333 : vector<32x32xf32>
    %c1_172 = arith.constant 1 : index
    %c0_173 = arith.constant 0 : index
    %c0_174 = arith.constant 0 : index
    %335 = vector.load %arg7[%c1_172, %c0_173, %c0_174] : memref<2x32x64xf32, #tpu.memory_space<vmem>>, vector<1x32x64xf32>
    %336 = vector.shape_cast %335 : vector<1x32x64xf32> to vector<32x64xf32>
    %cst_175 = arith.constant dense<0.000000e+00> : vector<32x64xf32>
    %337 = tpu.matmul %334, %336, %cst_175 {dimension_numbers = #tpu.dot_dimension_numbers<[1], [0], [0], [1], [0, 0, 1, 1], [], []>} : vector<32x32xf32>, vector<32x64xf32>, vector<32x64xf32> -> vector<32x64xf32>
    %c1_176 = arith.constant 1 : index
    %c0_177 = arith.constant 0 : index
    %c0_178 = arith.constant 0 : index
    %338 = vector.load %arg8[%c1_176, %c0_177, %c0_178] : memref<2x1x64xf32, #tpu.memory_space<vmem>>, vector<1x1x64xf32>
    %339 = vector.shape_cast %338 : vector<1x1x64xf32> to vector<1x64xf32>
    %340 = vector.broadcast %339 : vector<1x64xf32> to vector<32x64xf32>
    %341 = arith.addf %337, %340 : vector<32x64xf32>
    %cst_179 = arith.constant 5.000000e-01 : f32
    %342 = vector.broadcast %cst_179 : f32 to vector<32x64xf32>
    %343 = arith.mulf %342, %341 : vector<32x64xf32>
    %cst_180 = arith.constant 4.471500e-02 : f32
    %344 = vector.broadcast %cst_180 : f32 to vector<32x64xf32>
    %345 = arith.mulf %344, %341 : vector<32x64xf32>
    %346 = arith.mulf %345, %341 : vector<32x64xf32>
    %347 = arith.mulf %346, %341 : vector<32x64xf32>
    %348 = arith.addf %341, %347 : vector<32x64xf32>
    %cst_181 = arith.constant 0.797884583 : f32
    %349 = vector.broadcast %cst_181 : f32 to vector<32x64xf32>
    %350 = arith.mulf %349, %348 : vector<32x64xf32>
    %351 = math.tanh %350 : vector<32x64xf32>
    %cst_182 = arith.constant 1.000000e+00 : f32
    %352 = vector.broadcast %cst_182 : f32 to vector<32x64xf32>
    %353 = arith.addf %352, %351 : vector<32x64xf32>
    %354 = arith.mulf %343, %353 : vector<32x64xf32>
    %c1_183 = arith.constant 1 : index
    %c0_184 = arith.constant 0 : index
    %c0_185 = arith.constant 0 : index
    %355 = vector.load %arg9[%c1_183, %c0_184, %c0_185] : memref<2x64x32xf32, #tpu.memory_space<vmem>>, vector<1x64x32xf32>
    %356 = vector.shape_cast %355 : vector<1x64x32xf32> to vector<64x32xf32>
    %cst_186 = arith.constant dense<0.000000e+00> : vector<32x32xf32>
    %357 = tpu.matmul %354, %356, %cst_186 {dimension_numbers = #tpu.dot_dimension_numbers<[1], [0], [0], [1], [0, 0, 1, 1], [], []>} : vector<32x64xf32>, vector<64x32xf32>, vector<32x32xf32> -> vector<32x32xf32>
    %c1_187 = arith.constant 1 : index
    %c0_188 = arith.constant 0 : index
    %c0_189 = arith.constant 0 : index
    %358 = vector.load %arg10[%c1_187, %c0_188, %c0_189] : memref<2x1x32xf32, #tpu.memory_space<vmem>>, vector<1x1x32xf32>
    %359 = vector.shape_cast %358 : vector<1x1x32xf32> to vector<1x32xf32>
    %360 = vector.broadcast %359 : vector<1x32xf32> to vector<32x32xf32>
    %361 = arith.addf %357, %360 : vector<32x32xf32>
    %c1_190 = arith.constant 1 : index
    %c0_191 = arith.constant 0 : index
    %c0_192 = arith.constant 0 : index
    %362 = vector.load %arg12[%c1_190, %c0_191, %c0_192] : memref<2x2x32xf32, #tpu.memory_space<vmem>>, vector<1x2x32xf32>
    %363 = vector.shape_cast %362 : vector<1x2x32xf32> to vector<2x32xf32>
    %364 = arith.addf %334, %361 : vector<32x32xf32>
    %365 = vector.extract_strided_slice %363 {offsets = [0, 0], sizes = [1, 32], strides = [1, 1]} : vector<2x32xf32> to vector<1x32xf32>
    %366 = vector.extract_strided_slice %363 {offsets = [1, 0], sizes = [1, 32], strides = [1, 1]} : vector<2x32xf32> to vector<1x32xf32>
    %cst_193 = arith.constant dense<0.000000e+00> : vector<32xf32>
    %367 = vector.multi_reduction <add>, %364, %cst_193 [1] : vector<32x32xf32> to vector<32xf32>
    %368 = vector.shape_cast %367 : vector<32xf32> to vector<32x1xf32>
    %cst_194 = arith.constant 3.200000e+01 : f32
    %369 = vector.broadcast %cst_194 : f32 to vector<32x1xf32>
    %370 = arith.divf %368, %369 : vector<32x1xf32>
    %371 = vector.broadcast %370 : vector<32x1xf32> to vector<32x32xf32>
    %372 = arith.subf %364, %371 : vector<32x32xf32>
    %373 = arith.mulf %372, %372 : vector<32x32xf32>
    %cst_195 = arith.constant dense<0.000000e+00> : vector<32xf32>
    %374 = vector.multi_reduction <add>, %373, %cst_195 [1] : vector<32x32xf32> to vector<32xf32>
    %375 = vector.shape_cast %374 : vector<32xf32> to vector<32x1xf32>
    %cst_196 = arith.constant 3.200000e+01 : f32
    %376 = vector.broadcast %cst_196 : f32 to vector<32x1xf32>
    %377 = arith.divf %375, %376 : vector<32x1xf32>
    %378 = vector.broadcast %370 : vector<32x1xf32> to vector<32x32xf32>
    %379 = arith.subf %364, %378 : vector<32x32xf32>
    %cst_197 = arith.constant 9.99999974E-6 : f32
    %380 = vector.broadcast %cst_197 : f32 to vector<32x1xf32>
    %381 = arith.addf %377, %380 : vector<32x1xf32>
    %382 = math.rsqrt %381 : vector<32x1xf32>
    %383 = vector.broadcast %382 : vector<32x1xf32> to vector<32x32xf32>
    %384 = arith.mulf %379, %383 : vector<32x32xf32>
    %385 = vector.broadcast %365 : vector<1x32xf32> to vector<32x32xf32>
    %386 = arith.mulf %384, %385 : vector<32x32xf32>
    %387 = vector.broadcast %366 : vector<1x32xf32> to vector<32x32xf32>
    %388 = arith.addf %386, %387 : vector<32x32xf32>
    %389 = vector.shape_cast %388 : vector<32x32xf32> to vector<2x16x32xf32>
    %390 = vector.extract_strided_slice %389 {offsets = [0, 0, 0], sizes = [2, 1, 32], strides = [1, 1, 1]} : vector<2x16x32xf32> to vector<2x1x32xf32>
    %391 = vector.shape_cast %390 : vector<2x1x32xf32> to vector<2x32xf32>
    %c0_198 = arith.constant 0 : index
    %c0_199 = arith.constant 0 : index
    %392 = vector.load %arg13[%c0_198, %c0_199] : memref<2x32xf32, #tpu.memory_space<vmem>>, vector<2x32xf32>
    tpu.vector_store %arg13[%c0_198, %c0_199], %391 {strides = array<i32>} : memref<2x32xf32, #tpu.memory_space<vmem>>, vector<2x32xf32>,
    return
  }
}

</mosaic_0001>

<bundles_post_ra>
// kernel: tpu_custom_call.1
= control target key start
LH: loop header
LB: loop body
LE: loop exit
PB: predicated region body
PF: predicated region fallthrough
CT: control target
= control target key end

     0   :  { %18 = vsyncpa [#allocation5], 0  ;;  %s4462_s0 = inlined_call_operand.hbm [shape: f32[2,8,32], index: 0, kind: input, shape index: {}]   ;;  %s4463_s1 = inlined_call_operand.hbm [shape: f32[2,32], index: 1, kind: input, shape index: {}]   ;;  %s4464_s2 = inlined_call_operand.hbm [shape: f32[2,8,32], index: 2, kind: input, shape index: {}]   ;;  %s4465_s3 = inlined_call_operand.vmem [shape: f32[2,32,96], index: 3, kind: input, shape index: {}]   ;;  %s4466_s4 = inlined_call_operand.hbm [shape: f32[2,1,96], index: 4, kind: input, shape index: {}]   ;;  %s4467_s5 = inlined_call_operand.vmem [shape: f32[2,32,32], index: 5, kind: input, shape index: {}]   ;;  %s4468_s6 = inlined_call_operand.hbm [shape: f32[2,1,32], index: 6, kind: input, shape index: {}]   ;;  %s4469_s7 = inlined_call_operand.vmem [shape: f32[2,32,64], index: 7, kind: input, shape index: {}]   ;;  %s4470_s8 = inlined_call_operand.hbm [shape: f32[2,1,64], index: 8, kind: input, shape index: {}]   ;;  %s4471_s9 = inlined_call_operand.vmem [shape: f32[2,64,32], index: 9, kind: input, shape index: {}]   ;;  %s4472_s10 = inlined_call_operand.hbm [shape: f32[2,1,32], index: 10, kind: input, shape index: {}]   ;;  %s4473_s11 = inlined_call_operand.vmem [shape: f32[2,2,32], index: 11, kind: input, shape index: {}]   ;;  %s4474_s12 = inlined_call_operand.vmem [shape: f32[2,2,32], index: 12, kind: input, shape index: {}]   ;;  %s4475_s13 = inlined_call_operand.hbm [shape: f32[2,32], index: 13, kind: output, shape index: {}]  }
   0x1   :  { %19 = vsyncpa [#allocation8], 0 }
   0x2   :  { %20 = vsyncpa [#allocation11], 0 }
   0x3   :  { %21 = vsyncpa [#allocation14], 0  ;;  %s41_s27 = sshll.u32 %s4463_s1, 4  ;;  %s42_s27 = int_to_ptr.hbm [resolvable:$true] %s41_s27 }
   0x4   :  { %22 = vsyncpa [#allocation6], 0  ;;  %s3442_s28 = smov [#allocation7]   ;;  %s66_s15 = sshll.u32 %s4466_s4, 4  ;;  %s67_s15 = int_to_ptr.hbm [resolvable:$true] %s66_s15 }
   0x5   :  { %s43_s29 = sshll.u32 %s3442_s28, 4  ;;  %s3443_s16 = smov [#allocation10]   ;;  %s44_s29 = int_to_ptr.vmem [resolvable:$true] %s43_s29 }
   0x6   :  { %46 = dma.hbm_to_vmem [thread:$0]  %s42_s27, 32, %s44_s29, [#allocation8]  }
   0x7   :  { %s68_s17 = sshll.u32 %s3443_s16, 4  ;;  %s3444_s18 = smov 16   ;;  %s69_s17 = int_to_ptr.vmem [resolvable:$true] %s68_s17 }
   0x8   :  { %s3445_s19 = smov 1   ;;  %s96_s21 = sshll.u32 %s4470_s8, 4  ;;  %s97_s21 = int_to_ptr.hbm [resolvable:$true] %s96_s21 }
   0x9   :  { %74 = dma.hbm_to_vmem [thread:$0]  %s67_s15, 32, %s69_s17, [#allocation11], %s3444_s18, %s3444_s18, %s3445_s19  }
   0xa   :  { %s3446_s22 = smov [#allocation13]   ;;  %s27_s25 = sshll.u32 %s4462_s0, 4  ;;  %s28_s25 = int_to_ptr.hbm [resolvable:$true] %s27_s25 }
   0xb   :  { %s98_s23 = sshll.u32 %s3446_s22, 4  ;;  %s3447_s26 = smov [#allocation4]   ;;  %s99_s23 = int_to_ptr.vmem [resolvable:$true] %s98_s23 }
   0xc   :  { %104 = dma.hbm_to_vmem [thread:$0]  %s97_s21, 32, %s99_s23, [#allocation14], %s3444_s18, %s3444_s18, %s3445_s19  }
   0xd   :  { %s29_s27 = sshll.u32 %s3447_s26, 4  ;;  %s3448_s28 = smov 128   ;;  %s30_s27 = int_to_ptr.vmem [resolvable:$true] %s29_s27 }
   0xe   :  { %s3449_s29 = smov 8   ;;  %s51_s14 = sshll.u32 %s4464_s2, 4  ;;  %s52_s14 = int_to_ptr.hbm [resolvable:$true] %s51_s14 }
   0xf   :  { %35 = dma.hbm_to_vmem [thread:$0]  %s28_s25, 256, %s30_s27, [#allocation5], %s3448_s28, %s3448_s28, %s3449_s29  }
  0x10   :  { %s3450_s15 = smov [#allocation9]   ;;  %s81_s1 = sshll.u32 %s4468_s6, 4  ;;  %s82_s1 = int_to_ptr.hbm [resolvable:$true] %s81_s1 }
  0x11   :  { %s53_s16 = sshll.u32 %s3450_s15, 4  ;;  %s3451_s20 = smov [#allocation12]   ;;  %s54_s16 = int_to_ptr.vmem [resolvable:$true] %s53_s16 }
  0x12   :  { %59 = dma.hbm_to_vmem [thread:$0]  %s52_s14, 256, %s54_s16, [#allocation8], %s3448_s28, %s3448_s28, %s3449_s29  }
  0x13   :  { %s83_s21 = sshll.u32 %s3451_s20, 4  ;;  %s111_s4 = sshll.u32 %s4472_s10, 4  ;;  %s84_s21 = int_to_ptr.vmem [resolvable:$true] %s83_s21  ;;  %s112_s4 = int_to_ptr.hbm [resolvable:$true] %s111_s4 }
  0x14   :  { %89 = dma.hbm_to_vmem [thread:$0]  %s82_s1, 32, %s84_s21, [#allocation11], %s3444_s18, %s3444_s18, %s3445_s19  }
  0x15   :  { %s3452_s2 = smov [#allocation15]  }
  0x16   :  { %s113_s24 = sshll.u32 %s3452_s2, 4  ;;  %s114_s24 = int_to_ptr.vmem [resolvable:$true] %s113_s24 }
  0x17   :  { %119 = dma.hbm_to_vmem [thread:$0]  %s112_s4, 32, %s114_s24, [#allocation14], %s3444_s18, %s3444_s18, %s3445_s19  }
  0x18   :  { %3432 = dma.done.wait [#allocation5], 256  }
  0x19   :  { %3433 = vsyncadd [#allocation5], 4294967040 }
  0x1a   :  { %3434 = dma.done.wait [#allocation8], 288  }
  0x1b   :  { %3435 = vsyncadd [#allocation8], 4294967008 }
  0x1c   :  { %3436 = dma.done.wait [#allocation11], 64  }
  0x1d   :  { %3437 = vsyncadd [#allocation11], 4294967232 }
  0x1e   :  { %3438 = dma.done.wait [#allocation14], 64  }
  0x1f   :  { %3439 = vsyncadd [#allocation14], 4294967232  ;;  %vm156_vm0 = vcmask 261120   ;;  %v152_v0 = vld [vmem:[#allocation4] sm:$0xff]  ;;  %v153_v2 = vld [vmem:[#allocation4 + $0x8] sm:$0xff]  ;;  %v3453_v4 = vmov 32.0  }
  0x20   :  { %v157_v1 = vsel %vm156_vm0, %v152_v0, 0.0  ;;  %v160_v3 = vsel %vm156_vm0, %v153_v2, 0.0  ;;  %3060 = vrcp.f32 %v3453_v4  ;;  %v220_v21 = vld [vmem:[#allocation9] sm:$0xff]  ;;  %v228_v26 = vld [vmem:[%s4465_s3 + $0x8] sm:$0xff]  ;;  %v227_v28 = vld [vmem:[%s4465_s3] sm:$0xff]  ;;  %vm214_vm7 = vcmask 253952  }
  0x21   :  { %158 = vadd.xlane.f32.xlu0 %v157_v1  ;;  %v230_v22 = vld [vmem:[%s4465_s3 + $0x18] sm:$0xff]  ;;  %221 = vst.msk [vmem:[#allocation2 + $0x1] sm:$0xff] %vm156_vm0, %v220_v21  ;;  %v229_v24 = vld [vmem:[%s4465_s3 + $0x10] sm:$0xff]  ;;  %vm217_vm8 = vcmask 261121   ;;  %v3052_v58 = vld [vmem:[#allocation10] ss:$0 sm:$0xff] }
  0x22   :  { %259 = vmatpush.msra.mxu0 %v230_v22  ;;  %222 = vst.msk [vmem:[#allocation2 + $0x11] sm:$0xff] %vm156_vm0, %v220_v21  ;;  %v3050_v40 = vld [vmem:[#allocation7] ss:$0 sm:$0xff]  ;;  %v3051_v43 = vld [vmem:[#allocation7 + $0x1] ss:$0 sm:$0xff]  ;;  %s3454_s30 = smov 96  }
  0x23   :  { %s3455_s14 = smov 80   ;;  %s3456_s15 = smov 120   ;;  %vm286_vm10 = vcmask 64512   ;;  %vm359_vm11 = vcmask 130048   ;;  %vm686_vm12 = vcmask 130112   ;;  %vm899_vm13 = vcmask 195712  }
  0x24   :  { %260 = vmatpush.msra.mxu0 %v229_v24  ;;  %s3457_s16 = smov 88   ;;  %s3458_s0 = smov 112   ;;  %vm1112_vm14 = vcmask 261312  }
  0x25   :  { %s3459_s17 = smov 72   ;;  %s3460_s1 = smov 104  }
  0x26   :  { %v3061_v5 = vpop.eup %3060  ;;  %261 = vmatpush.msra.mxu0 %v228_v26  ;;  %s3461_s20 = smov 64   ;;  %s3462_s21 = smov 56  }
  0x27   :  { %v164_v6 = vmul.f32 32.0, %v3061_v5  ;;  %vm168_vm1 = vweird.f32 %v3061_v5  ;;  %s3463_s22 = smov 48   ;;  %s3464_s23 = smov 40  }
  0x28   :  { %262 = vmatpush.msra.mxu0 %v227_v28  ;;  %s3465_s4 = smov 24  }
  0x29   :  { %161 = vadd.xlane.f32.xlu0 %v160_v3  ;;  %v165_v7 = vsub.f32 1.0, %v164_v6 }
  0x2b   :  { %v166_v8 = vmul.f32 %v3061_v5, %v165_v7 }
  0x2d   :  { %v167_v9 = vadd.f32 %v3061_v5, %v166_v8 }
  0x2f   :  { %v3574_v10 = vsel %vm168_vm1, %v3061_v5, %v167_v9 }
  0x94   :  { %v159_v11 = vpop.xlane.xlu0 %158 }
  0x95   :  { %v170_v12 = vmul.f32 %v3574_v10, %v159_v11 }
  0x97   :  { %v172_v13 = vsub.f32 %v152_v0, %v170_v12 }
  0x99   :  { %v174_v14 = vmul.f32 %v172_v13, %v172_v13 }
  0x9b   :  { %v176_v15 = vsel %vm156_vm0, %v174_v14, 0.0 }
  0x9c   :  { %177 = vadd.xlane.f32.xlu1 %v176_v15  ;;  %v162_v16 = vpop.xlane.xlu0 %161 }
  0x9d   :  { %v171_v17 = vmul.f32 %v3574_v10, %v162_v16 }
  0x9f   :  { %v173_v18 = vsub.f32 %v153_v2, %v171_v17 }
  0xa1   :  { %v175_v19 = vmul.f32 %v173_v18, %v173_v18 }
  0xa3   :  { %v179_v20 = vsel %vm156_vm0, %v175_v19, 0.0 }
  0xa4   :  { %180 = vadd.xlane.f32.xlu1 %v179_v20 }
 0x10f   :  { %v178_v23 = vpop.xlane.xlu1 %177 }
 0x110   :  { %v182_v25 = vmul.f32 %v178_v23, %v3574_v10 }
 0x112   :  { %v184_v27 = vadd.f32 1e-05, %v182_v25 }
 0x114   :  { %3062 = vrsqrt.f32 %v184_v27  ;;  %vm192_vm3 = vweird.f32 %v184_v27 }
 0x117   :  { %v181_v29 = vpop.xlane.xlu1 %180 }
 0x118   :  { %v183_v30 = vmul.f32 %v181_v29, %v3574_v10 }
 0x11a   :  { %v3063_v31 = vpop.eup %3062  ;;  %v185_v32 = vadd.f32 1e-05, %v183_v30 }
 0x11b   :  { %v187_v33 = vmul.f32 %v3063_v31, %v184_v27  ;;  %vm193_vm2 = vweird.f32 %v3063_v31 }
 0x11c   :  { %3064 = vrsqrt.f32 %v185_v32  ;;  %vm194_vm4 = vmor %vm192_vm3, %vm193_vm2  ;;  %vm202_vm5 = vweird.f32 %v185_v32 }
 0x11d   :  { %v188_v34 = vmul.f32 %v3063_v31, %v187_v33 }
 0x11f   :  { %v189_v35 = vmul.f32 0.5, %v188_v34 }
 0x121   :  { %v190_v36 = vsub.f32 1.5, %v189_v35 }
 0x122   :  { %v3065_v37 = vpop.eup %3064 }
 0x123   :  { %v191_v38 = vmul.f32 %v3063_v31, %v190_v36  ;;  %v197_v39 = vmul.f32 %v3065_v37, %v185_v32  ;;  %vm203_vm6 = vweird.f32 %v3065_v37 }
 0x124   :  { %vm204_vm9 = vmor %vm202_vm5, %vm203_vm6 }
 0x125   :  { %v195_v41 = vsel %vm194_vm4, %v3063_v31, %v191_v38  ;;  %v198_v42 = vmul.f32 %v3065_v37, %v197_v39 }
 0x126   :  { %v206_v44 = vmul.f32 %v195_v41, %v172_v13 }
 0x127   :  { %v199_v45 = vmul.f32 0.5, %v198_v42 }
 0x128   :  { %v209_v46 = vmul.f32 %v3050_v40, %v206_v44 }
 0x129   :  { %v200_v47 = vsub.f32 1.5, %v199_v45 }
 0x12a   :  { %v212_v48 = vadd.f32 %v3051_v43, %v209_v46 }
 0x12b   :  { %v201_v49 = vmul.f32 %v3065_v37, %v200_v47 }
 0x12c   :  { %215 = vst.msk [vmem:[#allocation2] sm:$0x1] %vm214_vm7, %v212_v48 }
 0x12d   :  { %218 = vst.msk [vmem:[#allocation2 + $0x8] sm:$0xfe] %vm217_vm8, %v212_v48  ;;  %v205_v50 = vsel %vm204_vm9, %v3065_v37, %v201_v49 }
 0x12e   :  { %v207_v51 = vmul.f32 %v205_v50, %v173_v18 }
 0x130   :  { %v210_v52 = vmul.f32 %v3050_v40, %v207_v51 }
 0x132   :  { %v213_v53 = vadd.f32 %v3051_v43, %v210_v52 }
 0x133   :  { %v3596_v54 = vld [vmem:[#allocation2] sm:$0xff] }
 0x134   :  { %216 = vst.msk [vmem:[#allocation2 + $0x10] sm:$0x1] %vm214_vm7, %v213_v53  ;;  %2795 = vmatmul.msk.f32.vlgmr.msra.gmra.mxu0 %vm156_vm0, %v3596_v54  ;;  %v3600_v55 = vld [vmem:[#allocation2 + $0x8] sm:$0xff] }
 0x135   :  { %219 = vst.msk [vmem:[#allocation2 + $0x18] sm:$0xfe] %vm217_vm8, %v213_v53 }
 0x13b   :  { %v3604_v56 = vld [vmem:[#allocation2 + $0x10] sm:$0xff] }
 0x13c   :  { %2796 = vmatmul.msk.f32.gmra.mxu0 %vm156_vm0, %v3600_v55  ;;  %v3608_v57 = vld [vmem:[#allocation2 + $0x18] sm:$0xff] }
 0x144   :  { %2797 = vmatmul.msk.f32.gmra.mxu0 %vm156_vm0, %v3604_v56 }
 0x14c   :  { %2798 = vmatmul.msk.f32.gmra.mxu0 %vm156_vm0, %v3608_v57 }
 0x1b1   :  { %v264_v59 = vpop.f32.mrf.mxu0 }
 0x1b2   :  { %v265_v60 = vadd.f32 %v3052_v58, %v264_v59 }
 0x1b4   :  { %282 = vrot.lane.b32.xlu1 %v265_v60, %s3454_s30  ;;  %v276_v7 = vmul.f32 0.35355338, %v265_v60 }
 0x1b9   :  { %v267_v61 = vpop.f32.mrf.mxu0 }
 0x1ba   :  { %v268_v62 = vadd.f32 %v3052_v58, %v267_v61 }
 0x1bc   :  { %284 = vrot.lane.b32.xlu0 %v268_v62, %s3454_s30  ;;  %697 = vrot.lane.b32.xlu1 %v268_v62, %s3455_s14  ;;  %v3615_v63 = vpack.i.bf16 %v265_v60, %v268_v62  ;;  %v3617_v2 = vmul.f32 0.35355338, %v268_v62 }
 0x1c1   :  { %v270_v0 = vpop.f32.mrf.mxu0 }
 0x1c2   :  { %v271_v1 = vadd.f32 %v3052_v58, %v270_v0 }
 0x1c4   :  { %480 = vrot.lane.b32.xlu0 %v3617_v2, %s3456_s15  ;;  %322 = vrot.lane.b32.xlu2 %v271_v1, %s3454_s30  ;;  %v278_v3 = vmul.f32 0.35355338, %v271_v1 }
 0x1c6   :  { %517 = vrot.lane.b32.xlu1 %v278_v3, %s3456_s15 }
 0x1c9   :  { %v273_v4 = vpop.f32.mrf.mxu0 }
 0x1ca   :  { %v274_v5 = vadd.f32 %v3052_v58, %v273_v4 }
 0x1cc   :  { %521 = vrot.lane.b32.xlu0 %v271_v1, %s3457_s16  ;;  %324 = vrot.lane.b32.xlu2 %v274_v5, %s3454_s30  ;;  %v3625_v6 = vpack.i.bf16 %v271_v1, %v274_v5  ;;  %v279_v8 = vmul.f32 0.35355338, %v274_v5 }
 0x1ce   :  { %693 = vrot.lane.b32.xlu1 %v3617_v2, %s3458_s0 }
 0x1d4   :  { %691 = vrot.lane.b32.xlu0 %v276_v7, %s3458_s0  ;;  %484 = vrot.lane.b32.xlu2 %v268_v62, %s3457_s16 }
 0x1d6   :  { %734 = vrot.lane.b32.xlu1 %v271_v1, %s3455_s14 }
 0x1dc   :  { %908 = vrot.lane.b32.xlu0 %v265_v60, %s3459_s17  ;;  %482 = vrot.lane.b32.xlu2 %v265_v60, %s3457_s16 }
 0x1de   :  { %904 = vrot.lane.b32.xlu1 %v276_v7, %s3460_s1 }
 0x1e4   :  { %736 = vrot.lane.b32.xlu0 %v274_v5, %s3455_s14  ;;  %478 = vrot.lane.b32.xlu2 %v276_v7, %s3456_s15 }
 0x1e6   :  { %949 = vrot.lane.b32.xlu1 %v274_v5, %s3459_s17 }
 0x1ec   :  { %947 = vrot.lane.b32.xlu0 %v271_v1, %s3459_s17  ;;  %695 = vrot.lane.b32.xlu2 %v265_v60, %s3455_s14 }
 0x1ee   :  { %945 = vrot.lane.b32.xlu1 %v279_v8, %s3460_s1 }
 0x1f4   :  { %732 = vrot.lane.b32.xlu0 %v279_v8, %s3458_s0  ;;  %523 = vrot.lane.b32.xlu2 %v274_v5, %s3457_s16 }
 0x1f6   :  { %2971 = vrot.lane.b32.xlu1 %v3625_v6, %s3461_s20 }
 0x1fc   :  { %2981 = vrot.lane.b32.xlu0 %v3615_v63, %s3461_s20  ;;  %910 = vrot.lane.b32.xlu2 %v268_v62, %s3459_s17 }
 0x204   :  { %519 = vrot.lane.b32.xlu2 %v279_v8, %s3456_s15 }
 0x20c   :  { %730 = vrot.lane.b32.xlu2 %v278_v3, %s3458_s0 }
 0x214   :  { %906 = vrot.lane.b32.xlu2 %v3617_v2, %s3460_s1 }
 0x21c   :  { %943 = vrot.lane.b32.xlu2 %v278_v3, %s3460_s1 }
 0x21e   :  { %v323_v9 = vpop.permute.xlu2 %322 }
 0x224   :  { %2976 = vrot.lane.b32.xlu2 %v3615_v63, %s3462_s21 }
 0x226   :  { %v325_v11 = vpop.permute.xlu2 %324  ;;  %v283_v12 = vpop.permute.xlu1 %282 }
 0x227   :  { %2803 = vmatpush.xpose.msk.msra.mxu2 %vm286_vm10, %v325_v11 }
 0x22b   :  { %2804 = vmatpush.xpose.msk.msra.mxu2 %vm286_vm10, %v323_v9 }
 0x22e   :  { %v485_v13 = vpop.permute.xlu2 %484  ;;  %2805 = vmatmul.msk.f32.vlgmr.msra.gmra.mxu2 %vm286_vm10, %v278_v3  ;;  %v285_v14 = vpop.permute.xlu0 %284 }
 0x22f   :  { %v698_v15 = vpop.permute.xlu1 %697  ;;  %2799 = vmatpush.xpose.msk.msra.mxu1 %vm286_vm10, %v285_v14 }
 0x233   :  { %2800 = vmatpush.xpose.msk.msra.mxu1 %vm286_vm10, %v283_v12 }
 0x236   :  { %v483_v16 = vpop.permute.xlu2 %482  ;;  %2806 = vmatmul.msk.f32.gmra.mxu2 %vm286_vm10, %v279_v8  ;;  %2801 = vmatmul.msk.f32.vlgmr.msra.gmra.mxu1 %vm286_vm10, %v276_v7  ;;  %v481_v17 = vpop.permute.xlu0 %480 }
 0x237   :  { %2811 = vmatpush.xpose.msk.msrb.mxu1 %vm286_vm10, %v485_v13 }
 0x238   :  { %v518_v18 = vpop.permute.xlu1 %517 }
 0x23b   :  { %2812 = vmatpush.xpose.msk.msrb.mxu1 %vm286_vm10, %v483_v16 }
 0x23e   :  { %v479_v19 = vpop.permute.xlu2 %478  ;;  %2802 = vmatmul.msk.f32.gmra.mxu1 %vm286_vm10, %v3617_v2  ;;  %v522_v20 = vpop.permute.xlu0 %521 }
 0x23f   :  { %2823 = vmatpush.xpose.msk.msra.mxu1 %vm286_vm10, %v698_v15 }
 0x240   :  { %v694_v21 = vpop.permute.xlu1 %693 }
 0x246   :  { %v696_v22 = vpop.permute.xlu2 %695  ;;  %2813 = vmatmul.msk.f32.vlgmr.msrb.gmra.mxu1 %vm286_vm10, %v479_v19  ;;  %v692_v23 = vpop.permute.xlu0 %691 }
 0x247   :  { %2824 = vmatpush.xpose.msk.msra.mxu1 %vm286_vm10, %v696_v22 }
 0x248   :  { %v735_v24 = vpop.permute.xlu1 %734 }
 0x24e   :  { %v524_v25 = vpop.permute.xlu2 %523  ;;  %2814 = vmatmul.msk.f32.gmra.mxu1 %vm286_vm10, %v481_v17  ;;  %v909_v26 = vpop.permute.xlu0 %908 }
 0x24f   :  { %2815 = vmatpush.xpose.msk.msrb.mxu2 %vm286_vm10, %v524_v25 }
 0x250   :  { %v905_v27 = vpop.permute.xlu1 %904 }
 0x253   :  { %2816 = vmatpush.xpose.msk.msrb.mxu2 %vm286_vm10, %v522_v20 }
 0x256   :  { %v911_v28 = vpop.permute.xlu2 %910  ;;  %2817 = vmatmul.msk.f32.vlgmr.msrb.gmra.mxu2 %vm286_vm10, %v518_v18  ;;  %2825 = vmatmul.msk.f32.vlgmr.msra.gmra.mxu1 %vm286_vm10, %v692_v23  ;;  %v737_v29 = vpop.permute.xlu0 %736 }
 0x257   :  { %2827 = vmatpush.xpose.msk.msra.mxu2 %vm286_vm10, %v737_v29  ;;  %2835 = vmatpush.xpose.msk.msrb.mxu1 %vm286_vm10, %v911_v28 }
 0x258   :  { %v950_v30 = vpop.permute.xlu1 %949 }
 0x25b   :  { %2828 = vmatpush.xpose.msk.msra.mxu2 %vm286_vm10, %v735_v24  ;;  %2836 = vmatpush.xpose.msk.msrb.mxu1 %vm286_vm10, %v909_v26 }
 0x25e   :  { %v520_v31 = vpop.permute.xlu2 %519  ;;  %2826 = vmatmul.msk.f32.gmra.mxu1 %vm286_vm10, %v694_v21  ;;  %v948_v32 = vpop.permute.xlu0 %947 }
 0x25f   :  { %2839 = vmatpush.xpose.msk.msrb.mxu2 %vm286_vm10, %v950_v30 }
 0x260   :  { %2818 = vmatmul.msk.f32.gmra.mxu2 %vm286_vm10, %v520_v31  ;;  %v946_v33 = vpop.permute.xlu1 %945 }
 0x263   :  { %2840 = vmatpush.xpose.msk.msrb.mxu2 %vm286_vm10, %v948_v32 }
 0x266   :  { %v731_v34 = vpop.permute.xlu2 %730  ;;  %2837 = vmatmul.msk.f32.vlgmr.msrb.gmra.mxu1 %vm286_vm10, %v905_v27  ;;  %v733_v35 = vpop.permute.xlu0 %732 }
 0x268   :  { %2829 = vmatmul.msk.f32.vlgmr.msra.gmra.mxu2 %vm286_vm10, %v731_v34  ;;  %v2972_v36 = vpop.permute.xlu1 %2971 }
 0x269   :  { %v2973_v37 = vunpack.i.l.bf16 %v2972_v36  ;;  %v2974_v38 = vunpack.i.h.bf16 %v2972_v36 }
 0x26b   :  { %465 = vmatpush.msra.mxu3 %v2973_v37 }
 0x26d   :  { %466 = vmatpush.msra.mxu3 %v2974_v38 }
 0x26e   :  { %v907_v39 = vpop.permute.xlu2 %906  ;;  %v2982_v40 = vpop.permute.xlu0 %2981 }
 0x26f   :  { %2838 = vmatmul.msk.f32.gmra.mxu1 %vm286_vm10, %v907_v39  ;;  %v2983_v41 = vunpack.i.l.bf16 %v2982_v40  ;;  %v2984_v42 = vunpack.i.h.bf16 %v2982_v40 }
 0x270   :  { %2830 = vmatmul.msk.f32.gmra.mxu2 %vm286_vm10, %v733_v35 }
 0x271   :  { %430 = vmatpush.msrb.mxu0 %v2983_v41 }
 0x273   :  { %431 = vmatpush.msrb.mxu0 %v2984_v42 }
 0x276   :  { %v944_v43 = vpop.permute.xlu2 %943 }
 0x278   :  { %2841 = vmatmul.msk.f32.vlgmr.msrb.gmra.mxu2 %vm286_vm10, %v944_v43 }
 0x27e   :  { %v2977_v44 = vpop.permute.xlu2 %2976 }
 0x27f   :  { %v2978_v45 = vunpack.i.l.bf16 %v2977_v44  ;;  %v2979_v46 = vunpack.i.h.bf16 %v2977_v44 }
 0x280   :  { %2842 = vmatmul.msk.f32.gmra.mxu2 %vm286_vm10, %v946_v33 }
 0x281   :  { %626 = vmatpush.msrb.mxu3 %v2978_v45 }
 0x283   :  { %627 = vmatpush.msrb.mxu3 %v2979_v46 }
 0x2b1   :  { %v353_v49 = vpop.f32.mrf.mxu2 }
 0x2b2   :  { %v366_v51 = vsel %vm359_vm11, %v353_v49, -inf }
 0x2b3   :  { %v314_v47 = vpop.f32.mrf.mxu1 }
 0x2b4   :  { %v360_v48 = vsel %vm359_vm11, %v314_v47, -inf }
 0x2b5   :  { %361 = vmax.xlane.f32.xlu0 %v360_v48 }
 0x2b9   :  { %v3696_v61 = vpop.f32.mrf.mxu2 }
 0x2ba   :  { %v369_v0 = vsel %vm359_vm11, %v3696_v61, -inf }
 0x2bb   :  { %v317_v50 = vpop.f32.mrf.mxu1 }
 0x2bc   :  { %v363_v52 = vsel %vm359_vm11, %v317_v50, -inf }
 0x2bd   :  { %367 = vmax.xlane.f32.xlu0 %v366_v51  ;;  %364 = vmax.xlane.f32.xlu1 %v363_v52 }
 0x2c3   :  { %v511_v53 = vpop.f32.mrf.mxu1 }
 0x2c4   :  { %v556_v58 = vsel %vm359_vm11, %v511_v53, -inf }
 0x2c5   :  { %557 = vmax.xlane.f32.xlu1 %v556_v58 }
 0x2cb   :  { %v3692_v59 = vpop.f32.mrf.mxu1 }
 0x2cc   :  { %v559_v60 = vsel %vm359_vm11, %v3692_v59, -inf }
 0x2cd   :  { %560 = vmax.xlane.f32.xlu2 %v559_v60 }
 0x2d3   :  { %v3698_v62 = vpop.f32.mrf.mxu1 }
 0x2d4   :  { %v769_v1 = vsel %vm359_vm11, %v3698_v62, -inf }
 0x2d5   :  { %370 = vmax.xlane.f32.xlu2 %v369_v0  ;;  %770 = vmax.xlane.f32.xlu0 %v769_v1 }
 0x2d9   :  { %v3704_v2 = vpop.f32.mrf.mxu2 }
 0x2da   :  { %v562_v4 = vsel %vm359_vm11, %v3704_v2, -inf }
 0x2db   :  { %v3706_v3 = vpop.f32.mrf.mxu1 }
 0x2dc   :  { %v772_v5 = vsel %vm359_vm11, %v3706_v3, -inf }
 0x2dd   :  { %563 = vmax.xlane.f32.xlu2 %v562_v4  ;;  %773 = vmax.xlane.f32.xlu1 %v772_v5 }
 0x2e3   :  { %v3712_v7 = vpop.f32.mrf.mxu2  ;;  %v3716_v9 = vpop.f32.mrf.mxu1 }
 0x2e4   :  { %v565_v8 = vsel %vm359_vm11, %v3712_v7, -inf  ;;  %v982_v11 = vsel %vm359_vm11, %v3716_v9, -inf }
 0x2e5   :  { %566 = vmax.xlane.f32.xlu0 %v565_v8  ;;  %983 = vmax.xlane.f32.xlu2 %v982_v11 }
 0x2eb   :  { %v3720_v12 = vpop.f32.mrf.mxu2 }
 0x2ec   :  { %v775_v13 = vsel %vm359_vm11, %v3720_v12, -inf  ;;  %v3724_v14 = vpop.f32.mrf.mxu1 }
 0x2ed   :  { %776 = vmax.xlane.f32.xlu0 %v775_v13  ;;  %v985_v15 = vsel %vm359_vm11, %v3724_v14, -inf }
 0x2ee   :  { %986 = vmax.xlane.f32.xlu2 %v985_v15 }
 0x2f3   :  { %v3728_v16 = vpop.f32.mrf.mxu2 }
 0x2f4   :  { %v778_v17 = vsel %vm359_vm11, %v3728_v16, -inf }
 0x2f6   :  { %779 = vmax.xlane.f32.xlu2 %v778_v17 }
 0x2fb   :  { %v3732_v18 = vpop.f32.mrf.mxu2 }
 0x2fc   :  { %v988_v19 = vsel %vm359_vm11, %v3732_v18, -inf }
 0x2fe   :  { %989 = vmax.xlane.f32.xlu2 %v988_v19 }
 0x303   :  { %v3736_v20 = vpop.f32.mrf.mxu2 }
 0x304   :  { %v991_v21 = vsel %vm359_vm11, %v3736_v20, -inf }
 0x305   :  { %992 = vmax.xlane.f32.xlu0 %v991_v21 }
 0x328   :  { %v362_v22 = vpop.xlane.xlu0 %361 }
 0x329   :  { %v372_v23 = vsub.f32 %v314_v47, %v362_v22 }
 0x32b   :  { %v376_v24 = vmul.f32 1.442695, %v372_v23 }
 0x32d   :  { %3066 = vpow2.f32 %v376_v24 }
 0x330   :  { %v365_v25 = vpop.xlane.xlu1 %364  ;;  %v368_v26 = vpop.xlane.xlu0 %367 }
 0x331   :  { %v373_v27 = vsub.f32 %v317_v50, %v365_v25  ;;  %v374_v28 = vsub.f32 %v353_v49, %v368_v26 }
 0x333   :  { %v3740_v29 = vpop.eup %3066  ;;  %v378_v30 = vmul.f32 1.442695, %v373_v27  ;;  %v380_v31 = vmul.f32 1.442695, %v374_v28 }
 0x334   :  { %v384_v32 = vsel %vm359_vm11, %v3740_v29, 0.0 }
 0x335   :  { %3068 = vpow2.f32 %v378_v30  ;;  %385 = vadd.xlane.f32.xlu0 %v384_v32 }
 0x336   :  { %3070 = vpow2.f32 %v380_v31 }
 0x338   :  { %v558_v33 = vpop.xlane.xlu1 %557 }
 0x339   :  { %v568_v34 = vsub.f32 %v511_v53, %v558_v33 }
 0x33b   :  { %v3744_v35 = vpop.eup %3068  ;;  %v572_v36 = vmul.f32 1.442695, %v568_v34 }
 0x33c   :  { %v3746_v37 = vpop.eup %3070  ;;  %v387_v38 = vsel %vm359_vm11, %v3744_v35, 0.0 }
 0x33d   :  { %3072 = vpow2.f32 %v572_v36  ;;  %388 = vadd.xlane.f32.xlu2 %v387_v38  ;;  %v390_v39 = vsel %vm359_vm11, %v3746_v37, 0.0 }
 0x33e   :  { %391 = vadd.xlane.f32.xlu1 %v390_v39 }
 0x340   :  { %v561_v40 = vpop.xlane.xlu2 %560 }
 0x343   :  { %v3752_v41 = vpop.eup %3072 }
 0x344   :  { %v580_v42 = vsel %vm359_vm11, %v3752_v41, 0.0 }
 0x345   :  { %581 = vadd.xlane.f32.xlu0 %v580_v42 }
 0x348   :  { %v371_v43 = vpop.xlane.xlu2 %370  ;;  %v771_v44 = vpop.xlane.xlu0 %770 }
 0x349   :  { %v375_v45 = vsub.f32 %v3696_v61, %v371_v43  ;;  %v781_v47 = vsub.f32 %v3698_v62, %v771_v44 }
 0x34b   :  { %v382_v46 = vmul.f32 1.442695, %v375_v45  ;;  %v785_v48 = vmul.f32 1.442695, %v781_v47 }
 0x34d   :  { %3074 = vpow2.f32 %v382_v46 }
 0x34e   :  { %3076 = vpow2.f32 %v785_v48 }
 0x350   :  { %v774_v49 = vpop.xlane.xlu1 %773  ;;  %v564_v61 = vpop.xlane.xlu2 %563 }
 0x351   :  { %v782_v50 = vsub.f32 %v3706_v3, %v774_v49  ;;  %v569_v3 = vsub.f32 %v3692_v59, %v561_v40  ;;  %v570_v8 = vsub.f32 %v3704_v2, %v564_v61 }
 0x353   :  { %v3759_v51 = vpop.eup %3074  ;;  %v787_v52 = vmul.f32 1.442695, %v782_v50  ;;  %v574_v5 = vmul.f32 1.442695, %v569_v3  ;;  %v576_v13 = vmul.f32 1.442695, %v570_v8 }
 0x354   :  { %v393_v53 = vsel %vm359_vm11, %v3759_v51, 0.0  ;;  %v3765_v58 = vpop.eup %3076 }
 0x355   :  { %394 = vadd.xlane.f32.xlu0 %v393_v53  ;;  %3078 = vpow2.f32 %v787_v52  ;;  %v793_v62 = vsel %vm359_vm11, %v3765_v58, 0.0 }
 0x356   :  { %3080 = vpow2.f32 %v574_v5 }
 0x357   :  { %2986 = vrot.lane.b32.xlu1 %v3615_v63, %s3463_s22  ;;  %3082 = vpow2.f32 %v576_v13 }
 0x358   :  { %v984_v1 = vpop.xlane.xlu2 %983  ;;  %v567_v17 = vpop.xlane.xlu0 %566 }
 0x359   :  { %v994_v59 = vsub.f32 %v3716_v9, %v984_v1  ;;  %v571_v24 = vsub.f32 %v3712_v7, %v567_v17 }
 0x35b   :  { %v3767_v60 = vpop.eup %3078  ;;  %v578_v27 = vmul.f32 1.442695, %v571_v24 }
 0x35c   :  { %v796_v0 = vsel %vm359_vm11, %v3767_v60, 0.0  ;;  %v3781_v15 = vpop.eup %3080 }
 0x35d   :  { %794 = vadd.xlane.f32.xlu0 %v793_v62  ;;  %797 = vadd.xlane.f32.xlu2 %v796_v0  ;;  %v583_v19 = vsel %vm359_vm11, %v3781_v15, 0.0  ;;  %v3786_v22 = vpop.eup %3082 }
 0x35e   :  { %v586_v23 = vsel %vm359_vm11, %v3786_v22, 0.0 }
 0x360   :  { %v777_v25 = vpop.xlane.xlu0 %776 }
 0x361   :  { %v987_v4 = vpop.xlane.xlu2 %986 }
 0x362   :  { %v995_v28 = vsub.f32 %v3724_v14, %v987_v4 }
 0x364   :  { %v1000_v31 = vmul.f32 1.442695, %v995_v28 }
 0x369   :  { %v3779_v11 = vpop.xlane.xlu2 %779 }
 0x371   :  { %2996 = vrot.lane.b32.xlu0 %v3615_v63, %s3464_s23  ;;  %v998_v63 = vmul.f32 1.442695, %v994_v59  ;;  %v990_v21 = vpop.xlane.xlu2 %989 }
 0x372   :  { %v996_v2 = vsub.f32 %v3732_v18, %v990_v21  ;;  %v783_v18 = vsub.f32 %v3720_v12, %v777_v25 }
 0x373   :  { %3084 = vpow2.f32 %v998_v63 }
 0x374   :  { %v1002_v9 = vmul.f32 1.442695, %v996_v2  ;;  %v789_v7 = vmul.f32 1.442695, %v783_v18 }
 0x375   :  { %2991 = vrot.lane.b32.xlu2 %v3625_v6, %s3462_s21 }
 0x376   :  { %3086 = vpow2.f32 %v1002_v9 }
 0x377   :  { %3088 = vpow2.f32 %v578_v27 }
 0x378   :  { %v993_v32 = vpop.xlane.xlu0 %992  ;;  %3090 = vpow2.f32 %v1000_v31 }
 0x379   :  { %v3792_v26 = vpop.eup %3084  ;;  %v997_v34 = vsub.f32 %v3736_v20, %v993_v32  ;;  %3092 = vpow2.f32 %v789_v7 }
 0x37a   :  { %v1006_v30 = vsel %vm359_vm11, %v3792_v26, 0.0 }
 0x37b   :  { %v1004_v38 = vmul.f32 1.442695, %v997_v34 }
 0x37c   :  { %v3798_v33 = vpop.eup %3086 }
 0x37d   :  { %v3801_v36 = vpop.eup %3088  ;;  %v1012_v14 = vsel %vm359_vm11, %v3798_v33, 0.0  ;;  %3094 = vpow2.f32 %v1004_v38 }
 0x37e   :  { %v589_v12 = vsel %vm359_vm11, %v3801_v36, 0.0  ;;  %v3807_v39 = vpop.eup %3090 }
 0x37f   :  { %v1009_v40 = vsel %vm359_vm11, %v3807_v39, 0.0  ;;  %v3811_v42 = vpop.eup %3092 }
 0x380   :  { %v799_v20 = vsel %vm359_vm11, %v3811_v42, 0.0 }
 0x381   :  { %584 = vadd.xlane.f32.xlu1 %v583_v19 }
 0x383   :  { %v3815_v43 = vpop.eup %3094 }
 0x384   :  { %v1015_v44 = vsel %vm359_vm11, %v3815_v43, 0.0 }
 0x389   :  { %587 = vadd.xlane.f32.xlu1 %v586_v23 }
 0x391   :  { %1007 = vadd.xlane.f32.xlu1 %v1006_v30 }
 0x399   :  { %1013 = vadd.xlane.f32.xlu1 %v1012_v14 }
 0x39b   :  { %590 = vadd.xlane.f32.xlu0 %v589_v12 }
 0x39e   :  { %1010 = vadd.xlane.f32.xlu2 %v1009_v40 }
 0x3a3   :  { %800 = vadd.xlane.f32.xlu0 %v799_v20 }
 0x3a6   :  { %1016 = vadd.xlane.f32.xlu2 %v1015_v44 }
 0x3a8   :  { %v386_v45 = vpop.xlane.xlu0 %385 }
 0x3a9   :  { %3096 = vrcp.f32 %v386_v45 }
 0x3af   :  { %v3097_v46 = vpop.eup %3096 }
 0x3b0   :  { %v389_v47 = vpop.xlane.xlu2 %388  ;;  %v400_v48 = vmul.f32 %v3097_v46, %v3740_v29 }
 0x3b1   :  { %3098 = vrcp.f32 %v389_v47  ;;  %v392_v49 = vpop.xlane.xlu1 %391 }
 0x3b2   :  { %3100 = vrcp.f32 %v392_v49  ;;  %3006 = vrot.lane.b32.xlu1 %v3625_v6, %s3464_s23  ;;  %2807 = vmatmul.msk.f32.vlgmr.msrb.gmra.mxu0 %vm359_vm11, %v400_v48 }
 0x3b7   :  { %v3099_v50 = vpop.eup %3098  ;;  %3001 = vrot.lane.b32.xlu0 %v3625_v6, %s3463_s22  ;;  %v784_v6 = vsub.f32 %v3728_v16, %v3779_v11 }
 0x3b8   :  { %v3101_v52 = vpop.eup %3100  ;;  %v401_v53 = vmul.f32 %v3099_v50, %v3744_v35  ;;  %v582_v29 = vpop.xlane.xlu0 %581 }
 0x3b9   :  { %v402_v61 = vmul.f32 %v3101_v52, %v3746_v37  ;;  %v791_v5 = vmul.f32 1.442695, %v784_v6 }
 0x3ba   :  { %2808 = vmatmul.msk.f32.gmra.mxu0 %vm359_vm11, %v401_v53 }
 0x3bb   :  { %2809 = vmatmul.msk.f32.vlgmr.msra.gmra.mxu3 %vm359_vm11, %v402_v61 }
 0x3c8   :  { %v395_v62 = vpop.xlane.xlu0 %394 }
 0x3c9   :  { %v2987_v0 = vpop.permute.xlu1 %2986  ;;  %3102 = vrcp.f32 %v395_v62 }
 0x3ca   :  { %v2988_v1 = vunpack.i.l.bf16 %v2987_v0  ;;  %v2989_v3 = vunpack.i.h.bf16 %v2987_v0  ;;  %3104 = vrcp.f32 %v582_v29 }
 0x3cb   :  { %3106 = vpow2.f32 %v791_v5 }
 0x3cc   :  { %839 = vmatpush.msra.mxu3 %v2988_v1 }
 0x3ce   :  { %840 = vmatpush.msra.mxu3 %v2989_v3 }
 0x3cf   :  { %v3103_v4 = vpop.eup %3102 }
 0x3d0   :  { %v403_v35 = vmul.f32 %v3103_v4, %v3759_v51  ;;  %v798_v37 = vpop.xlane.xlu2 %797  ;;  %v3105_v8 = vpop.eup %3104 }
 0x3d1   :  { %v596_v13 = vmul.f32 %v3105_v8, %v3752_v41  ;;  %v795_v19 = vpop.xlane.xlu0 %794  ;;  %v3835_v21 = vpop.eup %3106 }
 0x3d2   :  { %2810 = vmatmul.msk.f32.gmra.mxu3 %vm359_vm11, %v403_v35  ;;  %v802_v16 = vsel %vm359_vm11, %v3835_v21, 0.0 }
 0x3d8   :  { %v2992_v59 = vpop.permute.xlu2 %2991 }
 0x3d9   :  { %v2993_v17 = vunpack.i.l.bf16 %v2992_v59  ;;  %v2994_v63 = vunpack.i.h.bf16 %v2992_v59 }
 0x3da   :  { %2819 = vmatmul.msk.f32.vlgmr.msrb.gmra.mxu3 %vm359_vm11, %v596_v13 }
 0x3db   :  { %661 = vmatpush.msra.mxu0 %v2993_v17 }
 0x3dd   :  { %662 = vmatpush.msra.mxu0 %v2994_v63 }
 0x3e1   :  { %803 = vadd.xlane.f32.xlu0 %v802_v16  ;;  %v1123_v16 = vld [vmem:[%s4467_s5 + $0x10] sm:$0xff] }
 0x3e3   :  { %v2997_v51 = vpop.permute.xlu0 %2996 }
 0x3e4   :  { %v2998_v11 = vunpack.i.l.bf16 %v2997_v51  ;;  %v2999_v2 = vunpack.i.h.bf16 %v2997_v51  ;;  %v1122_v51 = vld [vmem:[%s4467_s5 + $0x8] sm:$0xff] }
 0x3e6   :  { %1052 = vmatpush.msrb.mxu3 %v2998_v11  ;;  %v1121_v11 = vld [vmem:[%s4467_s5] sm:$0xff] }
 0x3e8   :  { %1053 = vmatpush.msrb.mxu3 %v2999_v2 }
 0x3f4   :  { %v585_v41 = vpop.xlane.xlu1 %584 }
 0x3f5   :  { %3108 = vrcp.f32 %v585_v41 }
 0x3f6   :  { %3110 = vrcp.f32 %v795_v19 }
 0x3fb   :  { %v3109_v23 = vpop.eup %3108 }
 0x3fc   :  { %v588_v24 = vpop.xlane.xlu1 %587  ;;  %v597_v25 = vmul.f32 %v3109_v23, %v3781_v15  ;;  %v3111_v9 = vpop.eup %3110 }
 0x3fd   :  { %3112 = vrcp.f32 %v588_v24  ;;  %v809_v28 = vmul.f32 %v3111_v9, %v3765_v58 }
 0x3fe   :  { %2820 = vmatmul.msk.f32.gmra.mxu3 %vm359_vm11, %v597_v25  ;;  %3114 = vrcp.f32 %v798_v37 }
 0x403   :  { %v3113_v27 = vpop.eup %3112 }
 0x404   :  { %v598_v30 = vmul.f32 %v3113_v27, %v3786_v22  ;;  %v1008_v18 = vpop.xlane.xlu1 %1007  ;;  %v3115_v31 = vpop.eup %3114 }
 0x405   :  { %3116 = vrcp.f32 %v1008_v18  ;;  %v810_v32 = vmul.f32 %v3115_v31, %v3767_v60 }
 0x406   :  { %2821 = vmatmul.msk.f32.vlgmr.msra.gmra.mxu0 %vm359_vm11, %v598_v30  ;;  %2831 = vmatmul.msk.f32.vlgmr.msra.gmra.mxu3 %vm359_vm11, %v809_v28 }
 0x40b   :  { %v3117_v7 = vpop.eup %3116 }
 0x40c   :  { %v1022_v58 = vmul.f32 %v3117_v7, %v3792_v26  ;;  %v1014_v40 = vpop.xlane.xlu1 %1013 }
 0x40e   :  { %2832 = vmatmul.msk.f32.gmra.mxu3 %vm359_vm11, %v810_v32  ;;  %v591_v15 = vpop.xlane.xlu0 %590 }
 0x40f   :  { %3118 = vrcp.f32 %v591_v15 }
 0x411   :  { %v1011_v34 = vpop.xlane.xlu2 %1010 }
 0x412   :  { %3120 = vrcp.f32 %v1011_v34 }
 0x415   :  { %v3119_v14 = vpop.eup %3118 }
 0x416   :  { %2843 = vmatmul.msk.f32.vlgmr.msrb.gmra.mxu3 %vm359_vm11, %v1022_v58  ;;  %v599_v22 = vmul.f32 %v3119_v14, %v3801_v36  ;;  %v801_v60 = vpop.xlane.xlu0 %800  ;;  %v3053_v58 = vld [vmem:[#allocation12] ss:$0 sm:$0xff] }
 0x417   :  { %3122 = vrcp.f32 %v801_v60 }
 0x418   :  { %2822 = vmatmul.msk.f32.gmra.mxu0 %vm359_vm11, %v599_v22  ;;  %v3121_v38 = vpop.eup %3120 }
 0x419   :  { %v1023_v12 = vmul.f32 %v3121_v38, %v3807_v39  ;;  %v1017_v62 = vpop.xlane.xlu2 %1016 }
 0x41d   :  { %v3123_v44 = vpop.eup %3122 }
 0x41e   :  { %2844 = vmatmul.msk.f32.gmra.mxu3 %vm359_vm11, %v1023_v12  ;;  %v811_v47 = vmul.f32 %v3123_v44, %v3811_v42 }
 0x424   :  { %v3007_v46 = vpop.permute.xlu1 %3006 }
 0x425   :  { %v3008_v48 = vunpack.i.l.bf16 %v3007_v46  ;;  %v3009_v49 = vunpack.i.h.bf16 %v3007_v46 }
 0x429   :  { %v3002_v20 = vpop.permute.xlu0 %3001 }
 0x42a   :  { %v3003_v45 = vunpack.i.l.bf16 %v3002_v20  ;;  %v3004_v26 = vunpack.i.h.bf16 %v3002_v20 }
 0x42c   :  { %874 = vmatpush.msrb.mxu0 %v3003_v45 }
 0x42e   :  { %875 = vmatpush.msrb.mxu0 %v3004_v26 }
 0x42f   :  { %v433_v36 = vpop.f32.mrf.mxu0  ;;  %2833 = vmatmul.msk.f32.vlgmr.msrb.gmra.mxu0 %vm359_vm11, %v811_v47 }
 0x430   :  { %474 = vst.msk [vmem:[#allocation3] sm:$0xff] %vm286_vm10, %v433_v36  ;;  %1087 = vmatpush.msra.mxu0 %v3008_v48 }
 0x432   :  { %1088 = vmatpush.msra.mxu0 %v3009_v49 }
 0x437   :  { %v436_v39 = vpop.f32.mrf.mxu0 }
 0x438   :  { %475 = vst.msk [vmem:[#allocation3 + $0x8] sm:$0xff] %vm286_vm10, %v436_v39 }
 0x43e   :  { %v468_v50 = vpop.f32.mrf.mxu3 }
 0x43f   :  { %476 = vst.msk [vmem:[#allocation3 + $0x10] sm:$0xff] %vm286_vm10, %v468_v50 }
 0x454   :  { %v804_v52 = vpop.xlane.xlu0 %803 }
 0x455   :  { %3124 = vrcp.f32 %v804_v52  ;;  %v471_v53 = vpop.f32.mrf.mxu3 }
 0x456   :  { %477 = vst.msk [vmem:[#allocation3 + $0x18] sm:$0xff] %vm286_vm10, %v471_v53  ;;  %3126 = vrcp.f32 %v1014_v40 }
 0x457   :  { %3128 = vrcp.f32 %v1017_v62 }
 0x45b   :  { %v3125_v42 = vpop.eup %3124 }
 0x45c   :  { %v812_v61 = vmul.f32 %v3125_v42, %v3835_v21  ;;  %v3127_v0 = vpop.eup %3126  ;;  %v1124_v21 = vld [vmem:[%s4467_s5 + $0x18] sm:$0xff] }
 0x45d   :  { %v629_v29 = vpop.f32.mrf.mxu3  ;;  %v1024_v1 = vmul.f32 %v3127_v0, %v3798_v33  ;;  %v3129_v3 = vpop.eup %3128  ;;  %1153 = vmatpush.msra.mxu1 %v1124_v21 }
 0x45e   :  { %674 = vrot.lane.b32.xlu2 %v629_v29, %s3449_s29  ;;  %2834 = vmatmul.msk.f32.gmra.mxu0 %vm359_vm11, %v812_v61  ;;  %v1025_v4 = vmul.f32 %v3129_v3, %v3815_v43 }
 0x45f   :  { %1154 = vmatpush.msra.mxu1 %v1123_v16 }
 0x461   :  { %1155 = vmatpush.msra.mxu1 %v1122_v51 }
 0x463   :  { %1156 = vmatpush.msra.mxu1 %v1121_v11 }
 0x466   :  { %2845 = vmatmul.msk.f32.vlgmr.msra.gmra.mxu0 %vm359_vm11, %v1024_v1 }
 0x46e   :  { %2846 = vmatmul.msk.f32.gmra.mxu0 %vm359_vm11, %v1025_v4 }
 0x481   :  { %v632_v6 = vpop.f32.mrf.mxu3 }
 0x483   :  { %v664_v33 = vpop.f32.mrf.mxu0 }
 0x489   :  { %v842_v35 = vpop.f32.mrf.mxu3 }
 0x48a   :  { %887 = vrot.lane.b32.xlu1 %v842_v35, %s3444_s18 }
 0x491   :  { %v845_v37 = vpop.f32.mrf.mxu3 }
 0x492   :  { %676 = vrot.lane.b32.xlu1 %v632_v6, %s3449_s29 }
 0x495   :  { %v667_v43 = vpop.f32.mrf.mxu0 }
 0x499   :  { %v1055_v5 = vpop.f32.mrf.mxu3 }
 0x49a   :  { %889 = vrot.lane.b32.xlu1 %v845_v37, %s3444_s18  ;;  %1100 = vrot.lane.b32.xlu0 %v1055_v5, %s3465_s4 }
 0x4a1   :  { %v1058_v8 = vpop.f32.mrf.mxu3 }
 0x4a2   :  { %1102 = vrot.lane.b32.xlu2 %v1058_v8, %s3465_s4  ;;  %678 = vrot.lane.b32.xlu1 %v664_v33, %s3449_s29  ;;  %v1276_v8 = vld [vmem:[%s4469_s7 + $0x18] sm:$0xff] }
 0x4a3   :  { %1305 = vmatpush.msra.mxu2 %v1276_v8  ;;  %v1361_v8 = vld [vmem:[%s4471_s9 + $0x18] sm:$0xff] }
 0x4aa   :  { %680 = vrot.lane.b32.xlu1 %v667_v43, %s3449_s29  ;;  %v1275_v43 = vld [vmem:[%s4469_s7 + $0x10] sm:$0xff] }
 0x4ab   :  { %1306 = vmatpush.msra.mxu2 %v1275_v43  ;;  %v1360_v43 = vld [vmem:[%s4471_s9 + $0x10] sm:$0xff] }
 0x4ac   :  { %v877_v13 = vpop.f32.mrf.mxu0 }
 0x4ad   :  { %891 = vrot.lane.b32.xlu2 %v877_v13, %s3444_s18  ;;  %v1274_v13 = vld [vmem:[%s4469_s7 + $0x8] sm:$0xff] }
 0x4ae   :  { %1307 = vmatpush.msra.mxu2 %v1274_v13  ;;  %v1359_v13 = vld [vmem:[%s4471_s9 + $0x8] sm:$0xff] }
 0x4b8   :  { %v675_v59 = vpop.permute.xlu2 %674 }
 0x4b9   :  { %687 = vst.msk [vmem:[#allocation3] sm:$0xff] %vm686_vm12, %v675_v59  ;;  %v1273_v59 = vld [vmem:[%s4469_s7] sm:$0xff] }
 0x4ba   :  { %1308 = vmatpush.msra.mxu2 %v1273_v59  ;;  %v1358_v59 = vld [vmem:[%s4471_s9] sm:$0xff] }
 0x4db   :  { %v880_v17 = vpop.f32.mrf.mxu0 }
 0x4dc   :  { %893 = vrot.lane.b32.xlu2 %v880_v17, %s3444_s18 }
 0x4e3   :  { %v1090_v19 = vpop.f32.mrf.mxu0 }
 0x4e4   :  { %1104 = vrot.lane.b32.xlu0 %v1090_v19, %s3465_s4 }
 0x4eb   :  { %v1093_v63 = vpop.f32.mrf.mxu0 }
 0x4ec   :  { %1106 = vrot.lane.b32.xlu0 %v1093_v63, %s3465_s4 }
 0x4fc   :  { %v888_v2 = vpop.permute.xlu1 %887  ;;  %v1103_v25 = vpop.permute.xlu2 %1102 }
 0x4fd   :  { %900 = vst.msk [vmem:[#allocation3] sm:$0xff] %vm899_vm13, %v888_v2 }
 0x504   :  { %v677_v41 = vpop.permute.xlu1 %676 }
 0x505   :  { %688 = vst.msk [vmem:[#allocation3 + $0x8] sm:$0xff] %vm686_vm12, %v677_v41 }
 0x507   :  { %v892_v27 = vpop.permute.xlu2 %891 }
 0x50c   :  { %v890_v23 = vpop.permute.xlu1 %889  ;;  %v1101_v24 = vpop.permute.xlu0 %1100 }
 0x50d   :  { %901 = vst.msk [vmem:[#allocation3 + $0x8] sm:$0xff] %vm899_vm13, %v890_v23 }
 0x50e   :  { %1114 = vst.msk [vmem:[#allocation3 + $0x8] sm:$0xff] %vm1112_vm14, %v1103_v25 }
 0x50f   :  { %1113 = vst.msk [vmem:[#allocation3] sm:$0xff] %vm1112_vm14, %v1101_v24  ;;  %v1170_v24 = vld [vmem:[%s4473_s11] sm:$0x3] }
 0x514   :  { %v679_v9 = vpop.permute.xlu1 %678 }
 0x515   :  { %689 = vst.msk [vmem:[#allocation3 + $0x10] sm:$0xff] %vm686_vm12, %v679_v9  ;;  %v1118_v18 = vld [vmem:[#allocation3 + $0x8] sm:$0xff] }
 0x516   :  { %902 = vst.msk [vmem:[#allocation3 + $0x10] sm:$0xff] %vm899_vm13, %v892_v27  ;;  %v1117_v28 = vld [vmem:[#allocation3] sm:$0xff] }
 0x517   :  { %2847 = vmatmul.msk.f32.vlgmr.msra.gmra.mxu1 %vm156_vm0, %v1117_v28 }
 0x51c   :  { %v681_v30 = vpop.permute.xlu1 %680 }
 0x51d   :  { %690 = vst.msk [vmem:[#allocation3 + $0x18] sm:$0xff] %vm686_vm12, %v681_v30  ;;  %v1263_v30 = vperm.slane %v1170_v24, 0 }
 0x51f   :  { %2848 = vmatmul.msk.f32.gmra.mxu1 %vm156_vm0, %v1118_v18 }
 0x536   :  { %v894_v31 = vpop.permute.xlu2 %893 }
 0x537   :  { %903 = vst.msk [vmem:[#allocation3 + $0x18] sm:$0xff] %vm899_vm13, %v894_v31 }
 0x556   :  { %v1105_v32 = vpop.permute.xlu0 %1104 }
 0x557   :  { %1115 = vst.msk [vmem:[#allocation3 + $0x10] sm:$0xff] %vm1112_vm14, %v1105_v32 }
 0x55e   :  { %v1107_v15 = vpop.permute.xlu0 %1106  ;;  %v1119_v7 = vld [vmem:[#allocation3 + $0x10] sm:$0xff] }
 0x55f   :  { %1116 = vst.msk [vmem:[#allocation3 + $0x18] sm:$0xff] %vm1112_vm14, %v1107_v15  ;;  %2849 = vmatmul.msk.f32.gmra.mxu1 %vm156_vm0, %v1119_v7  ;;  %v1268_v15 = vperm.slane %v1170_v24, 1 }
 0x566   :  { %v1120_v34 = vld [vmem:[#allocation3 + $0x18] sm:$0xff] }
 0x567   :  { %2850 = vmatmul.msk.f32.gmra.mxu1 %vm156_vm0, %v1120_v34 }
 0x594   :  { %v1158_v14 = vpop.f32.mrf.mxu1 }
 0x595   :  { %v1159_v22 = vadd.f32 %v3053_v58, %v1158_v14 }
 0x597   :  { %v1171_v38 = vadd.f32 %v1159_v22, %v3596_v54 }
 0x599   :  { %v1175_v12 = vsel %vm156_vm0, %v1171_v38, 0.0 }
 0x59a   :  { %1176 = vadd.xlane.f32.xlu1 %v1175_v12 }
 0x59c   :  { %v1161_v60 = vpop.f32.mrf.mxu1 }
 0x59d   :  { %v1162_v40 = vadd.f32 %v3053_v58, %v1161_v60 }
 0x59f   :  { %v1172_v20 = vadd.f32 %v1162_v40, %v3600_v55 }
 0x5a1   :  { %v1178_v44 = vsel %vm156_vm0, %v1172_v20, 0.0 }
 0x5a2   :  { %1179 = vadd.xlane.f32.xlu2 %v1178_v44 }
 0x5dc   :  { %v1164_v45 = vpop.f32.mrf.mxu1 }
 0x5dd   :  { %v1165_v46 = vadd.f32 %v3053_v58, %v1164_v45 }
 0x5df   :  { %v1173_v26 = vadd.f32 %v1165_v46, %v3604_v56 }
 0x5e1   :  { %v1181_v47 = vsel %vm156_vm0, %v1173_v26, 0.0 }
 0x5e2   :  { %1182 = vadd.xlane.f32.xlu0 %v1181_v47 }
 0x5e4   :  { %v1167_v48 = vpop.f32.mrf.mxu1 }
 0x5e5   :  { %v1168_v36 = vadd.f32 %v3053_v58, %v1167_v48 }
 0x5e7   :  { %v1174_v54 = vadd.f32 %v1168_v36, %v3608_v57 }
 0x5e9   :  { %v1184_v49 = vsel %vm156_vm0, %v1174_v54, 0.0 }
 0x5ea   :  { %1185 = vadd.xlane.f32.xlu1 %v1184_v49 }
 0x60d   :  { %v1177_v39 = vpop.xlane.xlu1 %1176 }
 0x60e   :  { %v1187_v55 = vmul.f32 %v1177_v39, %v3574_v10 }
 0x610   :  { %v1191_v50 = vsub.f32 %v1171_v38, %v1187_v55 }
 0x612   :  { %v1195_v52 = vmul.f32 %v1191_v50, %v1191_v50 }
 0x614   :  { %v1199_v53 = vsel %vm156_vm0, %v1195_v52, 0.0 }
 0x615   :  { %1200 = vadd.xlane.f32.xlu2 %v1199_v53  ;;  %v1180_v42 = vpop.xlane.xlu2 %1179 }
 0x616   :  { %v1188_v56 = vmul.f32 %v1180_v42, %v3574_v10 }
 0x618   :  { %v1192_v61 = vsub.f32 %v1172_v20, %v1188_v56 }
 0x61a   :  { %v1196_v29 = vmul.f32 %v1192_v61, %v1192_v61 }
 0x61c   :  { %v1202_v62 = vsel %vm156_vm0, %v1196_v29, 0.0 }
 0x61d   :  { %1203 = vadd.xlane.f32.xlu0 %v1202_v62 }
 0x655   :  { %v1183_v57 = vpop.xlane.xlu0 %1182 }
 0x656   :  { %v1189_v0 = vmul.f32 %v1183_v57, %v3574_v10 }
 0x658   :  { %v3918_v1 = vsub.f32 %v1173_v26, %v1189_v0 }
 0x65a   :  { %v1197_v3 = vmul.f32 %v3918_v1, %v3918_v1 }
 0x65c   :  { %v1205_v4 = vsel %vm156_vm0, %v1197_v3, 0.0 }
 0x65d   :  { %v1186_v6 = vpop.xlane.xlu1 %1185  ;;  %1206 = vadd.xlane.f32.xlu1 %v1205_v4 }
 0x65e   :  { %v1190_v35 = vmul.f32 %v1186_v6, %v3574_v10 }
 0x660   :  { %v3924_v37 = vsub.f32 %v1174_v54, %v1190_v35 }
 0x662   :  { %v1198_v5 = vmul.f32 %v3924_v37, %v3924_v37 }
 0x664   :  { %v1208_v33 = vsel %vm156_vm0, %v1198_v5, 0.0  ;;  %v1364_v5 = vld [vmem:[%s4471_s9 + $0x30] sm:$0xff] }
 0x665   :  { %1209 = vadd.xlane.f32.xlu2 %v1208_v33  ;;  %v1362_v33 = vld [vmem:[%s4471_s9 + $0x20] sm:$0xff] }
 0x688   :  { %v1201_v17 = vpop.xlane.xlu2 %1200 }
 0x689   :  { %v1211_v19 = vmul.f32 %v1201_v17, %v3574_v10  ;;  %v3054_v17 = vld [vmem:[#allocation13] ss:$0 sm:$0xff] }
 0x68b   :  { %v1215_v63 = vadd.f32 1e-05, %v1211_v19 }
 0x68d   :  { %3130 = vrsqrt.f32 %v1215_v63  ;;  %vm1225_vm1 = vweird.f32 %v1215_v63 }
 0x690   :  { %v1204_v21 = vpop.xlane.xlu0 %1203 }
 0x691   :  { %v1212_v16 = vmul.f32 %v1204_v21, %v3574_v10 }
 0x693   :  { %v3131_v51 = vpop.eup %3130  ;;  %v1216_v11 = vadd.f32 1e-05, %v1212_v16 }
 0x694   :  { %v1220_v2 = vmul.f32 %v3131_v51, %v1215_v63  ;;  %vm1226_vm15 = vweird.f32 %v3131_v51 }
 0x695   :  { %3132 = vrsqrt.f32 %v1216_v11  ;;  %vm1227_vm2 = vmor %vm1225_vm1, %vm1226_vm15  ;;  %vm1235_vm4 = vweird.f32 %v1216_v11 }
 0x696   :  { %v1221_v41 = vmul.f32 %v3131_v51, %v1220_v2 }
 0x698   :  { %v1222_v23 = vmul.f32 0.5, %v1221_v41 }
 0x69a   :  { %v1223_v25 = vsub.f32 1.5, %v1222_v23 }
 0x69b   :  { %v3133_v9 = vpop.eup %3132 }
 0x69c   :  { %v1224_v27 = vmul.f32 %v3131_v51, %v1223_v25  ;;  %v1230_v28 = vmul.f32 %v3133_v9, %v1216_v11  ;;  %vm1236_vm3 = vweird.f32 %v3133_v9 }
 0x69d   :  { %vm1237_vm5 = vmor %vm1235_vm4, %vm1236_vm3 }
 0x69e   :  { %v1228_v18 = vsel %vm1227_vm2, %v3131_v51, %v1224_v27  ;;  %v1231_v31 = vmul.f32 %v3133_v9, %v1230_v28  ;;  %vm1370_vm2 = vcmask 523264  }
 0x69f   :  { %v1259_v32 = vmul.f32 %v1228_v18, %v1191_v50 }
 0x6a0   :  { %v1232_v7 = vmul.f32 0.5, %v1231_v31 }
 0x6a1   :  { %v1264_v34 = vmul.f32 %v1263_v30, %v1259_v32 }
 0x6a2   :  { %v1233_v58 = vsub.f32 1.5, %v1232_v7 }
 0x6a3   :  { %v3946_v14 = vadd.f32 %v1268_v15, %v1264_v34 }
 0x6a4   :  { %v1234_v22 = vmul.f32 %v3133_v9, %v1233_v58 }
 0x6a5   :  { %2851 = vmatmul.msk.f32.vlgmr.msra.gmra.mxu2 %vm156_vm0, %v3946_v14 }
 0x6a6   :  { %v1238_v38 = vsel %vm1237_vm5, %v3133_v9, %v1234_v22 }
 0x6a7   :  { %v1260_v12 = vmul.f32 %v1238_v38, %v1192_v61 }
 0x6a9   :  { %v1265_v60 = vmul.f32 %v1263_v30, %v1260_v12 }
 0x6ab   :  { %v3950_v40 = vadd.f32 %v1268_v15, %v1265_v60 }
 0x6ad   :  { %2852 = vmatmul.msk.f32.gmra.mxu2 %vm156_vm0, %v3950_v40 }
 0x6d0   :  { %v1207_v20 = vpop.xlane.xlu1 %1206 }
 0x6d1   :  { %v1213_v44 = vmul.f32 %v1207_v20, %v3574_v10 }
 0x6d3   :  { %v1217_v45 = vadd.f32 1e-05, %v1213_v44 }
 0x6d5   :  { %3134 = vrsqrt.f32 %v1217_v45  ;;  %vm1245_vm7 = vweird.f32 %v1217_v45 }
 0x6d8   :  { %v1210_v46 = vpop.xlane.xlu2 %1209 }
 0x6d9   :  { %v1214_v26 = vmul.f32 %v1210_v46, %v3574_v10 }
 0x6db   :  { %v3135_v47 = vpop.eup %3134  ;;  %v1218_v48 = vadd.f32 1e-05, %v1214_v26 }
 0x6dc   :  { %v1240_v36 = vmul.f32 %v3135_v47, %v1217_v45  ;;  %vm1246_vm6 = vweird.f32 %v3135_v47 }
 0x6dd   :  { %3136 = vrsqrt.f32 %v1218_v48  ;;  %vm1247_vm8 = vmor %vm1245_vm7, %vm1246_vm6  ;;  %vm1255_vm15 = vweird.f32 %v1218_v48 }
 0x6de   :  { %v1241_v54 = vmul.f32 %v3135_v47, %v1240_v36 }
 0x6e0   :  { %v1242_v49 = vmul.f32 0.5, %v1241_v54 }
 0x6e2   :  { %v1243_v39 = vsub.f32 1.5, %v1242_v49 }
 0x6e3   :  { %v3137_v55 = vpop.eup %3136 }
 0x6e4   :  { %v1244_v50 = vmul.f32 %v3135_v47, %v1243_v39  ;;  %v1250_v52 = vmul.f32 %v3137_v55, %v1218_v48  ;;  %vm1256_vm9 = vweird.f32 %v3137_v55 }
 0x6e5   :  { %vm1257_vm1 = vmor %vm1255_vm15, %vm1256_vm9 }
 0x6e6   :  { %v1248_v53 = vsel %vm1247_vm8, %v3135_v47, %v1244_v50  ;;  %v1251_v42 = vmul.f32 %v3137_v55, %v1250_v52 }
 0x6e7   :  { %v1261_v56 = vmul.f32 %v1248_v53, %v3918_v1  ;;  %v1365_v1 = vld [vmem:[%s4471_s9 + $0x38] sm:$0xff] }
 0x6e8   :  { %v1252_v61 = vmul.f32 0.5, %v1251_v42  ;;  %1391 = vmatpush.msra.mxu3 %v1365_v1 }
 0x6e9   :  { %v1266_v29 = vmul.f32 %v1263_v30, %v1261_v56 }
 0x6ea   :  { %v1253_v62 = vsub.f32 1.5, %v1252_v61  ;;  %1392 = vmatpush.msra.mxu3 %v1364_v5 }
 0x6eb   :  { %v3957_v57 = vadd.f32 %v1268_v15, %v1266_v29  ;;  %v3055_v29 = vld [vmem:[#allocation15] ss:$0 sm:$0xff] }
 0x6ec   :  { %v1254_v0 = vmul.f32 %v3137_v55, %v1253_v62 }
 0x6ed   :  { %2853 = vmatmul.msk.f32.gmra.mxu2 %vm156_vm0, %v3957_v57 }
 0x6ee   :  { %v1258_v3 = vsel %vm1257_vm1, %v3137_v55, %v1254_v0 }
 0x6ef   :  { %v1262_v4 = vmul.f32 %v1258_v3, %v3924_v37  ;;  %v1363_v37 = vld [vmem:[%s4471_s9 + $0x28] sm:$0xff] }
 0x6f0   :  { %1393 = vmatpush.msra.mxu3 %v1363_v37 }
 0x6f1   :  { %v1267_v6 = vmul.f32 %v1263_v30, %v1262_v4 }
 0x6f2   :  { %1394 = vmatpush.msra.mxu3 %v1362_v33 }
 0x6f3   :  { %v3962_v35 = vadd.f32 %v1268_v15, %v1267_v6 }
 0x6f4   :  { %1395 = vmatpush.msra.mxu3 %v1361_v8 }
 0x6f5   :  { %2854 = vmatmul.msk.f32.gmra.mxu2 %vm156_vm0, %v3962_v35 }
 0x6f6   :  { %1396 = vmatpush.msra.mxu3 %v1360_v43 }
 0x6f8   :  { %1397 = vmatpush.msra.mxu3 %v1359_v13 }
 0x6fa   :  { %1398 = vmatpush.msra.mxu3 %v1358_v59 }
 0x728   :  { %v1310_v19 = vpop.f32.mrf.mxu2 }
 0x729   :  { %v1311_v63 = vadd.f32 %v3054_v17, %v1310_v19 }
 0x72b   :  { %v1326_v21 = vmul.f32 0.044715, %v1311_v63  ;;  %v1322_v18 = vmul.f32 0.5, %v1311_v63 }
 0x72d   :  { %v1330_v16 = vmul.f32 %v1326_v21, %v1311_v63 }
 0x72f   :  { %v1334_v51 = vmul.f32 %v1330_v16, %v1311_v63 }
 0x730   :  { %v1313_v11 = vpop.f32.mrf.mxu2 }
 0x731   :  { %v1338_v2 = vadd.f32 %v1334_v51, %v1311_v63  ;;  %v1314_v41 = vadd.f32 %v3054_v17, %v1313_v11 }
 0x733   :  { %v1342_v23 = vmul.f32 0.7978846, %v1338_v2  ;;  %v1327_v24 = vmul.f32 0.044715, %v1314_v41  ;;  %v1323_v7 = vmul.f32 0.5, %v1314_v41 }
 0x735   :  { %3138 = vtanh.f32 %v1342_v23  ;;  %v1331_v25 = vmul.f32 %v1327_v24, %v1314_v41 }
 0x737   :  { %v1335_v9 = vmul.f32 %v1331_v25, %v1314_v41 }
 0x739   :  { %v1339_v27 = vadd.f32 %v1335_v9, %v1314_v41 }
 0x73b   :  { %v3139_v28 = vpop.eup %3138  ;;  %v1343_v30 = vmul.f32 0.7978846, %v1339_v27 }
 0x73c   :  { %v1350_v31 = vadd.f32 1.0, %v3139_v28 }
 0x73d   :  { %3140 = vtanh.f32 %v1343_v30 }
 0x73e   :  { %v1354_v32 = vmul.f32 %v1350_v31, %v1322_v18 }
 0x740   :  { %2855 = vmatmul.msk.f32.vlgmr.msra.gmra.mxu3 %vm1370_vm2, %v1354_v32 }
 0x743   :  { %v3141_v15 = vpop.eup %3140 }
 0x744   :  { %v1351_v34 = vadd.f32 1.0, %v3141_v15 }
 0x746   :  { %v1355_v58 = vmul.f32 %v1351_v34, %v1323_v7 }
 0x748   :  { %2856 = vmatmul.msk.f32.gmra.mxu3 %vm1370_vm2, %v1355_v58  ;;  %v2862_v58 = vld [vmem:[%s4465_s3 + $0x38] sm:$0xff] }
 0x749   :  { %1561 = vmatpush.msrb.mxu0 %v2862_v58 }
 0x770   :  { %v1316_v22 = vpop.f32.mrf.mxu2 }
 0x771   :  { %v1317_v38 = vadd.f32 %v3054_v17, %v1316_v22  ;;  %v2861_v22 = vld [vmem:[%s4465_s3 + $0x30] sm:$0xff] }
 0x772   :  { %1562 = vmatpush.msrb.mxu0 %v2861_v22 }
 0x773   :  { %v1328_v12 = vmul.f32 0.044715, %v1317_v38  ;;  %v1324_v55 = vmul.f32 0.5, %v1317_v38 }
 0x775   :  { %v1332_v60 = vmul.f32 %v1328_v12, %v1317_v38 }
 0x777   :  { %v1336_v20 = vmul.f32 %v1332_v60, %v1317_v38 }
 0x778   :  { %v1319_v44 = vpop.f32.mrf.mxu2 }
 0x779   :  { %v1320_v45 = vadd.f32 %v3054_v17, %v1319_v44  ;;  %v1340_v46 = vadd.f32 %v1336_v20, %v1317_v38  ;;  %v2860_v38 = vld [vmem:[%s4465_s3 + $0x28] sm:$0xff]  ;;  %v2859_v20 = vld [vmem:[%s4465_s3 + $0x20] sm:$0xff] }
 0x77a   :  { %1563 = vmatpush.msrb.mxu0 %v2860_v38 }
 0x77b   :  { %v1329_v26 = vmul.f32 0.044715, %v1320_v45  ;;  %v1344_v47 = vmul.f32 0.7978846, %v1340_v46  ;;  %v1325_v42 = vmul.f32 0.5, %v1320_v45 }
 0x77c   :  { %1564 = vmatpush.msrb.mxu0 %v2859_v20 }
 0x77d   :  { %3142 = vtanh.f32 %v1344_v47  ;;  %v1333_v48 = vmul.f32 %v1329_v26, %v1320_v45 }
 0x77f   :  { %v1337_v36 = vmul.f32 %v1333_v48, %v1320_v45  ;;  %v1412_v48 = vld [vmem:[%s4474_s12] sm:$0x3] }
 0x781   :  { %v1341_v54 = vadd.f32 %v1337_v36, %v1320_v45 }
 0x783   :  { %v3143_v49 = vpop.eup %3142  ;;  %v1345_v39 = vmul.f32 0.7978846, %v1341_v54 }
 0x784   :  { %v1352_v50 = vadd.f32 1.0, %v3143_v49 }
 0x785   :  { %3144 = vtanh.f32 %v1345_v39 }
 0x786   :  { %v1356_v52 = vmul.f32 %v1352_v50, %v1324_v55  ;;  %v1505_v55 = vperm.slane %v1412_v48, 0 }
 0x788   :  { %2857 = vmatmul.msk.f32.gmra.mxu3 %vm1370_vm2, %v1356_v52 }
 0x78b   :  { %v3145_v53 = vpop.eup %3144 }
 0x78c   :  { %v1353_v56 = vadd.f32 1.0, %v3145_v53  ;;  %v1510_v53 = vperm.slane %v1412_v48, 1 }
 0x78e   :  { %v1357_v61 = vmul.f32 %v1353_v56, %v1325_v42 }
 0x790   :  { %2858 = vmatmul.msk.f32.gmra.mxu3 %vm1370_vm2, %v1357_v61 }
 0x7c3   :  { %v1400_v62 = vpop.f32.mrf.mxu3 }
 0x7c4   :  { %v1401_v0 = vadd.f32 %v3055_v29, %v1400_v62 }
 0x7c6   :  { %v1413_v3 = vadd.f32 %v1401_v0, %v3946_v14 }
 0x7c8   :  { %v1417_v4 = vsel %vm156_vm0, %v1413_v3, 0.0 }
 0x7c9   :  { %1418 = vadd.xlane.f32.xlu0 %v1417_v4 }
 0x7cb   :  { %v1403_v6 = vpop.f32.mrf.mxu3 }
 0x7cc   :  { %v1404_v1 = vadd.f32 %v3055_v29, %v1403_v6 }
 0x7ce   :  { %v1414_v5 = vadd.f32 %v1404_v1, %v3950_v40 }
 0x7d0   :  { %v1420_v37 = vsel %vm156_vm0, %v1414_v5, 0.0 }
 0x7d1   :  { %1421 = vadd.xlane.f32.xlu1 %v1420_v37 }
 0x80b   :  { %v1406_v33 = vpop.f32.mrf.mxu3 }
 0x80c   :  { %v1407_v8 = vadd.f32 %v3055_v29, %v1406_v33 }
 0x80e   :  { %v1415_v43 = vadd.f32 %v1407_v8, %v3957_v57 }
 0x810   :  { %v1423_v13 = vsel %vm156_vm0, %v1415_v43, 0.0 }
 0x811   :  { %1424 = vadd.xlane.f32.xlu2 %v1423_v13 }
 0x813   :  { %v1409_v59 = vpop.f32.mrf.mxu3 }
 0x814   :  { %v1410_v17 = vadd.f32 %v3055_v29, %v1409_v59 }
 0x816   :  { %v1416_v14 = vadd.f32 %v1410_v17, %v3962_v35 }
 0x818   :  { %v1426_v19 = vsel %vm156_vm0, %v1416_v14, 0.0 }
 0x819   :  { %1427 = vadd.xlane.f32.xlu0 %v1426_v19 }
 0x83c   :  { %v1419_v63 = vpop.xlane.xlu0 %1418 }
 0x83d   :  { %v1429_v40 = vmul.f32 %v1419_v63, %v3574_v10 }
 0x83f   :  { %v1433_v21 = vsub.f32 %v1413_v3, %v1429_v40 }
 0x841   :  { %v1437_v16 = vmul.f32 %v1433_v21, %v1433_v21 }
 0x843   :  { %v1441_v51 = vsel %vm156_vm0, %v1437_v16, 0.0 }
 0x844   :  { %v1422_v11 = vpop.xlane.xlu1 %1421  ;;  %1442 = vadd.xlane.f32.xlu1 %v1441_v51 }
 0x845   :  { %v1430_v57 = vmul.f32 %v1422_v11, %v3574_v10 }
 0x847   :  { %v1434_v2 = vsub.f32 %v1414_v5, %v1430_v57  ;;  %v1520_v5 = vld [vmem:[#allocation9 + $0x8] sm:$0xff] }
 0x849   :  { %v1438_v41 = vmul.f32 %v1434_v2, %v1434_v2 }
 0x84b   :  { %v1444_v23 = vsel %vm156_vm0, %v1438_v41, 0.0 }
 0x84c   :  { %1445 = vadd.xlane.f32.xlu2 %v1444_v23 }
 0x884   :  { %v1425_v35 = vpop.xlane.xlu2 %1424 }
 0x885   :  { %v1431_v24 = vmul.f32 %v1425_v35, %v3574_v10 }
 0x887   :  { %v4007_v25 = vsub.f32 %v1415_v43, %v1431_v24 }
 0x889   :  { %v1439_v9 = vmul.f32 %v4007_v25, %v4007_v25 }
 0x88b   :  { %v1447_v27 = vsel %vm156_vm0, %v1439_v9, 0.0 }
 0x88c   :  { %v1428_v28 = vpop.xlane.xlu0 %1427  ;;  %1448 = vadd.xlane.f32.xlu0 %v1447_v27 }
 0x88d   :  { %v1432_v30 = vmul.f32 %v1428_v28, %v3574_v10 }
 0x88f   :  { %v4013_v18 = vsub.f32 %v1416_v14, %v1432_v30 }
 0x891   :  { %v1440_v31 = vmul.f32 %v4013_v18, %v4013_v18 }
 0x893   :  { %v1450_v32 = vsel %vm156_vm0, %v1440_v31, 0.0 }
 0x894   :  { %1451 = vadd.xlane.f32.xlu1 %v1450_v32 }
 0x8b7   :  { %v1443_v15 = vpop.xlane.xlu1 %1442 }
 0x8b8   :  { %v1453_v7 = vmul.f32 %v1443_v15, %v3574_v10 }
 0x8ba   :  { %v1457_v34 = vadd.f32 1e-05, %v1453_v7 }
 0x8bc   :  { %3146 = vrsqrt.f32 %v1457_v34  ;;  %vm1467_vm4 = vweird.f32 %v1457_v34 }
 0x8bf   :  { %v1446_v12 = vpop.xlane.xlu2 %1445 }
 0x8c0   :  { %v1454_v60 = vmul.f32 %v1446_v12, %v3574_v10 }
 0x8c2   :  { %v3147_v44 = vpop.eup %3146  ;;  %v1458_v45 = vadd.f32 1e-05, %v1454_v60 }
 0x8c3   :  { %v1462_v46 = vmul.f32 %v3147_v44, %v1457_v34  ;;  %vm1468_vm3 = vweird.f32 %v3147_v44  ;;  %v3056_v34 = vld [vmem:[#allocation10 + $0x1] ss:$0 sm:$0xff] }
 0x8c4   :  { %3148 = vrsqrt.f32 %v1458_v45  ;;  %vm1469_vm5 = vmor %vm1467_vm4, %vm1468_vm3  ;;  %vm1477_vm7 = vweird.f32 %v1458_v45 }
 0x8c5   :  { %v1463_v26 = vmul.f32 %v3147_v44, %v1462_v46 }
 0x8c7   :  { %v1464_v47 = vmul.f32 0.5, %v1463_v26 }
 0x8c9   :  { %v1465_v36 = vsub.f32 1.5, %v1464_v47 }
 0x8ca   :  { %v3149_v54 = vpop.eup %3148 }
 0x8cb   :  { %v1466_v49 = vmul.f32 %v3147_v44, %v1465_v36  ;;  %v1472_v39 = vmul.f32 %v3149_v54, %v1458_v45  ;;  %vm1478_vm6 = vweird.f32 %v3149_v54 }
 0x8cc   :  { %vm1479_vm8 = vmor %vm1477_vm7, %vm1478_vm6 }
 0x8cd   :  { %v1470_v50 = vsel %vm1469_vm5, %v3147_v44, %v1466_v49  ;;  %v1473_v52 = vmul.f32 %v3149_v54, %v1472_v39 }
 0x8ce   :  { %v1501_v42 = vmul.f32 %v1470_v50, %v1433_v21 }
 0x8cf   :  { %v1474_v56 = vmul.f32 0.5, %v1473_v52 }
 0x8d0   :  { %v1506_v61 = vmul.f32 %v1505_v55, %v1501_v42 }
 0x8d1   :  { %v1475_v29 = vsub.f32 1.5, %v1474_v56 }
 0x8d2   :  { %v1511_v62 = vadd.f32 %v1510_v53, %v1506_v61 }
 0x8d3   :  { %v1476_v0 = vmul.f32 %v3149_v54, %v1475_v29 }
 0x8d4   :  { %1515 = vst.msk [vmem:[#allocation2] sm:$0xff] %vm156_vm0, %v1511_v62 }
 0x8d5   :  { %v1480_v3 = vsel %vm1479_vm8, %v3149_v54, %v1476_v0 }
 0x8d6   :  { %v1502_v4 = vmul.f32 %v1480_v3, %v1434_v2 }
 0x8d8   :  { %v1507_v6 = vmul.f32 %v1505_v55, %v1502_v4 }
 0x8da   :  { %v1512_v1 = vadd.f32 %v1510_v53, %v1507_v6 }
 0x8dc   :  { %1516 = vst.msk [vmem:[#allocation2 + $0x8] sm:$0xff] %vm156_vm0, %v1512_v1 }
 0x8dd   :  { %1521 = vst.msk [vmem:[#allocation2 + $0x1] sm:$0xff] %vm156_vm0, %v1520_v5 }
 0x8e4   :  { %v1523_v37 = vld [vmem:[#allocation2] sm:$0xff]  ;;  %v1524_v33 = vld [vmem:[#allocation2 + $0x8] sm:$0xff] }
 0x8e5   :  { %2863 = vmatmul.msk.f32.vlgmr.msrb.gmra.mxu0 %vm156_vm0, %v1523_v37 }
 0x8ed   :  { %2864 = vmatmul.msk.f32.gmra.mxu0 %vm156_vm0, %v1524_v33 }
 0x8ff   :  { %v1449_v8 = vpop.xlane.xlu0 %1448 }
 0x900   :  { %v1455_v43 = vmul.f32 %v1449_v8, %v3574_v10 }
 0x902   :  { %v1459_v13 = vadd.f32 1e-05, %v1455_v43 }
 0x904   :  { %3150 = vrsqrt.f32 %v1459_v13  ;;  %vm1487_vm15 = vweird.f32 %v1459_v13 }
 0x907   :  { %v1452_v59 = vpop.xlane.xlu1 %1451 }
 0x908   :  { %v1456_v17 = vmul.f32 %v1452_v59, %v3574_v10 }
 0x90a   :  { %v3151_v14 = vpop.eup %3150  ;;  %v1460_v19 = vadd.f32 1e-05, %v1456_v17 }
 0x90b   :  { %v1482_v63 = vmul.f32 %v3151_v14, %v1459_v13  ;;  %vm1488_vm9 = vweird.f32 %v3151_v14 }
 0x90c   :  { %3152 = vrsqrt.f32 %v1460_v19  ;;  %vm1489_vm1 = vmor %vm1487_vm15, %vm1488_vm9  ;;  %vm1497_vm4 = vweird.f32 %v1460_v19 }
 0x90d   :  { %v1483_v40 = vmul.f32 %v3151_v14, %v1482_v63 }
 0x90f   :  { %v1484_v21 = vmul.f32 0.5, %v1483_v40 }
 0x911   :  { %v1485_v16 = vsub.f32 1.5, %v1484_v21 }
 0x912   :  { %v3153_v51 = vpop.eup %3152 }
 0x913   :  { %v1486_v11 = vmul.f32 %v3151_v14, %v1485_v16  ;;  %v1492_v57 = vmul.f32 %v3153_v51, %v1460_v19  ;;  %vm1498_vm3 = vweird.f32 %v3153_v51 }
 0x914   :  { %vm1499_vm5 = vmor %vm1497_vm4, %vm1498_vm3 }
 0x915   :  { %v1490_v2 = vsel %vm1489_vm1, %v3151_v14, %v1486_v11  ;;  %v1493_v41 = vmul.f32 %v3153_v51, %v1492_v57 }
 0x916   :  { %v1503_v23 = vmul.f32 %v1490_v2, %v4007_v25 }
 0x917   :  { %v1494_v35 = vmul.f32 0.5, %v1493_v41 }
 0x918   :  { %v1508_v24 = vmul.f32 %v1505_v55, %v1503_v23 }
 0x919   :  { %v1495_v9 = vsub.f32 1.5, %v1494_v35 }
 0x91a   :  { %v1513_v27 = vadd.f32 %v1510_v53, %v1508_v24 }
 0x91b   :  { %v1496_v28 = vmul.f32 %v3153_v51, %v1495_v9 }
 0x91c   :  { %1517 = vst.msk [vmem:[#allocation2 + $0x10] sm:$0xff] %vm156_vm0, %v1513_v27 }
 0x91d   :  { %v1500_v30 = vsel %vm1499_vm5, %v3153_v51, %v1496_v28 }
 0x91e   :  { %v1504_v31 = vmul.f32 %v1500_v30, %v4013_v18 }
 0x920   :  { %v1509_v32 = vmul.f32 %v1505_v55, %v1504_v31 }
 0x922   :  { %v1514_v15 = vadd.f32 %v1510_v53, %v1509_v32 }
 0x924   :  { %1518 = vst.msk [vmem:[#allocation2 + $0x18] sm:$0xff] %vm156_vm0, %v1514_v15 }
 0x925   :  { %1522 = vst.msk [vmem:[#allocation2 + $0x11] sm:$0xff] %vm156_vm0, %v1520_v5 }
 0x92c   :  { %v4047_v25 = vld [vmem:[#allocation2 + $0x10] sm:$0xff]  ;;  %v4051_v7 = vld [vmem:[#allocation2 + $0x18] sm:$0xff] }
 0x92d   :  { %2865 = vmatmul.msk.f32.gmra.mxu0 %vm156_vm0, %v4047_v25 }
 0x935   :  { %2866 = vmatmul.msk.f32.gmra.mxu0 %vm156_vm0, %v4051_v7 }
 0x962   :  { %v1566_v58 = vpop.f32.mrf.mxu0 }
 0x963   :  { %v1567_v22 = vadd.f32 %v3056_v34, %v1566_v58 }
 0x965   :  { %1584 = vrot.lane.b32.xlu0 %v1567_v22, %s3454_s30  ;;  %v1578_v12 = vmul.f32 0.35355338, %v1567_v22 }
 0x96a   :  { %v1569_v18 = vpop.f32.mrf.mxu0 }
 0x96b   :  { %v1570_v38 = vadd.f32 %v3056_v34, %v1569_v18 }
 0x96d   :  { %1586 = vrot.lane.b32.xlu2 %v1570_v38, %s3454_s30  ;;  %1782 = vrot.lane.b32.xlu0 %v1567_v22, %s3457_s16  ;;  %v1579_v26 = vmul.f32 0.35355338, %v1570_v38  ;;  %v4086_v39 = vpack.i.bf16 %v1567_v22, %v1570_v38 }
 0x975   :  { %1784 = vrot.lane.b32.xlu0 %v1570_v38, %s3457_s16  ;;  %1778 = vrot.lane.b32.xlu2 %v1578_v12, %s3456_s15 }
 0x97d   :  { %1994 = vrot.lane.b32.xlu0 %v1567_v22, %s3455_s14 }
 0x9aa   :  { %v1572_v60 = vpop.f32.mrf.mxu0 }
 0x9ab   :  { %v1573_v20 = vadd.f32 %v3056_v34, %v1572_v60 }
 0x9ad   :  { %1623 = vrot.lane.b32.xlu2 %v1573_v20, %s3454_s30  ;;  %v1580_v47 = vmul.f32 0.35355338, %v1573_v20 }
 0x9b2   :  { %v1575_v44 = vpop.f32.mrf.mxu0 }
 0x9b3   :  { %v1576_v45 = vadd.f32 %v3056_v34, %v1575_v44 }
 0x9b5   :  { %1625 = vrot.lane.b32.xlu1 %v1576_v45, %s3454_s30  ;;  %1823 = vrot.lane.b32.xlu0 %v1576_v45, %s3457_s16  ;;  %v4064_v46 = vpack.i.bf16 %v1573_v20, %v1576_v45  ;;  %v1581_v48 = vmul.f32 0.35355338, %v1576_v45 }
 0x9b6   :  { %1996 = vrot.lane.b32.xlu2 %v1570_v38, %s3455_s14 }
 0x9bd   :  { %1780 = vrot.lane.b32.xlu1 %v1579_v26, %s3456_s15  ;;  %2208 = vrot.lane.b32.xlu0 %v1570_v38, %s3459_s17 }
 0x9be   :  { %1817 = vrot.lane.b32.xlu2 %v1580_v47, %s3456_s15 }
 0x9c5   :  { %1821 = vrot.lane.b32.xlu1 %v1573_v20, %s3457_s16  ;;  %1819 = vrot.lane.b32.xlu0 %v1581_v48, %s3456_s15 }
 0x9c6   :  { %1992 = vrot.lane.b32.xlu2 %v1579_v26, %s3458_s0 }
 0x9c7   :  { %v1587_v36 = vpop.permute.xlu2 %1586 }
 0x9c8   :  { %2867 = vmatpush.xpose.msk.msrb.mxu1 %vm286_vm10, %v1587_v36 }
 0x9cd   :  { %2029 = vrot.lane.b32.xlu0 %v1580_v47, %s3458_s0  ;;  %1990 = vrot.lane.b32.xlu1 %v1578_v12, %s3458_s0 }
 0x9ce   :  { %2033 = vrot.lane.b32.xlu2 %v1573_v20, %s3455_s14 }
 0x9cf   :  { %v1779_v50 = vpop.permute.xlu2 %1778 }
 0x9d5   :  { %2204 = vrot.lane.b32.xlu0 %v1579_v26, %s3460_s1  ;;  %2035 = vrot.lane.b32.xlu1 %v1576_v45, %s3455_s14 }
 0x9d6   :  { %2202 = vrot.lane.b32.xlu2 %v1578_v12, %s3460_s1 }
 0x9d7   :  { %v1585_v54 = vpop.permute.xlu0 %1584 }
 0x9d8   :  { %2868 = vmatpush.xpose.msk.msrb.mxu1 %vm286_vm10, %v1585_v54 }
 0x9db   :  { %2869 = vmatmul.msk.f32.vlgmr.msrb.gmra.mxu1 %vm286_vm10, %v1578_v12 }
 0x9dd   :  { %2241 = vrot.lane.b32.xlu0 %v1580_v47, %s3460_s1  ;;  %2206 = vrot.lane.b32.xlu1 %v1567_v22, %s3459_s17 }
 0x9de   :  { %2247 = vrot.lane.b32.xlu2 %v1576_v45, %s3459_s17 }
 0x9df   :  { %v1783_v49 = vpop.permute.xlu0 %1782 }
 0x9e3   :  { %2870 = vmatmul.msk.f32.gmra.mxu1 %vm286_vm10, %v1579_v26 }
 0x9e5   :  { %3011 = vrot.lane.b32.xlu0 %v4086_v39, %s3461_s20  ;;  %2031 = vrot.lane.b32.xlu1 %v1581_v48, %s3458_s0  ;;  %s3466_s0 = smov [#allocation16]  }
 0x9e6   :  { %3016 = vrot.lane.b32.xlu2 %v4086_v39, %s3462_s21 }
 0x9e7   :  { %v1785_v55 = vpop.permute.xlu0 %1784 }
 0x9e8   :  { %2879 = vmatpush.xpose.msk.msra.mxu1 %vm286_vm10, %v1785_v55 }
 0x9ec   :  { %2880 = vmatpush.xpose.msk.msra.mxu1 %vm286_vm10, %v1783_v49 }
 0x9ed   :  { %3026 = vrot.lane.b32.xlu0 %v4086_v39, %s3463_s22  ;;  %2245 = vrot.lane.b32.xlu1 %v1573_v20, %s3459_s17 }
 0x9ef   :  { %2881 = vmatmul.msk.f32.vlgmr.msra.gmra.mxu1 %vm286_vm10, %v1779_v50  ;;  %v1995_v42 = vpop.permute.xlu0 %1994 }
 0x9f5   :  { %3021 = vrot.lane.b32.xlu1 %v4064_v46, %s3461_s20 }
 0x9fd   :  { %2243 = vrot.lane.b32.xlu1 %v1581_v48, %s3460_s1 }
 0xa07   :  { %v1624_v52 = vpop.permute.xlu2 %1623 }
 0xa10   :  { %v1997_v53 = vpop.permute.xlu2 %1996 }
 0xa11   :  { %2891 = vmatpush.xpose.msk.msrb.mxu1 %vm286_vm10, %v1997_v53 }
 0xa15   :  { %2892 = vmatpush.xpose.msk.msrb.mxu1 %vm286_vm10, %v1995_v42 }
 0xa18   :  { %v1818_v56 = vpop.permute.xlu2 %1817 }
 0xa20   :  { %v1993_v62 = vpop.permute.xlu2 %1992 }
 0xa27   :  { %v1626_v61 = vpop.permute.xlu1 %1625  ;;  %v1824_v29 = vpop.permute.xlu0 %1823 }
 0xa28   :  { %2871 = vmatpush.xpose.msk.msrb.mxu2 %vm286_vm10, %v1626_v61  ;;  %v2034_v1 = vpop.permute.xlu2 %2033 }
 0xa2c   :  { %2872 = vmatpush.xpose.msk.msrb.mxu2 %vm286_vm10, %v1624_v52 }
 0xa2f   :  { %v1781_v0 = vpop.permute.xlu1 %1780  ;;  %v2209_v3 = vpop.permute.xlu0 %2208  ;;  %2873 = vmatmul.msk.f32.vlgmr.msrb.gmra.mxu2 %vm286_vm10, %v1580_v47 }
 0xa30   :  { %2883 = vmatpush.xpose.msk.msra.mxu2 %vm286_vm10, %v1824_v29  ;;  %2882 = vmatmul.msk.f32.gmra.mxu1 %vm286_vm10, %v1781_v0  ;;  %v2203_v33 = vpop.permute.xlu2 %2202 }
 0xa31   :  { %2903 = vmatpush.xpose.msk.msra.mxu1 %vm286_vm10, %v2209_v3 }
 0xa37   :  { %v1822_v4 = vpop.permute.xlu1 %1821  ;;  %v1820_v6 = vpop.permute.xlu0 %1819  ;;  %2874 = vmatmul.msk.f32.gmra.mxu2 %vm286_vm10, %v1581_v48 }
 0xa38   :  { %2884 = vmatpush.xpose.msk.msra.mxu2 %vm286_vm10, %v1822_v4  ;;  %v2248_v13 = vpop.permute.xlu2 %2247 }
 0xa3f   :  { %v2030_v5 = vpop.permute.xlu0 %2029  ;;  %v1991_v37 = vpop.permute.xlu1 %1990  ;;  %2885 = vmatmul.msk.f32.vlgmr.msra.gmra.mxu2 %vm286_vm10, %v1818_v56 }
 0xa40   :  { %2893 = vmatmul.msk.f32.vlgmr.msrb.gmra.mxu1 %vm286_vm10, %v1991_v37  ;;  %v3017_v63 = vpop.permute.xlu2 %3016 }
 0xa41   :  { %v3018_v11 = vunpack.i.l.bf16 %v3017_v63  ;;  %v3019_v57 = vunpack.i.h.bf16 %v3017_v63 }
 0xa47   :  { %v2205_v8 = vpop.permute.xlu0 %2204  ;;  %v2036_v43 = vpop.permute.xlu1 %2035  ;;  %2886 = vmatmul.msk.f32.gmra.mxu2 %vm286_vm10, %v1820_v6 }
 0xa48   :  { %2894 = vmatmul.msk.f32.gmra.mxu1 %vm286_vm10, %v1993_v62  ;;  %2895 = vmatpush.xpose.msk.msrb.mxu2 %vm286_vm10, %v2036_v43 }
 0xa4c   :  { %2896 = vmatpush.xpose.msk.msrb.mxu2 %vm286_vm10, %v2034_v1 }
 0xa4f   :  { %v2242_v59 = vpop.permute.xlu0 %2241  ;;  %v2207_v17 = vpop.permute.xlu1 %2206  ;;  %2897 = vmatmul.msk.f32.vlgmr.msrb.gmra.mxu2 %vm286_vm10, %v2030_v5 }
 0xa50   :  { %2907 = vmatpush.xpose.msk.msra.mxu2 %vm286_vm10, %v2248_v13  ;;  %2904 = vmatpush.xpose.msk.msra.mxu1 %vm286_vm10, %v2207_v17 }
 0xa53   :  { %2905 = vmatmul.msk.f32.vlgmr.msra.gmra.mxu1 %vm286_vm10, %v2203_v33 }
 0xa57   :  { %v3012_v14 = vpop.permute.xlu0 %3011  ;;  %v2032_v19 = vpop.permute.xlu1 %2031 }
 0xa58   :  { %v4122_v40 = vpop.f32.mrf.mxu1  ;;  %v3013_v21 = vunpack.i.l.bf16 %v3012_v14  ;;  %2898 = vmatmul.msk.f32.gmra.mxu2 %vm286_vm10, %v2032_v19  ;;  %v3014_v51 = vunpack.i.h.bf16 %v3012_v14 }
 0xa59   :  { %v1660_v16 = vsel %vm359_vm11, %v4122_v40, -inf }
 0xa5a   :  { %1661 = vmax.xlane.f32.xlu2 %v1660_v16  ;;  %1730 = vmatpush.msrb.mxu3 %v3013_v21 }
 0xa5b   :  { %2906 = vmatmul.msk.f32.gmra.mxu1 %vm286_vm10, %v2205_v8 }
 0xa5c   :  { %1731 = vmatpush.msrb.mxu3 %v3014_v51 }
 0xa5e   :  { %1926 = vmatpush.msra.mxu3 %v3018_v11 }
 0xa5f   :  { %v2246_v2 = vpop.permute.xlu1 %2245  ;;  %v4171_v55 = vpop.permute.xlu0 %3026 }
 0xa60   :  { %1927 = vmatpush.msra.mxu3 %v3019_v57  ;;  %v4128_v41 = vpop.f32.mrf.mxu1  ;;  %2908 = vmatpush.xpose.msk.msra.mxu2 %vm286_vm10, %v2246_v2 }
 0xa61   :  { %v1663_v23 = vsel %vm359_vm11, %v4128_v41, -inf }
 0xa62   :  { %1664 = vmax.xlane.f32.xlu1 %v1663_v23 }
 0xa63   :  { %2909 = vmatmul.msk.f32.vlgmr.msra.gmra.mxu2 %vm286_vm10, %v2242_v59 }
 0xa67   :  { %v3022_v35 = vpop.permute.xlu1 %3021 }
 0xa68   :  { %v3023_v24 = vunpack.i.l.bf16 %v3022_v35  ;;  %v3024_v9 = vunpack.i.h.bf16 %v3022_v35 }
 0xa6a   :  { %1765 = vmatpush.msra.mxu0 %v3023_v24 }
 0xa6c   :  { %v1811_v27 = vpop.f32.mrf.mxu1  ;;  %1766 = vmatpush.msra.mxu0 %v3024_v9 }
 0xa6d   :  { %v1856_v28 = vsel %vm359_vm11, %v1811_v27, -inf }
 0xa6e   :  { %1857 = vmax.xlane.f32.xlu0 %v1856_v28 }
 0xa6f   :  { %v2244_v30 = vpop.permute.xlu1 %2243 }
 0xa70   :  { %2910 = vmatmul.msk.f32.gmra.mxu2 %vm286_vm10, %v2244_v30 }
 0xaad   :  { %v4137_v15 = vpop.f32.mrf.mxu1 }
 0xaae   :  { %v1859_v22 = vsel %vm359_vm11, %v4137_v15, -inf }
 0xab2   :  { %v1654_v31 = vpop.f32.mrf.mxu2 }
 0xab3   :  { %v1666_v32 = vsel %vm359_vm11, %v1654_v31, -inf }
 0xab4   :  { %1667 = vmax.xlane.f32.xlu2 %v1666_v32 }
 0xaba   :  { %v4139_v34 = vpop.f32.mrf.mxu2 }
 0xabb   :  { %v1669_v58 = vsel %vm359_vm11, %v4139_v34, -inf }
 0xabc   :  { %1670 = vmax.xlane.f32.xlu0 %v1669_v58  ;;  %1860 = vmax.xlane.f32.xlu2 %v1859_v22 }
 0xabd   :  { %v4145_v18 = vpop.f32.mrf.mxu1 }
 0xabe   :  { %v2068_v60 = vsel %vm359_vm11, %v4145_v18, -inf }
 0xac2   :  { %v4147_v38 = vpop.f32.mrf.mxu2 }
 0xac3   :  { %v1862_v12 = vsel %vm359_vm11, %v4147_v38, -inf }
 0xac4   :  { %1863 = vmax.xlane.f32.xlu0 %v1862_v12  ;;  %2069 = vmax.xlane.f32.xlu2 %v2068_v60 }
 0xac5   :  { %v4153_v20 = vpop.f32.mrf.mxu1 }
 0xac6   :  { %v2071_v26 = vsel %vm359_vm11, %v4153_v20, -inf }
 0xaca   :  { %v4155_v44 = vpop.f32.mrf.mxu2 }
 0xacb   :  { %v1865_v45 = vsel %vm359_vm11, %v4155_v44, -inf }
 0xacc   :  { %1866 = vmax.xlane.f32.xlu0 %v1865_v45  ;;  %2072 = vmax.xlane.f32.xlu2 %v2071_v26 }
 0xacd   :  { %v1662_v52 = vpop.xlane.xlu2 %1661 }
 0xace   :  { %v1672_v42 = vsub.f32 %v4122_v40, %v1662_v52 }
 0xad0   :  { %v4161_v47 = vpop.f32.mrf.mxu1  ;;  %v1676_v62 = vmul.f32 1.442695, %v1672_v42 }
 0xad1   :  { %v2280_v48 = vsel %vm359_vm11, %v4161_v47, -inf }
 0xad2   :  { %v4165_v36 = vpop.f32.mrf.mxu2  ;;  %2281 = vmax.xlane.f32.xlu1 %v2280_v48 }
 0xad3   :  { %v2074_v54 = vsel %vm359_vm11, %v4165_v36, -inf }
 0xad4   :  { %2075 = vmax.xlane.f32.xlu0 %v2074_v54 }
 0xad5   :  { %v1665_v3 = vpop.xlane.xlu1 %1664 }
 0xad6   :  { %v1673_v6 = vsub.f32 %v4128_v41, %v1665_v3 }
 0xad8   :  { %v4169_v49 = vpop.f32.mrf.mxu1  ;;  %v1678_v37 = vmul.f32 1.442695, %v1673_v6 }
 0xad9   :  { %v2283_v50 = vsel %vm359_vm11, %v4169_v49, -inf }
 0xada   :  { %2284 = vmax.xlane.f32.xlu2 %v2283_v50 }
 0xadb   :  { %v4175_v53 = vpop.f32.mrf.mxu2 }
 0xadc   :  { %v2077_v61 = vsel %vm359_vm11, %v4175_v53, -inf }
 0xae1   :  { %v1858_v56 = vpop.xlane.xlu0 %1857 }
 0xae2   :  { %v1868_v29 = vsub.f32 %v1811_v27, %v1858_v56  ;;  %2078 = vmax.xlane.f32.xlu2 %v2077_v61 }
 0xae4   :  { %v1872_v0 = vmul.f32 1.442695, %v1868_v29 }
 0xae6   :  { %3154 = vpow2.f32 %v1872_v0  ;;  %v4180_v4 = vpop.f32.mrf.mxu2 }
 0xae7   :  { %3156 = vpow2.f32 %v1676_v62  ;;  %v2286_v1 = vsel %vm359_vm11, %v4180_v4, -inf }
 0xae8   :  { %3158 = vpow2.f32 %v1678_v37 }
 0xaea   :  { %2287 = vmax.xlane.f32.xlu2 %v2286_v1 }
 0xaec   :  { %v4185_v5 = vpop.eup %3154 }
 0xaed   :  { %v1880_v33 = vsel %vm359_vm11, %v4185_v5, 0.0  ;;  %v4189_v8 = vpop.eup %3156 }
 0xaee   :  { %1881 = vadd.xlane.f32.xlu0 %v1880_v33  ;;  %v1684_v43 = vsel %vm359_vm11, %v4189_v8, 0.0  ;;  %v4193_v13 = vpop.eup %3158 }
 0xaef   :  { %v1687_v59 = vsel %vm359_vm11, %v4193_v13, 0.0 }
 0xaf2   :  { %1685 = vadd.xlane.f32.xlu2 %v1684_v43 }
 0xafa   :  { %1688 = vadd.xlane.f32.xlu2 %v1687_v59 }
 0xb12   :  { %3031 = vrot.lane.b32.xlu2 %v4064_v46, %s3462_s21 }
 0xb27   :  { %v1668_v17 = vpop.xlane.xlu2 %1667 }
 0xb28   :  { %v1674_v14 = vsub.f32 %v1654_v31, %v1668_v17 }
 0xb2a   :  { %v1680_v19 = vmul.f32 1.442695, %v1674_v14 }
 0xb2c   :  { %3160 = vpow2.f32 %v1680_v19 }
 0xb2f   :  { %v1671_v63 = vpop.xlane.xlu0 %1670  ;;  %v1861_v40 = vpop.xlane.xlu2 %1860 }
 0xb30   :  { %v1675_v21 = vsub.f32 %v4139_v34, %v1671_v63  ;;  %v1869_v16 = vsub.f32 %v4137_v15, %v1861_v40  ;;  %v3028_v63 = vunpack.i.l.bf16 %v4171_v55  ;;  %v3029_v40 = vunpack.i.h.bf16 %v4171_v55 }
 0xb32   :  { %v4201_v51 = vpop.eup %3160  ;;  %v1682_v11 = vmul.f32 1.442695, %v1675_v21  ;;  %v1874_v57 = vmul.f32 1.442695, %v1869_v16 }
 0xb33   :  { %v1690_v2 = vsel %vm359_vm11, %v4201_v51, 0.0 }
 0xb34   :  { %3162 = vpow2.f32 %v1682_v11  ;;  %1691 = vadd.xlane.f32.xlu1 %v1690_v2 }
 0xb35   :  { %3164 = vpow2.f32 %v1874_v57 }
 0xb37   :  { %v1864_v41 = vpop.xlane.xlu0 %1863  ;;  %v2070_v23 = vpop.xlane.xlu2 %2069 }
 0xb38   :  { %v1870_v35 = vsub.f32 %v4147_v38, %v1864_v41  ;;  %v2080_v24 = vsub.f32 %v4145_v18, %v2070_v23 }
 0xb3a   :  { %v4207_v9 = vpop.eup %3162  ;;  %v1876_v27 = vmul.f32 1.442695, %v1870_v35  ;;  %v2084_v28 = vmul.f32 1.442695, %v2080_v24 }
 0xb3b   :  { %v4209_v30 = vpop.eup %3164  ;;  %v1693_v31 = vsel %vm359_vm11, %v4207_v9, 0.0 }
 0xb3c   :  { %3166 = vpow2.f32 %v1876_v27  ;;  %v1883_v32 = vsel %vm359_vm11, %v4209_v30, 0.0  ;;  %1694 = vadd.xlane.f32.xlu2 %v1693_v31 }
 0xb3d   :  { %3168 = vpow2.f32 %v2084_v28  ;;  %1884 = vadd.xlane.f32.xlu1 %v1883_v32 }
 0xb3f   :  { %v1867_v15 = vpop.xlane.xlu0 %1866  ;;  %v2073_v34 = vpop.xlane.xlu2 %2072 }
 0xb40   :  { %v1871_v58 = vsub.f32 %v4155_v44, %v1867_v15  ;;  %v2081_v22 = vsub.f32 %v4153_v20, %v2073_v34 }
 0xb42   :  { %v4217_v18 = vpop.eup %3166  ;;  %v1878_v38 = vmul.f32 1.442695, %v1871_v58  ;;  %v2086_v12 = vmul.f32 1.442695, %v2081_v22 }
 0xb43   :  { %v4219_v60 = vpop.eup %3168  ;;  %v1886_v45 = vsel %vm359_vm11, %v4217_v18, 0.0 }
 0xb44   :  { %3170 = vpow2.f32 %v1878_v38  ;;  %v2092_v26 = vsel %vm359_vm11, %v4219_v60, 0.0 }
 0xb45   :  { %3172 = vpow2.f32 %v2086_v12  ;;  %2093 = vadd.xlane.f32.xlu0 %v2092_v26  ;;  %1887 = vadd.xlane.f32.xlu1 %v1886_v45  ;;  %v2282_v48 = vpop.xlane.xlu1 %2281 }
 0xb46   :  { %v2292_v44 = vsub.f32 %v4161_v47, %v2282_v48 }
 0xb47   :  { %v2076_v20 = vpop.xlane.xlu0 %2075 }
 0xb48   :  { %v2296_v54 = vmul.f32 1.442695, %v2292_v44  ;;  %v2082_v50 = vsub.f32 %v4165_v36, %v2076_v20 }
 0xb4a   :  { %v4227_v52 = vpop.eup %3170  ;;  %v2088_v42 = vmul.f32 1.442695, %v2082_v50  ;;  %3174 = vpow2.f32 %v2296_v54 }
 0xb4b   :  { %v4229_v56 = vpop.eup %3172  ;;  %v1889_v61 = vsel %vm359_vm11, %v4227_v52, 0.0 }
 0xb4c   :  { %3176 = vpow2.f32 %v2088_v42  ;;  %v2095_v29 = vsel %vm359_vm11, %v4229_v56, 0.0 }
 0xb4d   :  { %2096 = vadd.xlane.f32.xlu0 %v2095_v29  ;;  %1890 = vadd.xlane.f32.xlu1 %v1889_v61  ;;  %v2285_v47 = vpop.xlane.xlu2 %2284 }
 0xb4e   :  { %v2293_v62 = vsub.f32 %v4169_v49, %v2285_v47 }
 0xb50   :  { %v2298_v0 = vmul.f32 1.442695, %v2293_v62  ;;  %v4236_v36 = vpop.eup %3174 }
 0xb51   :  { %v2304_v1 = vsel %vm359_vm11, %v4236_v36, 0.0 }
 0xb52   :  { %v4238_v3 = vpop.eup %3176  ;;  %3178 = vpow2.f32 %v2298_v0 }
 0xb53   :  { %v2098_v6 = vsel %vm359_vm11, %v4238_v3, 0.0 }
 0xb54   :  { %2099 = vadd.xlane.f32.xlu2 %v2098_v6 }
 0xb55   :  { %2305 = vadd.xlane.f32.xlu1 %v2304_v1  ;;  %v2079_v37 = vpop.xlane.xlu2 %2078 }
 0xb56   :  { %v2083_v55 = vsub.f32 %v4175_v53, %v2079_v37 }
 0xb58   :  { %v4244_v33 = vpop.eup %3178  ;;  %v2090_v23 = vmul.f32 1.442695, %v2083_v55 }
 0xb59   :  { %v2307_v49 = vsel %vm359_vm11, %v4244_v33, 0.0 }
 0xb5a   :  { %2308 = vadd.xlane.f32.xlu0 %v2307_v49 }
 0xb5d   :  { %v2288_v43 = vpop.xlane.xlu2 %2287 }
 0xb5e   :  { %v2294_v41 = vsub.f32 %v4180_v4, %v2288_v43 }
 0xb60   :  { %v2300_v35 = vmul.f32 1.442695, %v2294_v41 }
 0xb61   :  { %v1882_v21 = vpop.xlane.xlu0 %1881 }
 0xb65   :  { %v1686_v59 = vpop.xlane.xlu2 %1685 }
 0xb66   :  { %3180 = vrcp.f32 %v1686_v59 }
 0xb6c   :  { %v3181_v17 = vpop.eup %3180  ;;  %3046 = vrot.lane.b32.xlu2 %v4064_v46, %s3464_s23 }
 0xb6d   :  { %v1700_v14 = vmul.f32 %v3181_v17, %v4189_v8  ;;  %v1689_v19 = vpop.xlane.xlu2 %1688 }
 0xb6e   :  { %3182 = vrcp.f32 %v1689_v19  ;;  %3036 = vrot.lane.b32.xlu1 %v4086_v39, %s3464_s23  ;;  %3041 = vrot.lane.b32.xlu0 %v4064_v46, %s3463_s22 }
 0xb6f   :  { %2875 = vmatmul.msk.f32.vlgmr.msrb.gmra.mxu3 %vm359_vm11, %v1700_v14  ;;  %3184 = vrcp.f32 %v1882_v21 }
 0xb70   :  { %2138 = vmatpush.msrb.mxu3 %v3028_v63  ;;  %3186 = vpow2.f32 %v2090_v23 }
 0xb71   :  { %3188 = vpow2.f32 %v2300_v35 }
 0xb72   :  { %2139 = vmatpush.msrb.mxu3 %v3029_v40 }
 0xb74   :  { %v3183_v16 = vpop.eup %3182 }
 0xb75   :  { %v3032_v8 = vpop.permute.xlu2 %3031  ;;  %v1701_v11 = vmul.f32 %v3183_v16, %v4193_v13  ;;  %v3185_v39 = vpop.eup %3184 }
 0xb76   :  { %v3033_v57 = vunpack.i.l.bf16 %v3032_v8  ;;  %v3034_v2 = vunpack.i.h.bf16 %v3032_v8  ;;  %v1896_v46 = vmul.f32 %v3185_v39, %v4185_v5  ;;  %v4264_v13 = vpop.f32.mrf.mxu2  ;;  %v4266_v24 = vpop.eup %3186 }
 0xb77   :  { %2876 = vmatmul.msk.f32.gmra.mxu3 %vm359_vm11, %v1701_v11  ;;  %v4268_v27 = vpop.eup %3188  ;;  %v2289_v28 = vsel %vm359_vm11, %v4264_v13, -inf  ;;  %v2101_v5 = vsel %vm359_vm11, %v4266_v24, 0.0 }
 0xb78   :  { %1961 = vmatpush.msrb.mxu0 %v3033_v57  ;;  %v2310_v53 = vsel %vm359_vm11, %v4268_v27, 0.0 }
 0xb7a   :  { %1962 = vmatpush.msrb.mxu0 %v3034_v2 }
 0xb7f   :  { %2887 = vmatmul.msk.f32.vlgmr.msra.gmra.mxu3 %vm359_vm11, %v1896_v46 }
 0xb95   :  { %2290 = vmax.xlane.f32.xlu2 %v2289_v28 }
 0xb98   :  { %2102 = vadd.xlane.f32.xlu1 %v2101_v5  ;;  %2311 = vadd.xlane.f32.xlu0 %v2310_v53 }
 0xba7   :  { %v1692_v4 = vpop.xlane.xlu1 %1691 }
 0xba8   :  { %3190 = vrcp.f32 %v1692_v4 }
 0xbae   :  { %v3191_v31 = vpop.eup %3190 }
 0xbaf   :  { %v1702_v32 = vmul.f32 %v3191_v31, %v4201_v51  ;;  %v1695_v15 = vpop.xlane.xlu2 %1694 }
 0xbb0   :  { %3192 = vrcp.f32 %v1695_v15  ;;  %v1885_v34 = vpop.xlane.xlu1 %1884 }
 0xbb1   :  { %3194 = vrcp.f32 %v1885_v34  ;;  %2877 = vmatmul.msk.f32.vlgmr.msra.gmra.mxu0 %vm359_vm11, %v1702_v32 }
 0xbb6   :  { %v3193_v58 = vpop.eup %3192 }
 0xbb7   :  { %v3195_v22 = vpop.eup %3194  ;;  %v1703_v38 = vmul.f32 %v3193_v58, %v4207_v9 }
 0xbb8   :  { %v2094_v12 = vpop.xlane.xlu0 %2093  ;;  %v1888_v45 = vpop.xlane.xlu1 %1887  ;;  %v1897_v26 = vmul.f32 %v3195_v22, %v4209_v30 }
 0xbb9   :  { %3196 = vrcp.f32 %v2094_v12  ;;  %2878 = vmatmul.msk.f32.gmra.mxu0 %vm359_vm11, %v1703_v38 }
 0xbba   :  { %3198 = vrcp.f32 %v1888_v45  ;;  %2888 = vmatmul.msk.f32.gmra.mxu3 %vm359_vm11, %v1897_v26  ;;  %v2918_v26 = vld [vmem:[%s4467_s5 + $0x38] sm:$0xff] }
 0xbbb   :  { %2452 = vmatpush.msrb.mxu1 %v2918_v26 }
 0xbbf   :  { %v3197_v51 = vpop.eup %3196 }
 0xbc0   :  { %v3199_v48 = vpop.eup %3198  ;;  %v2108_v44 = vmul.f32 %v3197_v51, %v4219_v60  ;;  %v2097_v20 = vpop.xlane.xlu0 %2096  ;;  %v2917_v51 = vld [vmem:[%s4467_s5 + $0x30] sm:$0xff] }
 0xbc1   :  { %v1891_v54 = vpop.xlane.xlu1 %1890  ;;  %v1898_v50 = vmul.f32 %v3199_v48, %v4217_v18  ;;  %3200 = vrcp.f32 %v2097_v20  ;;  %v2916_v48 = vld [vmem:[%s4467_s5 + $0x28] sm:$0xff]  ;;  %2453 = vmatpush.msrb.mxu1 %v2917_v51  ;;  %v2915_v20 = vld [vmem:[%s4467_s5 + $0x20] sm:$0xff]  ;;  %s2780_s5 = sshll.u32 %s3466_s0, 4  ;;  %s2781_s5 = int_to_ptr.vmem [resolvable:$true] %s2780_s5 }
 0xbc2   :  { %3202 = vrcp.f32 %v1891_v54  ;;  %2899 = vmatmul.msk.f32.vlgmr.msrb.gmra.mxu3 %vm359_vm11, %v2108_v44 }
 0xbc3   :  { %2889 = vmatmul.msk.f32.vlgmr.msrb.gmra.mxu0 %vm359_vm11, %v1898_v50  ;;  %2454 = vmatpush.msrb.mxu1 %v2916_v48 }
 0xbc5   :  { %2455 = vmatpush.msrb.mxu1 %v2915_v20 }
 0xbc7   :  { %v3201_v9 = vpop.eup %3200  ;;  %v2100_v60 = vpop.xlane.xlu2 %2099 }
 0xbc8   :  { %v3203_v30 = vpop.eup %3202  ;;  %v2109_v42 = vmul.f32 %v3201_v9, %v4229_v56  ;;  %3204 = vrcp.f32 %v2100_v60 }
 0xbc9   :  { %v1899_v61 = vmul.f32 %v3203_v30, %v4227_v52  ;;  %v2306_v29 = vpop.xlane.xlu1 %2305 }
 0xbca   :  { %2900 = vmatmul.msk.f32.gmra.mxu3 %vm359_vm11, %v2109_v42  ;;  %3206 = vrcp.f32 %v2306_v29 }
 0xbcb   :  { %2890 = vmatmul.msk.f32.gmra.mxu0 %vm359_vm11, %v1899_v61 }
 0xbcd   :  { %v2309_v47 = vpop.xlane.xlu0 %2308 }
 0xbce   :  { %v3205_v18 = vpop.eup %3204  ;;  %3208 = vrcp.f32 %v2309_v47 }
 0xbcf   :  { %v3047_v49 = vpop.permute.xlu2 %3046  ;;  %v2110_v52 = vmul.f32 %v3205_v18, %v4238_v3 }
 0xbd0   :  { %v3207_v6 = vpop.eup %3206  ;;  %v3048_v17 = vunpack.i.l.bf16 %v3047_v49  ;;  %v3049_v14 = vunpack.i.h.bf16 %v3047_v49 }
 0xbd1   :  { %v2320_v59 = vmul.f32 %v3207_v6, %v4236_v36 }
 0xbd4   :  { %v3209_v19 = vpop.eup %3208 }
 0xbd5   :  { %v2321_v63 = vmul.f32 %v3209_v19, %v4244_v33 }
 0xbe0   :  { %v3037_v62 = vpop.permute.xlu1 %3036  ;;  %v3042_v0 = vpop.permute.xlu0 %3041 }
 0xbe1   :  { %v3038_v1 = vunpack.i.l.bf16 %v3037_v62  ;;  %v3043_v37 = vunpack.i.l.bf16 %v3042_v0  ;;  %v3039_v56 = vunpack.i.h.bf16 %v3037_v62  ;;  %v3044_v43 = vunpack.i.h.bf16 %v3042_v0  ;;  %v3057_v0 = vld [vmem:[#allocation12 + $0x1] ss:$0 sm:$0xff] }
 0xbe3   :  { %2350 = vmatpush.msra.mxu3 %v3038_v1  ;;  %2173 = vmatpush.msra.mxu0 %v3043_v37  ;;  %v3238_v37 = vld [vmem:[#allocation2] sm:$0xff] }
 0xbe5   :  { %2351 = vmatpush.msra.mxu3 %v3039_v56  ;;  %2174 = vmatpush.msra.mxu0 %v3044_v43 }
 0xbe6   :  { %2911 = vmatmul.msk.f32.vlgmr.msra.gmra.mxu3 %vm359_vm11, %v2320_v59  ;;  %2901 = vmatmul.msk.f32.vlgmr.msra.gmra.mxu0 %vm359_vm11, %v2110_v52  ;;  %v3239_v59 = vld [vmem:[#allocation2 + $0x8] sm:$0xff] }
 0xbe7   :  { %2385 = vmatpush.msrb.mxu0 %v3048_v17 }
 0xbe9   :  { %2386 = vmatpush.msrb.mxu0 %v3049_v14 }
 0xbee   :  { %2912 = vmatmul.msk.f32.gmra.mxu3 %vm359_vm11, %v2321_v63 }
 0xbf2   :  { %v1733_v40 = vpop.f32.mrf.mxu3 }
 0xbf3   :  { %1774 = vst.msk [vmem:[#allocation3] sm:$0xff] %vm286_vm10, %v1733_v40 }
 0xbfa   :  { %v1736_v3 = vpop.f32.mrf.mxu3 }
 0xbfb   :  { %1775 = vst.msk [vmem:[#allocation3 + $0x8] sm:$0xff] %vm286_vm10, %v1736_v3 }
 0xc02   :  { %v1929_v36 = vpop.f32.mrf.mxu3 }
 0xc03   :  { %1974 = vrot.lane.b32.xlu0 %v1929_v36, %s3449_s29 }
 0xc08   :  { %v2291_v21 = vpop.xlane.xlu2 %2290 }
 0xc09   :  { %v2295_v16 = vsub.f32 %v4264_v13, %v2291_v21 }
 0xc0b   :  { %v2302_v8 = vmul.f32 1.442695, %v2295_v16  ;;  %v2103_v11 = vpop.xlane.xlu1 %2102  ;;  %v2312_v57 = vpop.xlane.xlu0 %2311 }
 0xc0c   :  { %3210 = vrcp.f32 %v2103_v11 }
 0xc0d   :  { %3212 = vpow2.f32 %v2302_v8 }
 0xc0e   :  { %3214 = vrcp.f32 %v2312_v57 }
 0xc12   :  { %v3211_v33 = vpop.eup %3210 }
 0xc13   :  { %v3213_v2 = vpop.eup %3212  ;;  %v2111_v39 = vmul.f32 %v3211_v33, %v4266_v24 }
 0xc14   :  { %v2313_v46 = vsel %vm359_vm11, %v3213_v2, 0.0  ;;  %v3215_v55 = vpop.eup %3214 }
 0xc15   :  { %2902 = vmatmul.msk.f32.gmra.mxu0 %vm359_vm11, %v2111_v39  ;;  %2314 = vadd.xlane.f32.xlu1 %v2313_v46  ;;  %v2322_v41 = vmul.f32 %v3215_v55, %v4268_v27 }
 0xc1d   :  { %2913 = vmatmul.msk.f32.vlgmr.msrb.gmra.mxu0 %vm359_vm11, %v2322_v41 }
 0xc2e   :  { %v1768_v23 = vpop.f32.mrf.mxu0 }
 0xc2f   :  { %1776 = vst.msk [vmem:[#allocation3 + $0x10] sm:$0xff] %vm286_vm10, %v1768_v23 }
 0xc36   :  { %v1771_v35 = vpop.f32.mrf.mxu0 }
 0xc37   :  { %1777 = vst.msk [vmem:[#allocation3 + $0x18] sm:$0xff] %vm286_vm10, %v1771_v35 }
 0xc3d   :  { %v1932_v13 = vpop.f32.mrf.mxu3 }
 0xc3e   :  { %1976 = vrot.lane.b32.xlu2 %v1932_v13, %s3449_s29 }
 0xc40   :  { %v1964_v5 = vpop.f32.mrf.mxu0 }
 0xc45   :  { %v2141_v24 = vpop.f32.mrf.mxu3 }
 0xc46   :  { %2186 = vrot.lane.b32.xlu1 %v2141_v24, %s3444_s18 }
 0xc48   :  { %v1967_v53 = vpop.f32.mrf.mxu0 }
 0xc4d   :  { %v2144_v28 = vpop.f32.mrf.mxu3 }
 0xc4e   :  { %2188 = vrot.lane.b32.xlu1 %v2144_v28, %s3444_s18 }
 0xc56   :  { %1978 = vrot.lane.b32.xlu1 %v1964_v5, %s3449_s29 }
 0xc63   :  { %v2176_v32 = vpop.f32.mrf.mxu0 }
 0xc69   :  { %v2353_v27 = vpop.f32.mrf.mxu3 }
 0xc6a   :  { %2398 = vrot.lane.b32.xlu0 %v2353_v27, %s3465_s4 }
 0xc71   :  { %v2356_v4 = vpop.f32.mrf.mxu3 }
 0xc72   :  { %2400 = vrot.lane.b32.xlu0 %v2356_v4, %s3465_s4  ;;  %v2927_v4 = vld [vmem:[%s4469_s7 + $0x38] sm:$0xff] }
 0xc73   :  { %2607 = vmatpush.msrb.mxu2 %v2927_v4 }
 0xc75   :  { %v1975_v31 = vpop.permute.xlu0 %1974 }
 0xc76   :  { %1986 = vst.msk [vmem:[#allocation3] sm:$0xff] %vm686_vm12, %v1975_v31  ;;  %v2925_v31 = vld [vmem:[%s4469_s7 + $0x28] sm:$0xff] }
 0xc7a   :  { %2190 = vrot.lane.b32.xlu0 %v2176_v32, %s3444_s18  ;;  %v2924_v32 = vld [vmem:[%s4469_s7 + $0x20] sm:$0xff] }
 0xc82   :  { %1980 = vrot.lane.b32.xlu0 %v1967_v53, %s3449_s29 }
 0xc88   :  { %v2315_v15 = vpop.xlane.xlu1 %2314 }
 0xc89   :  { %3216 = vrcp.f32 %v2315_v15 }
 0xc8f   :  { %v3217_v34 = vpop.eup %3216 }
 0xc90   :  { %v2323_v58 = vmul.f32 %v3217_v34, %v3213_v2 }
 0xc92   :  { %v2179_v22 = vpop.f32.mrf.mxu0  ;;  %2914 = vmatmul.msk.f32.gmra.mxu0 %vm359_vm11, %v2323_v58 }
 0xc93   :  { %2192 = vrot.lane.b32.xlu2 %v2179_v22, %s3444_s18 }
 0xc98   :  { %v1977_v38 = vpop.permute.xlu2 %1976 }
 0xc99   :  { %1987 = vst.msk [vmem:[#allocation3 + $0x8] sm:$0xff] %vm686_vm12, %v1977_v38 }
 0xc9a   :  { %v2388_v12 = vpop.f32.mrf.mxu0 }
 0xc9b   :  { %2402 = vrot.lane.b32.xlu1 %v2388_v12, %s3465_s4 }
 0xcb8   :  { %v2187_v45 = vpop.permute.xlu1 %2186 }
 0xcb9   :  { %2198 = vst.msk [vmem:[#allocation3] sm:$0xff] %vm899_vm13, %v2187_v45 }
 0xcc0   :  { %v2189_v44 = vpop.permute.xlu1 %2188 }
 0xcc1   :  { %2199 = vst.msk [vmem:[#allocation3 + $0x8] sm:$0xff] %vm899_vm13, %v2189_v44  ;;  %v2923_v44 = vld [vmem:[%s4473_s11 + $0x2] sm:$0x3] }
 0xcc8   :  { %v1979_v54 = vpop.permute.xlu1 %1978 }
 0xcc9   :  { %1988 = vst.msk [vmem:[#allocation3 + $0x10] sm:$0xff] %vm686_vm12, %v1979_v54 }
 0xcdc   :  { %v2399_v50 = vpop.permute.xlu0 %2398 }
 0xcdd   :  { %2410 = vst.msk [vmem:[#allocation3] sm:$0xff] %vm1112_vm14, %v2399_v50 }
 0xce4   :  { %v2401_v9 = vpop.permute.xlu0 %2400  ;;  %v2414_v30 = vld [vmem:[#allocation3] sm:$0xff] }
 0xce5   :  { %2411 = vst.msk [vmem:[#allocation3 + $0x8] sm:$0xff] %vm1112_vm14, %v2401_v9  ;;  %2919 = vmatmul.msk.f32.vlgmr.msrb.gmra.mxu1 %vm156_vm0, %v2414_v30  ;;  %v4380_v30 = vperm.slane %v2923_v44, 0 }
 0xcec   :  { %v2191_v42 = vpop.permute.xlu0 %2190  ;;  %v2415_v61 = vld [vmem:[#allocation3 + $0x8] sm:$0xff] }
 0xced   :  { %2200 = vst.msk [vmem:[#allocation3 + $0x10] sm:$0xff] %vm899_vm13, %v2191_v42  ;;  %2920 = vmatmul.msk.f32.gmra.mxu1 %vm156_vm0, %v2415_v61  ;;  %v2193_v29 = vpop.permute.xlu2 %2192 }
 0xcf4   :  { %v1981_v60 = vpop.permute.xlu0 %1980 }
 0xcf5   :  { %1989 = vst.msk [vmem:[#allocation3 + $0x18] sm:$0xff] %vm686_vm12, %v1981_v60 }
 0xcf6   :  { %2201 = vst.msk [vmem:[#allocation3 + $0x18] sm:$0xff] %vm899_vm13, %v2193_v29  ;;  %v4382_v29 = vperm.slane %v2923_v44, 1 }
 0xd0d   :  { %v2403_v47 = vpop.permute.xlu1 %2402 }
 0xd0e   :  { %2412 = vst.msk [vmem:[#allocation3 + $0x10] sm:$0xff] %vm1112_vm14, %v2403_v47 }
 0xd0f   :  { %v2391_v18 = vpop.f32.mrf.mxu0 }
 0xd10   :  { %2404 = vrot.lane.b32.xlu1 %v2391_v18, %s3465_s4 }
 0xd15   :  { %v2416_v62 = vld [vmem:[#allocation3 + $0x10] sm:$0xff] }
 0xd16   :  { %2921 = vmatmul.msk.f32.gmra.mxu1 %vm156_vm0, %v2416_v62 }
 0xd62   :  { %v2457_v6 = vpop.f32.mrf.mxu1 }
 0xd63   :  { %v2458_v1 = vadd.f32 %v3057_v0, %v2457_v6 }
 0xd65   :  { %v2471_v49 = vadd.f32 %v3238_v37, %v2458_v1 }
 0xd67   :  { %v2475_v56 = vsel %vm156_vm0, %v2471_v49, 0.0 }
 0xd68   :  { %2476 = vadd.xlane.f32.xlu0 %v2475_v56 }
 0xd6a   :  { %v2460_v43 = vpop.f32.mrf.mxu1 }
 0xd6b   :  { %v2461_v52 = vadd.f32 %v3057_v0, %v2460_v43 }
 0xd6d   :  { %v2472_v17 = vadd.f32 %v3239_v59, %v2461_v52 }
 0xd6f   :  { %v2478_v14 = vsel %vm156_vm0, %v2472_v17, 0.0 }
 0xd70   :  { %2479 = vadd.xlane.f32.xlu2 %v2478_v14 }
 0xd82   :  { %v2405_v19 = vpop.permute.xlu1 %2404 }
 0xd83   :  { %2413 = vst.msk [vmem:[#allocation3 + $0x18] sm:$0xff] %vm1112_vm14, %v2405_v19 }
 0xd8a   :  { %v2417_v63 = vld [vmem:[#allocation3 + $0x18] sm:$0xff] }
 0xd8b   :  { %2922 = vmatmul.msk.f32.gmra.mxu1 %vm156_vm0, %v2417_v63 }
 0xd93   :  { %v2463_v40 = vpop.f32.mrf.mxu1 }
 0xd94   :  { %v2464_v3 = vadd.f32 %v3057_v0, %v2463_v40 }
 0xd96   :  { %v2473_v36 = vadd.f32 %v2464_v3, %v4047_v25 }
 0xd98   :  { %v2481_v21 = vsel %vm156_vm0, %v2473_v36, 0.0 }
 0xd99   :  { %2482 = vadd.xlane.f32.xlu1 %v2481_v21 }
 0xddb   :  { %v2477_v16 = vpop.xlane.xlu0 %2476 }
 0xddc   :  { %v2487_v8 = vmul.f32 %v2477_v16, %v3574_v10 }
 0xdde   :  { %v2491_v11 = vsub.f32 %v2471_v49, %v2487_v8 }
 0xde0   :  { %v2495_v57 = vmul.f32 %v2491_v11, %v2491_v11 }
 0xde2   :  { %v2499_v33 = vsel %vm156_vm0, %v2495_v57, 0.0 }
 0xde3   :  { %v2480_v2 = vpop.xlane.xlu2 %2479  ;;  %2500 = vadd.xlane.f32.xlu0 %v2499_v33 }
 0xde4   :  { %v2488_v39 = vmul.f32 %v2480_v2, %v3574_v10 }
 0xde6   :  { %v2492_v46 = vsub.f32 %v2472_v17, %v2488_v39 }
 0xde8   :  { %v2496_v55 = vmul.f32 %v2492_v46, %v2492_v46 }
 0xdea   :  { %v2502_v41 = vsel %vm156_vm0, %v2496_v55, 0.0  ;;  %v2938_v55 = vld [vmem:[%s4471_s9 + $0x70] sm:$0xff] }
 0xdeb   :  { %2503 = vadd.xlane.f32.xlu2 %v2502_v41  ;;  %v2937_v41 = vld [vmem:[%s4471_s9 + $0x68] sm:$0xff] }
 0xe08   :  { %v2466_v25 = vpop.f32.mrf.mxu1 }
 0xe09   :  { %v2467_v23 = vadd.f32 %v3057_v0, %v2466_v25  ;;  %v2936_v25 = vld [vmem:[%s4471_s9 + $0x60] sm:$0xff] }
 0xe0b   :  { %v2474_v35 = vadd.f32 %v2467_v23, %v4051_v7  ;;  %v2926_v7 = vld [vmem:[%s4469_s7 + $0x30] sm:$0xff]  ;;  %v2935_v23 = vld [vmem:[%s4471_s9 + $0x58] sm:$0xff] }
 0xe0c   :  { %v2483_v13 = vpop.xlane.xlu1 %2482  ;;  %2608 = vmatpush.msrb.mxu2 %v2926_v7 }
 0xe0d   :  { %v2489_v24 = vmul.f32 %v2483_v13, %v3574_v10  ;;  %v2484_v28 = vsel %vm156_vm0, %v2474_v35, 0.0  ;;  %v2933_v13 = vld [vmem:[%s4471_s9 + $0x48] sm:$0xff] }
 0xe0e   :  { %2485 = vadd.xlane.f32.xlu0 %v2484_v28  ;;  %2609 = vmatpush.msrb.mxu2 %v2925_v31  ;;  %v4431_v28 = vld [vmem:[#allocation13 + $0x1] ss:$0 sm:$0xff] }
 0xe0f   :  { %v4358_v5 = vsub.f32 %v2473_v36, %v2489_v24  ;;  %v2932_v24 = vld [vmem:[%s4471_s9 + $0x40] sm:$0xff] }
 0xe10   :  { %2610 = vmatpush.msrb.mxu2 %v2924_v32 }
 0xe11   :  { %v2497_v27 = vmul.f32 %v4358_v5, %v4358_v5 }
 0xe13   :  { %v2505_v53 = vsel %vm156_vm0, %v2497_v27, 0.0 }
 0xe14   :  { %2506 = vadd.xlane.f32.xlu1 %v2505_v53 }
 0xe56   :  { %v2501_v15 = vpop.xlane.xlu0 %2500 }
 0xe57   :  { %v2511_v34 = vmul.f32 %v2501_v15, %v3574_v10 }
 0xe59   :  { %v2515_v58 = vadd.f32 1e-05, %v2511_v34 }
 0xe5b   :  { %3218 = vrsqrt.f32 %v2515_v58  ;;  %vm2525_vm11 = vweird.f32 %v2515_v58 }
 0xe5e   :  { %v2504_v22 = vpop.xlane.xlu2 %2503 }
 0xe5f   :  { %v2512_v38 = vmul.f32 %v2504_v22, %v3574_v10 }
 0xe61   :  { %v3219_v12 = vpop.eup %3218  ;;  %v2516_v45 = vadd.f32 1e-05, %v2512_v38 }
 0xe62   :  { %v2520_v26 = vmul.f32 %v3219_v12, %v2515_v58  ;;  %vm2526_vm10 = vweird.f32 %v3219_v12 }
 0xe63   :  { %3220 = vrsqrt.f32 %v2516_v45  ;;  %vm2527_vm12 = vmor %vm2525_vm11, %vm2526_vm10  ;;  %vm2535_vm14 = vweird.f32 %v2516_v45 }
 0xe64   :  { %v2521_v51 = vmul.f32 %v3219_v12, %v2520_v26 }
 0xe66   :  { %v2522_v48 = vmul.f32 0.5, %v2521_v51 }
 0xe68   :  { %v2523_v20 = vsub.f32 1.5, %v2522_v48 }
 0xe69   :  { %v3221_v54 = vpop.eup %3220 }
 0xe6a   :  { %v2524_v50 = vmul.f32 %v3219_v12, %v2523_v20  ;;  %v2530_v9 = vmul.f32 %v3221_v54, %v2516_v45  ;;  %vm2536_vm13 = vweird.f32 %v3221_v54 }
 0xe6b   :  { %vm2537_vm6 = vmor %vm2535_vm14, %vm2536_vm13  ;;  %vm2773_vm13 = vcmask 254976  }
 0xe6c   :  { %v2528_v42 = vsel %vm2527_vm12, %v3219_v12, %v2524_v50  ;;  %v2531_v61 = vmul.f32 %v3221_v54, %v2530_v9  ;;  %vm2770_vm12 = vcmask 1041409  }
 0xe6d   :  { %v2559_v60 = vmul.f32 %v2528_v42, %v2491_v11 }
 0xe6e   :  { %v2532_v47 = vmul.f32 0.5, %v2531_v61 }
 0xe6f   :  { %v2564_v18 = vmul.f32 %v4380_v30, %v2559_v60 }
 0xe70   :  { %v2533_v62 = vsub.f32 1.5, %v2532_v47 }
 0xe71   :  { %v4386_v0 = vadd.f32 %v4382_v29, %v2564_v18 }
 0xe72   :  { %v2534_v6 = vmul.f32 %v3221_v54, %v2533_v62 }
 0xe73   :  { %2928 = vmatmul.msk.f32.vlgmr.msrb.gmra.mxu2 %vm156_vm0, %v4386_v0 }
 0xe74   :  { %v2538_v1 = vsel %vm2537_vm6, %v3221_v54, %v2534_v6 }
 0xe75   :  { %v2560_v37 = vmul.f32 %v2538_v1, %v2492_v46  ;;  %v2939_v46 = vld [vmem:[%s4471_s9 + $0x78] sm:$0xff] }
 0xe76   :  { %2694 = vmatpush.msrb.mxu3 %v2939_v46 }
 0xe77   :  { %v2565_v49 = vmul.f32 %v4380_v30, %v2560_v37 }
 0xe78   :  { %2695 = vmatpush.msrb.mxu3 %v2938_v55 }
 0xe79   :  { %v2570_v56 = vadd.f32 %v4382_v29, %v2565_v49 }
 0xe7a   :  { %2696 = vmatpush.msrb.mxu3 %v2937_v41 }
 0xe7b   :  { %2929 = vmatmul.msk.f32.gmra.mxu2 %vm156_vm0, %v2570_v56 }
 0xe7c   :  { %2697 = vmatpush.msrb.mxu3 %v2936_v25 }
 0xe7e   :  { %2698 = vmatpush.msrb.mxu3 %v2935_v23 }
 0xe81   :  { %v2486_v43 = vpop.xlane.xlu0 %2485 }
 0xe82   :  { %v2490_v52 = vmul.f32 %v2486_v43, %v3574_v10 }
 0xe84   :  { %v4394_v59 = vsub.f32 %v2474_v35, %v2490_v52  ;;  %v2934_v35 = vld [vmem:[%s4471_s9 + $0x50] sm:$0xff] }
 0xe85   :  { %2699 = vmatpush.msrb.mxu3 %v2934_v35 }
 0xe86   :  { %v2498_v17 = vmul.f32 %v4394_v59, %v4394_v59 }
 0xe87   :  { %v2507_v14 = vpop.xlane.xlu1 %2506  ;;  %2700 = vmatpush.msrb.mxu3 %v2933_v13 }
 0xe88   :  { %v2513_v19 = vmul.f32 %v2507_v14, %v3574_v10  ;;  %v2508_v63 = vsel %vm156_vm0, %v2498_v17, 0.0 }
 0xe89   :  { %2509 = vadd.xlane.f32.xlu2 %v2508_v63  ;;  %2701 = vmatpush.msrb.mxu3 %v2932_v24 }
 0xe8a   :  { %v2517_v40 = vadd.f32 1e-05, %v2513_v19 }
 0xe8c   :  { %3222 = vrsqrt.f32 %v2517_v40  ;;  %vm2545_vm8 = vweird.f32 %v2517_v40 }
 0xe92   :  { %v3223_v3 = vpop.eup %3222 }
 0xe93   :  { %v2540_v36 = vmul.f32 %v3223_v3, %v2517_v40  ;;  %vm2546_vm7 = vweird.f32 %v3223_v3 }
 0xe94   :  { %vm2547_vm9 = vmor %vm2545_vm8, %vm2546_vm7 }
 0xe95   :  { %v2541_v21 = vmul.f32 %v3223_v3, %v2540_v36 }
 0xe97   :  { %v2542_v16 = vmul.f32 0.5, %v2541_v21 }
 0xe99   :  { %v2543_v8 = vsub.f32 1.5, %v2542_v16 }
 0xe9b   :  { %v2544_v11 = vmul.f32 %v3223_v3, %v2543_v8 }
 0xe9d   :  { %v2548_v57 = vsel %vm2547_vm9, %v3223_v3, %v2544_v11 }
 0xe9e   :  { %v2561_v33 = vmul.f32 %v2548_v57, %v4358_v5 }
 0xea0   :  { %v2566_v2 = vmul.f32 %v4380_v30, %v2561_v33 }
 0xea2   :  { %v4403_v39 = vadd.f32 %v4382_v29, %v2566_v2 }
 0xea4   :  { %2930 = vmatmul.msk.f32.gmra.mxu2 %vm156_vm0, %v4403_v39 }
 0xef6   :  { %v2612_v5 = vpop.f32.mrf.mxu2 }
 0xef7   :  { %v2613_v27 = vadd.f32 %v4431_v28, %v2612_v5 }
 0xef9   :  { %v2628_v53 = vmul.f32 0.044715, %v2613_v27  ;;  %v2624_v50 = vmul.f32 0.5, %v2613_v27 }
 0xefb   :  { %v2632_v4 = vmul.f32 %v2628_v53, %v2613_v27 }
 0xefc   :  { %v2510_v7 = vpop.xlane.xlu2 %2509 }
 0xefd   :  { %v2636_v31 = vmul.f32 %v2632_v4, %v2613_v27  ;;  %v2514_v32 = vmul.f32 %v2510_v7, %v3574_v10 }
 0xefe   :  { %v2615_v15 = vpop.f32.mrf.mxu2 }
 0xeff   :  { %v2640_v34 = vadd.f32 %v2636_v31, %v2613_v27  ;;  %v2518_v58 = vadd.f32 1e-05, %v2514_v32  ;;  %v2616_v22 = vadd.f32 %v4431_v28, %v2615_v15 }
 0xf01   :  { %v2644_v38 = vmul.f32 0.7978846, %v2640_v34  ;;  %3224 = vrsqrt.f32 %v2518_v58  ;;  %v2629_v12 = vmul.f32 0.044715, %v2616_v22  ;;  %vm2555_vm1 = vweird.f32 %v2518_v58 }
 0xf02   :  { %v2625_v1 = vmul.f32 0.5, %v2616_v22 }
 0xf03   :  { %3226 = vtanh.f32 %v2644_v38  ;;  %v2633_v45 = vmul.f32 %v2629_v12, %v2616_v22 }
 0xf05   :  { %v2637_v26 = vmul.f32 %v2633_v45, %v2616_v22 }
 0xf07   :  { %v3225_v51 = vpop.eup %3224  ;;  %v2641_v48 = vadd.f32 %v2637_v26, %v2616_v22 }
 0xf08   :  { %v2550_v44 = vmul.f32 %v3225_v51, %v2518_v58  ;;  %vm2556_vm15 = vweird.f32 %v3225_v51 }
 0xf09   :  { %v3227_v20 = vpop.eup %3226  ;;  %v2645_v54 = vmul.f32 0.7978846, %v2641_v48  ;;  %vm2557_vm3 = vmor %vm2555_vm1, %vm2556_vm15 }
 0xf0a   :  { %v2551_v9 = vmul.f32 %v3225_v51, %v2550_v44  ;;  %v2652_v42 = vadd.f32 1.0, %v3227_v20 }
 0xf0b   :  { %3228 = vtanh.f32 %v2645_v54 }
 0xf0c   :  { %v2552_v61 = vmul.f32 0.5, %v2551_v9  ;;  %v2656_v60 = vmul.f32 %v2652_v42, %v2624_v50 }
 0xf0e   :  { %v2553_v47 = vsub.f32 1.5, %v2552_v61  ;;  %2940 = vmatmul.msk.f32.vlgmr.msrb.gmra.mxu3 %vm1370_vm2, %v2656_v60 }
 0xf10   :  { %v2554_v18 = vmul.f32 %v3225_v51, %v2553_v47 }
 0xf11   :  { %v3229_v62 = vpop.eup %3228 }
 0xf12   :  { %v2558_v6 = vsel %vm2557_vm3, %v3225_v51, %v2554_v18  ;;  %v2653_v37 = vadd.f32 1.0, %v3229_v62 }
 0xf13   :  { %v2562_v49 = vmul.f32 %v2558_v6, %v4394_v59 }
 0xf14   :  { %v2657_v56 = vmul.f32 %v2653_v37, %v2625_v1 }
 0xf15   :  { %v2567_v43 = vmul.f32 %v4380_v30, %v2562_v49  ;;  %v3059_v30 = vld [vmem:[#allocation15 + $0x1] ss:$0 sm:$0xff]  ;;  %v2944_v49 = vld [vmem:[%s4474_s12 + $0x2] sm:$0x3]  ;;  %s2782_s12 = sshll.u32 %s4475_s13, 4  ;;  %s2783_s12 = int_to_ptr.hbm [resolvable:$true] %s2782_s12 }
 0xf16   :  { %2941 = vmatmul.msk.f32.gmra.mxu3 %vm1370_vm2, %v2657_v56 }
 0xf17   :  { %v2572_v52 = vadd.f32 %v4382_v29, %v2567_v43 }
 0xf19   :  { %2931 = vmatmul.msk.f32.gmra.mxu2 %vm156_vm0, %v2572_v52  ;;  %v2761_v52 = vperm.slane %v2944_v49, 0 }
 0xf27   :  { %v2618_v17 = vpop.f32.mrf.mxu2 }
 0xf28   :  { %v2619_v14 = vadd.f32 %v4431_v28, %v2618_v17 }
 0xf2a   :  { %v2630_v19 = vmul.f32 0.044715, %v2619_v14  ;;  %v2626_v59 = vmul.f32 0.5, %v2619_v14 }
 0xf2c   :  { %v2634_v63 = vmul.f32 %v2630_v19, %v2619_v14 }
 0xf2e   :  { %v2638_v40 = vmul.f32 %v2634_v63, %v2619_v14 }
 0xf30   :  { %v2642_v3 = vadd.f32 %v2638_v40, %v2619_v14 }
 0xf32   :  { %v2646_v36 = vmul.f32 0.7978846, %v2642_v3  ;;  %v2764_v3 = vperm.slane %v2944_v49, 1 }
 0xf34   :  { %3230 = vtanh.f32 %v2646_v36 }
 0xf3a   :  { %v3231_v21 = vpop.eup %3230 }
 0xf3b   :  { %v2654_v16 = vadd.f32 1.0, %v3231_v21 }
 0xf3d   :  { %v2658_v8 = vmul.f32 %v2654_v16, %v2626_v59 }
 0xf3f   :  { %2942 = vmatmul.msk.f32.gmra.mxu3 %vm1370_vm2, %v2658_v8 }
 0xf91   :  { %v2703_v11 = vpop.f32.mrf.mxu3 }
 0xf92   :  { %v2704_v29 = vadd.f32 %v3059_v30, %v2703_v11 }
 0xf94   :  { %v2715_v57 = vadd.f32 %v2704_v29, %v4386_v0 }
 0xf96   :  { %v2717_v33 = vsel %vm156_vm0, %v2715_v57, 0.0 }
 0xf97   :  { %2718 = vadd.xlane.f32.xlu0 %v2717_v33 }
 0xf99   :  { %v2706_v2 = vpop.f32.mrf.mxu3 }
 0xf9c   :  { %v2621_v46 = vpop.f32.mrf.mxu2 }
 0xf9d   :  { %v2622_v55 = vadd.f32 %v4431_v28, %v2621_v46 }
 0xf9f   :  { %v2631_v41 = vmul.f32 0.044715, %v2622_v55  ;;  %v2627_v5 = vmul.f32 0.5, %v2622_v55 }
 0xfa1   :  { %v2635_v25 = vmul.f32 %v2631_v41, %v2622_v55 }
 0xfa3   :  { %v2639_v23 = vmul.f32 %v2635_v25, %v2622_v55 }
 0xfa5   :  { %v2643_v35 = vadd.f32 %v2639_v23, %v2622_v55 }
 0xfa7   :  { %v2647_v13 = vmul.f32 0.7978846, %v2643_v35 }
 0xfa9   :  { %3232 = vtanh.f32 %v2647_v13 }
 0xfaf   :  { %v3233_v24 = vpop.eup %3232 }
 0xfb0   :  { %v2655_v27 = vadd.f32 1.0, %v3233_v24 }
 0xfb2   :  { %v2659_v53 = vmul.f32 %v2655_v27, %v2627_v5 }
 0xfb4   :  { %2943 = vmatmul.msk.f32.gmra.mxu3 %vm1370_vm2, %v2659_v53 }
 0xfc2   :  { %v2708_v0 = vpop.f32.mrf.mxu3 }
 0xfc3   :  { %v2709_v4 = vadd.f32 %v3059_v30, %v2708_v0 }
 0xfc5   :  { %v2716_v7 = vadd.f32 %v2709_v4, %v4403_v39 }
 0xfc7   :  { %v2720_v31 = vsel %vm156_vm0, %v2716_v7, 0.0 }
 0xfc8   :  { %2721 = vadd.xlane.f32.xlu1 %v2720_v31 }
0x100a   :  { %v2719_v28 = vpop.xlane.xlu0 %2718 }
0x100b   :  { %v2723_v32 = vmul.f32 %v2719_v28, %v3574_v10 }
0x100d   :  { %v2725_v15 = vsub.f32 %v2715_v57, %v2723_v32 }
0x100f   :  { %v2727_v34 = vmul.f32 %v2725_v15, %v2725_v15 }
0x1011   :  { %v2729_v58 = vsel %vm156_vm0, %v2727_v34, 0.0 }
0x1012   :  { %2730 = vadd.xlane.f32.xlu1 %v2729_v58 }
0x1037   :  { %v2711_v22 = vpop.f32.mrf.mxu3 }
0x103b   :  { %v2722_v38 = vpop.xlane.xlu1 %2721 }
0x103c   :  { %v2724_v12 = vmul.f32 %v2722_v38, %v3574_v10 }
0x103e   :  { %v2726_v45 = vsub.f32 %v2716_v7, %v2724_v12 }
0x1040   :  { %v2728_v26 = vmul.f32 %v2726_v45, %v2726_v45 }
0x1042   :  { %v2732_v51 = vsel %vm156_vm0, %v2728_v26, 0.0 }
0x1043   :  { %2733 = vadd.xlane.f32.xlu2 %v2732_v51 }
0x1085   :  { %v2731_v39 = vpop.xlane.xlu1 %2730 }
0x1086   :  { %v2735_v48 = vmul.f32 %v2731_v39, %v3574_v10 }
0x1088   :  { %v2737_v44 = vadd.f32 1e-05, %v2735_v48 }
0x108a   :  { %3234 = vrsqrt.f32 %v2737_v44  ;;  %vm2745_vm2 = vweird.f32 %v2737_v44 }
0x1090   :  { %v3235_v20 = vpop.eup %3234 }
0x1091   :  { %v2740_v54 = vmul.f32 %v3235_v20, %v2737_v44  ;;  %vm2746_vm0 = vweird.f32 %v3235_v20 }
0x1092   :  { %vm2747_vm4 = vmor %vm2745_vm2, %vm2746_vm0 }
0x1093   :  { %v2741_v42 = vmul.f32 %v3235_v20, %v2740_v54 }
0x1095   :  { %v2742_v60 = vmul.f32 0.5, %v2741_v42 }
0x1097   :  { %v2743_v47 = vsub.f32 1.5, %v2742_v60 }
0x1099   :  { %v2744_v6 = vmul.f32 %v3235_v20, %v2743_v47 }
0x109b   :  { %v2748_v56 = vsel %vm2747_vm4, %v3235_v20, %v2744_v6 }
0x109c   :  { %v2759_v17 = vmul.f32 %v2748_v56, %v2725_v15 }
0x109e   :  { %v2762_v63 = vmul.f32 %v2761_v52, %v2759_v17 }
0x10a0   :  { %v2765_v21 = vadd.f32 %v2764_v3, %v2762_v63 }
0x10b6   :  { %v2734_v50 = vpop.xlane.xlu2 %2733 }
0x10b7   :  { %v2736_v9 = vmul.f32 %v2734_v50, %v3574_v10 }
0x10b9   :  { %v2738_v61 = vadd.f32 1e-05, %v2736_v9 }
0x10bb   :  { %3236 = vrsqrt.f32 %v2738_v61  ;;  %vm2755_vm10 = vweird.f32 %v2738_v61 }
0x10c1   :  { %v3237_v18 = vpop.eup %3236 }
0x10c2   :  { %v2750_v62 = vmul.f32 %v3237_v18, %v2738_v61  ;;  %vm2756_vm5 = vweird.f32 %v3237_v18 }
0x10c3   :  { %vm2757_vm11 = vmor %vm2755_vm10, %vm2756_vm5 }
0x10c4   :  { %v2751_v1 = vmul.f32 %v3237_v18, %v2750_v62 }
0x10c6   :  { %v2752_v37 = vmul.f32 0.5, %v2751_v1 }
0x10c8   :  { %v2753_v43 = vsub.f32 1.5, %v2752_v37 }
0x10ca   :  { %v2754_v10 = vmul.f32 %v3237_v18, %v2753_v43 }
0x10cc   :  { %v2758_v14 = vsel %vm2757_vm11, %v3237_v18, %v2754_v10 }
0x10cd   :  { %v2760_v19 = vmul.f32 %v2758_v14, %v2726_v45 }
0x10cf   :  { %v2763_v40 = vmul.f32 %v2761_v52, %v2760_v19 }
0x10d1   :  { %v2766_v36 = vadd.f32 %v2764_v3, %v2763_v40 }
0x10d3   :  { %v2769_v59 = vrot.slane %v2766_v36, 7 }
0x10d5   :  { %v2771_v16 = vsel %vm2770_vm12, %v2769_v59, %v2765_v21 }
0x10d6   :  { %2774 = vst.msk [vmem:[#allocation16] sm:$0x3] %vm2773_vm13, %v2771_v16 }
0x10d7   :  { %2785 = dma.vmem_to_hbm [thread:$0]  %s2781_s5, 32, %s2783_s12, [#allocation6]  }
0x10d8   :  { %3440 = dma.done.wait [#allocation6], 32  }
0x10d9   :  { %3441 = vsyncadd [#allocation6], 4294967264 }
0x10da   :  { %2790 = vsyncpa [#allocation5], 1 }
0x10db   :  { %2791 = vsyncpa [#allocation8], 1 }
0x10dc   :  { %2792 = vsyncpa [#allocation11], 1 }
0x10dd   :  { %2793 = vsyncpa [#allocation14], 1 }
0x10de   :  { %2794 = vsyncpa [#allocation6], 1 }

</bundles_post_ra>
